<compile_context>
chip_gen: v6e
topology: v6e:2x2x1
jax: 0.10.0
libtpu: 0.0.40
codegen_flags: <defaults>
</compile_context>

<pallas_src>
import functools

import jax
import jax.numpy as jnp
from jax.experimental import pallas as pl
from jax.experimental.pallas import tpu as pltpu


def adapter_kernel(x_ref, w1_ref, b1_ref, w2_ref, b2_ref, o_ref):
    """out = relu(relu(x @ W1 + b1) @ W2 + b2) for one [bb, C] batch tile."""
    # In-kernel bf16 cast of activations: VPU work hidden under the MXU, avoids
    # a separate XLA cast kernel (extra HBM pass over x) in the wrapper.
    x = x_ref[...].astype(jnp.bfloat16)
    # fc1: bf16 MXU matmul, f32 accumulation; bias + ReLU in f32.
    h = jnp.dot(x, w1_ref[...], preferred_element_type=jnp.float32)
    h = jnp.maximum(h + b1_ref[...], 0.0)          # b1 is (1, C) -> broadcasts
    # fc2: re-cast activation to bf16 for the second MXU pass.
    y = jnp.dot(h.astype(jnp.bfloat16), w2_ref[...],
                preferred_element_type=jnp.float32)
    y = jnp.maximum(y + b2_ref[...], 0.0)
    o_ref[...] = y.astype(o_ref.dtype)


def _round_up(n, m):
    return ((n + m - 1) // m) * m


def _choose_tiling(B, *, max_rows=256, min_steps=2):
    """Pick (batch_tile, padded_batch).

    Prefers an 8-aligned divisor of the 8-rounded batch (no pad / tail-slice
    wrapper ops); otherwise falls back to a near-even 8-aligned split with
    minimal padding.  max_rows=256 matches the v6e/v7x MXU M-dimension;
    min_steps=2 keeps >=2 grid steps so both v7x TensorCores get work.
    """
    if B <= 8:
        return B, B                         # single full-array block
    if B % 8 != 0 and B <= max_rows:
        return B, B                         # full-dim block: exempt from the 8-row rule
    B8 = _round_up(B, 8)
    max_rows = min(_round_up(max_rows, 8), B8)
    ideal_steps = max(min_steps, -(-B8 // max_rows))
    if B8 == B:
        # Largest 8-aligned divisor giving a sane step count -> zero padding.
        for bb in range(max_rows, 7, -8):
            if B8 % bb == 0 and min_steps <= (B8 // bb) <= max(2 * ideal_steps, 8):
                return bb, B8
    # Fallback: near-even 8-aligned split with minimal padding.
    bb = _round_up(-(-B8 // ideal_steps), 8)
    n_steps = -(-B8 // bb)
    return bb, bb * n_steps


def _vmem_limit_bytes(bb, C, single_buffer_weights):
    """Derive the scoped-VMEM limit from the actual footprint instead of a
    hardcoded constant; floor at 32 MiB, cap well under physical VMEM."""
    try:
        cap = int(pltpu.get_tpu_info().vmem_capacity_bytes)
    except Exception:
        cap = 64 * 1024 * 1024              # v7x per-TC VMEM (smallest target)
    wbuf = 1 if single_buffer_weights else 2
    weights = 2 * C * C * 2 * wbuf          # bf16 W1 + W2
    biases = 2 * C * 4 * wbuf               # f32 b1 + b2
    acts = 2 * (bb * C * 4) * 2             # f32 x / out tiles, double-buffered
    scratch = 4 * bb * C * 4                # f32 h, bf16 casts, epilogue temps
    need = weights + biases + acts + scratch
    return int(min(max(2 * need, 32 * 1024 * 1024), cap * 3 // 4))


def prepare_adapter_params(w1_torch, b1, w2_torch, b2):
    """One-time (outside-jit) param prep, hoisted out of the per-call path:
    transpose nn.Linear's [out, in] weights to [in, out], cast to bf16 for the
    MXU; biases to f32 [1, C] for the epilogue."""
    w1_torch = jnp.asarray(w1_torch)
    w2_torch = jnp.asarray(w2_torch)
    c = w1_torch.shape[0]
    return (w1_torch.T.astype(jnp.bfloat16),
            jnp.asarray(b1, jnp.float32).reshape(1, c),
            w2_torch.T.astype(jnp.bfloat16),
            jnp.asarray(b2, jnp.float32).reshape(1, c))


def adapter_forward(x, w1, b1, w2, b2, *, block_b=None, single_buffer_weights=True):
    """x: [B, C]; w1, w2: [C, C] laid out [in, out] (bf16 preferred);
    b1, b2: [C] or [1, C] (f32 preferred).  Use prepare_adapter_params()."""
    B, C = x.shape
    out_dtype = x.dtype

    # No-ops when params come from prepare_adapter_params (branches are static).
    if w1.dtype != jnp.bfloat16:
        w1 = w1.astype(jnp.bfloat16)
    if w2.dtype != jnp.bfloat16:
        w2 = w2.astype(jnp.bfloat16)
    if b1.ndim == 1:
        b1 = b1.reshape(1, C)
    if b1.dtype != jnp.float32:
        b1 = b1.astype(jnp.float32)
    if b2.ndim == 1:
        b2 = b2.reshape(1, C)
    if b2.dtype != jnp.float32:
        b2 = b2.astype(jnp.float32)

    if block_b is None:
        bb, B_pad = _choose_tiling(B)
    else:
        bb = _round_up(min(block_b, _round_up(B, 8)), 8)
        B_pad = _round_up(B, bb)
    if B_pad != B:
        x = jnp.pad(x, ((0, B_pad - B), (0, 0)))

    def resident(shape):
        # Constant index_map -> weights stay VMEM-resident across grid steps; a
        # second pipeline buffer would be pure VMEM waste, so single-buffer it.
        idx = lambda i: (0,) * len(shape)
        if single_buffer_weights:
            return pl.BlockSpec(shape, idx, pipeline_mode=pl.Buffered(1))
        return pl.BlockSpec(shape, idx)

    out = pl.pallas_call(
        adapter_kernel,
        out_shape=jax.ShapeDtypeStruct((B_pad, C), out_dtype),
        grid_spec=pltpu.PrefetchScalarGridSpec(
            num_scalar_prefetch=0,
            grid=(B_pad // bb,),
            in_specs=[
                pl.BlockSpec((bb, C), lambda i: (i, 0)),   # x tile (f32, cast in-kernel)
                resident((C, C)),                          # W1 (bf16, VMEM-resident)
                resident((1, C)),                          # b1
                resident((C, C)),                          # W2
                resident((1, C)),                          # b2
            ],
            out_specs=pl.BlockSpec((bb, C), lambda i: (i, 0)),
        ),
        compiler_params=pltpu.CompilerParams(
            # Batch axis is embarrassingly parallel -> megacore shard on v7x.
            # TODO(synk): evaluate pltpu.CORE_PARALLEL here once appropriate.
            dimension_semantics=("parallel",),
            vmem_limit_bytes=_vmem_limit_bytes(bb, C, single_buffer_weights),
        ),
    )(x, w1, b1, w2, b2)

    return out[:B] if B_pad != B else out


def adapter_reference_bf16(x, w1_bf, b1, w2_bf, b2):
    """Reference with the same bf16-operand / f32-accumulate numerics."""
    h = jnp.dot(x.astype(jnp.bfloat16), w1_bf, preferred_element_type=jnp.float32) + b1
    h = jnp.maximum(h, 0.0)
    y = jnp.dot(h.astype(jnp.bfloat16), w2_bf, preferred_element_type=jnp.float32) + b2
    return jnp.maximum(y, 0.0).astype(x.dtype)


def adapter_reference_f32(x, w1_torch, b1, w2_torch, b2):
    """Pure-f32 reference matching the PyTorch Adapter semantics."""
    h = jnp.maximum(x @ w1_torch.T + b1, 0.0)
    return jnp.maximum(h @ w2_torch.T + b2, 0.0)


if __name__ == "__main__":
    # Module default c_in=512; batch 200 is deliberately not a multiple of 128
    # to exercise the divisor-based tiling (bb=40, 5 grid steps, no pad/slice).
    B, C = 200, 512
    key = jax.random.PRNGKey(0)
    kx, kw1, kb1, kw2, kb2 = jax.random.split(key, 5)

    x = jax.random.normal(kx, (B, C), dtype=jnp.float32)

    # nn.Linear(c_in, c_in) init: weight [out, in], uniform(-1/sqrt(in), 1/sqrt(in)).
    bound = 1.0 / (C ** 0.5)
    w1_torch = jax.random.uniform(kw1, (C, C), minval=-bound, maxval=bound, dtype=jnp.float32)
    b1 = jax.random.uniform(kb1, (C,), minval=-bound, maxval=bound, dtype=jnp.float32)
    w2_torch = jax.random.uniform(kw2, (C, C), minval=-bound, maxval=bound, dtype=jnp.float32)
    b2 = jax.random.uniform(kb2, (C,), minval=-bound, maxval=bound, dtype=jnp.float32)

    # One-time prep (transpose + bf16 cast) hoisted out of the jitted path.
    params = prepare_adapter_params(w1_torch, b1, w2_torch, b2)

    fwd = jax.jit(adapter_forward)
    try:
        out = jax.block_until_ready(fwd(x, *params))
    except Exception:
        # Fall back to default double-buffered weights if this Pallas version
        # rejects pipeline_mode=pl.Buffered(1) on the resident-operand specs.
        fwd = jax.jit(functools.partial(adapter_forward, single_buffer_weights=False))
        out = jax.block_until_ready(fwd(x, *params))

    assert out.shape == (B, C)
    assert bool(jnp.all(out >= 0.0)), "ReLU output must be non-negative"

    # Tight check against a reference with matching bf16/f32 numerics.
    ref_bf16 = adapter_reference_bf16(x, *params)
    assert jnp.allclose(out, ref_bf16, atol=2e-2, rtol=2e-2), \
        "mismatch vs bf16-matched reference"

    # Loose sanity check against the pure-f32 PyTorch semantics.
    ref_f32 = adapter_reference_f32(x, w1_torch, b1, w2_torch, b2)
    assert jnp.allclose(out, ref_f32, atol=1e-1, rtol=1e-1), \
        "mismatch vs f32 reference"

    print("KERNEL_OK")
</pallas_src>

<mosaic_0001>
module attributes {stable_mosaic.version = 11 : i64} {
  func.func @adapter_kernel(%arg0: i32, %arg1: memref<40x512xf32, #tpu.memory_space<vmem>>, %arg2: memref<512x512xbf16, #tpu.memory_space<vmem>>, %arg3: memref<1x512xf32, #tpu.memory_space<vmem>>, %arg4: memref<512x512xbf16, #tpu.memory_space<vmem>>, %arg5: memref<1x512xf32, #tpu.memory_space<vmem>>, %arg6: memref<40x512xf32, #tpu.memory_space<vmem>>) attributes {dimension_semantics = [#tpu.dimension_semantics<parallel>], iteration_bounds = array<i64: 5>, scalar_prefetch = 0 : i64, scratch_operands = 0 : i64, tpu.core_type = #tpu.core_type<tc>, window_params = [{transform_indices = @transform_0, window_bounds = array<i64: 40, 512>}, {pipeline_mode = #tpu.pipeline_mode<synchronous>, transform_indices = @transform_1, window_bounds = array<i64: 512, 512>}, {pipeline_mode = #tpu.pipeline_mode<synchronous>, transform_indices = @transform_2, window_bounds = array<i64: 1, 512>}, {pipeline_mode = #tpu.pipeline_mode<synchronous>, transform_indices = @transform_3, window_bounds = array<i64: 512, 512>}, {pipeline_mode = #tpu.pipeline_mode<synchronous>, transform_indices = @transform_4, window_bounds = array<i64: 1, 512>}, {transform_indices = @transform_5, window_bounds = array<i64: 40, 512>}]} {
    %c0 = arith.constant 0 : index
    %c0_0 = arith.constant 0 : index
    %0 = vector.load %arg1[%c0, %c0_0] : memref<40x512xf32, #tpu.memory_space<vmem>>, vector<40x512xf32>
    %1 = arith.truncf %0 : vector<40x512xf32> to vector<40x512xbf16>
    %c0_1 = arith.constant 0 : index
    %c0_2 = arith.constant 0 : index
    %2 = vector.load %arg2[%c0_1, %c0_2] : memref<512x512xbf16, #tpu.memory_space<vmem>>, vector<512x512xbf16>
    %cst = arith.constant dense<0.000000e+00> : vector<40x512xf32>
    %3 = tpu.matmul %1, %2, %cst {dimension_numbers = #tpu.dot_dimension_numbers<[1], [0], [0], [1], [0, 0, 1, 1], [], []>} : vector<40x512xbf16>, vector<512x512xbf16>, vector<40x512xf32> -> vector<40x512xf32>
    %c0_3 = arith.constant 0 : index
    %c0_4 = arith.constant 0 : index
    %4 = vector.load %arg3[%c0_3, %c0_4] : memref<1x512xf32, #tpu.memory_space<vmem>>, vector<1x512xf32>
    %5 = vector.broadcast %4 : vector<1x512xf32> to vector<40x512xf32>
    %6 = arith.addf %3, %5 : vector<40x512xf32>
    %cst_5 = arith.constant 0.000000e+00 : f32
    %7 = vector.broadcast %cst_5 : f32 to vector<40x512xf32>
    %8 = arith.maximumf %6, %7 : vector<40x512xf32>
    %9 = arith.truncf %8 : vector<40x512xf32> to vector<40x512xbf16>
    %c0_6 = arith.constant 0 : index
    %c0_7 = arith.constant 0 : index
    %10 = vector.load %arg4[%c0_6, %c0_7] : memref<512x512xbf16, #tpu.memory_space<vmem>>, vector<512x512xbf16>
    %cst_8 = arith.constant dense<0.000000e+00> : vector<40x512xf32>
    %11 = tpu.matmul %9, %10, %cst_8 {dimension_numbers = #tpu.dot_dimension_numbers<[1], [0], [0], [1], [0, 0, 1, 1], [], []>} : vector<40x512xbf16>, vector<512x512xbf16>, vector<40x512xf32> -> vector<40x512xf32>
    %c0_9 = arith.constant 0 : index
    %c0_10 = arith.constant 0 : index
    %12 = vector.load %arg5[%c0_9, %c0_10] : memref<1x512xf32, #tpu.memory_space<vmem>>, vector<1x512xf32>
    %13 = vector.broadcast %12 : vector<1x512xf32> to vector<40x512xf32>
    %14 = arith.addf %11, %13 : vector<40x512xf32>
    %cst_11 = arith.constant 0.000000e+00 : f32
    %15 = vector.broadcast %cst_11 : f32 to vector<40x512xf32>
    %16 = arith.maximumf %14, %15 : vector<40x512xf32>
    %c0_12 = arith.constant 0 : index
    %c0_13 = arith.constant 0 : index
    %17 = vector.load %arg6[%c0_12, %c0_13] : memref<40x512xf32, #tpu.memory_space<vmem>>, vector<40x512xf32>
    tpu.vector_store %arg6[%c0_12, %c0_13], %16 {strides = array<i32>} : memref<40x512xf32, #tpu.memory_space<vmem>>, vector<40x512xf32>,
    return
  }
  func.func @transform_0(%arg0: i32) -> (i32, i32) {
    %c0_i32 = arith.constant 0 : i32
    %c0_i32_0 = arith.constant 0 : i32
    return %arg0, %c0_i32 : i32, i32
  }
  func.func @transform_1(%arg0: i32) -> (i32, i32) {
    %c0_i32 = arith.constant 0 : i32
    %c0_i32_0 = arith.constant 0 : i32
    %c0_i32_1 = arith.constant 0 : i32
    return %c0_i32, %c0_i32_0 : i32, i32
  }
  func.func @transform_2(%arg0: i32) -> (i32, i32) {
    %c0_i32 = arith.constant 0 : i32
    %c0_i32_0 = arith.constant 0 : i32
    %c0_i32_1 = arith.constant 0 : i32
    return %c0_i32, %c0_i32_0 : i32, i32
  }
  func.func @transform_3(%arg0: i32) -> (i32, i32) {
    %c0_i32 = arith.constant 0 : i32
    %c0_i32_0 = arith.constant 0 : i32
    %c0_i32_1 = arith.constant 0 : i32
    return %c0_i32, %c0_i32_0 : i32, i32
  }
  func.func @transform_4(%arg0: i32) -> (i32, i32) {
    %c0_i32 = arith.constant 0 : i32
    %c0_i32_0 = arith.constant 0 : i32
    %c0_i32_1 = arith.constant 0 : i32
    return %c0_i32, %c0_i32_0 : i32, i32
  }
  func.func @transform_5(%arg0: i32) -> (i32, i32) {
    %c0_i32 = arith.constant 0 : i32
    %c0_i32_0 = arith.constant 0 : i32
    return %arg0, %c0_i32 : i32, i32
  }
}

module attributes {stable_mosaic.version = 11 : i64} {
  func.func @adapter_kernel(%arg0: i32, %arg1: memref<40x512xf32, #tpu.memory_space<vmem>>, %arg2: memref<512x512xbf16, #tpu.memory_space<vmem>>, %arg3: memref<1x512xf32, #tpu.memory_space<vmem>>, %arg4: memref<512x512xbf16, #tpu.memory_space<vmem>>, %arg5: memref<1x512xf32, #tpu.memory_space<vmem>>, %arg6: memref<40x512xf32, #tpu.memory_space<vmem>>) attributes {dimension_semantics = [#tpu.dimension_semantics<parallel>], iteration_bounds = array<i64: 5>, scalar_prefetch = 0 : i64, scratch_operands = 0 : i64, tpu.core_type = #tpu.core_type<tc>, window_params = [{transform_indices = @transform_0, window_bounds = array<i64: 40, 512>}, {pipeline_mode = #tpu.pipeline_mode<synchronous>, transform_indices = @transform_1, window_bounds = array<i64: 512, 512>}, {pipeline_mode = #tpu.pipeline_mode<synchronous>, transform_indices = @transform_2, window_bounds = array<i64: 1, 512>}, {pipeline_mode = #tpu.pipeline_mode<synchronous>, transform_indices = @transform_3, window_bounds = array<i64: 512, 512>}, {pipeline_mode = #tpu.pipeline_mode<synchronous>, transform_indices = @transform_4, window_bounds = array<i64: 1, 512>}, {transform_indices = @transform_5, window_bounds = array<i64: 40, 512>}]} {
    %c0 = arith.constant 0 : index
    %c0_0 = arith.constant 0 : index
    %0 = vector.load %arg1[%c0, %c0_0] : memref<40x512xf32, #tpu.memory_space<vmem>>, vector<40x512xf32>
    %1 = arith.truncf %0 : vector<40x512xf32> to vector<40x512xbf16>
    %c0_1 = arith.constant 0 : index
    %c0_2 = arith.constant 0 : index
    %2 = vector.load %arg2[%c0_1, %c0_2] : memref<512x512xbf16, #tpu.memory_space<vmem>>, vector<512x512xbf16>
    %cst = arith.constant dense<0.000000e+00> : vector<40x512xf32>
    %3 = tpu.matmul %1, %2, %cst {dimension_numbers = #tpu.dot_dimension_numbers<[1], [0], [0], [1], [0, 0, 1, 1], [], []>} : vector<40x512xbf16>, vector<512x512xbf16>, vector<40x512xf32> -> vector<40x512xf32>
    %c0_3 = arith.constant 0 : index
    %c0_4 = arith.constant 0 : index
    %4 = vector.load %arg3[%c0_3, %c0_4] : memref<1x512xf32, #tpu.memory_space<vmem>>, vector<1x512xf32>
    %5 = vector.broadcast %4 : vector<1x512xf32> to vector<40x512xf32>
    %6 = arith.addf %3, %5 : vector<40x512xf32>
    %cst_5 = arith.constant 0.000000e+00 : f32
    %7 = vector.broadcast %cst_5 : f32 to vector<40x512xf32>
    %8 = arith.maximumf %6, %7 : vector<40x512xf32>
    %9 = arith.truncf %8 : vector<40x512xf32> to vector<40x512xbf16>
    %c0_6 = arith.constant 0 : index
    %c0_7 = arith.constant 0 : index
    %10 = vector.load %arg4[%c0_6, %c0_7] : memref<512x512xbf16, #tpu.memory_space<vmem>>, vector<512x512xbf16>
    %cst_8 = arith.constant dense<0.000000e+00> : vector<40x512xf32>
    %11 = tpu.matmul %9, %10, %cst_8 {dimension_numbers = #tpu.dot_dimension_numbers<[1], [0], [0], [1], [0, 0, 1, 1], [], []>} : vector<40x512xbf16>, vector<512x512xbf16>, vector<40x512xf32> -> vector<40x512xf32>
    %c0_9 = arith.constant 0 : index
    %c0_10 = arith.constant 0 : index
    %12 = vector.load %arg5[%c0_9, %c0_10] : memref<1x512xf32, #tpu.memory_space<vmem>>, vector<1x512xf32>
    %13 = vector.broadcast %12 : vector<1x512xf32> to vector<40x512xf32>
    %14 = arith.addf %11, %13 : vector<40x512xf32>
    %cst_11 = arith.constant 0.000000e+00 : f32
    %15 = vector.broadcast %cst_11 : f32 to vector<40x512xf32>
    %16 = arith.maximumf %14, %15 : vector<40x512xf32>
    %c0_12 = arith.constant 0 : index
    %c0_13 = arith.constant 0 : index
    %17 = vector.load %arg6[%c0_12, %c0_13] : memref<40x512xf32, #tpu.memory_space<vmem>>, vector<40x512xf32>
    tpu.vector_store %arg6[%c0_12, %c0_13], %16 {strides = array<i32>} : memref<40x512xf32, #tpu.memory_space<vmem>>, vector<40x512xf32>,
    return
  }
  func.func @transform_0(%arg0: i32) -> (i32, i32) {
    %c0_i32 = arith.constant 0 : i32
    %c0_i32_0 = arith.constant 0 : i32
    return %arg0, %c0_i32 : i32, i32
  }
  func.func @transform_1(%arg0: i32) -> (i32, i32) {
    %c0_i32 = arith.constant 0 : i32
    %c0_i32_0 = arith.constant 0 : i32
    %c0_i32_1 = arith.constant 0 : i32
    return %c0_i32, %c0_i32_0 : i32, i32
  }
  func.func @transform_2(%arg0: i32) -> (i32, i32) {
    %c0_i32 = arith.constant 0 : i32
    %c0_i32_0 = arith.constant 0 : i32
    %c0_i32_1 = arith.constant 0 : i32
    return %c0_i32, %c0_i32_0 : i32, i32
  }
  func.func @transform_3(%arg0: i32) -> (i32, i32) {
    %c0_i32 = arith.constant 0 : i32
    %c0_i32_0 = arith.constant 0 : i32
    %c0_i32_1 = arith.constant 0 : i32
    return %c0_i32, %c0_i32_0 : i32, i32
  }
  func.func @transform_4(%arg0: i32) -> (i32, i32) {
    %c0_i32 = arith.constant 0 : i32
    %c0_i32_0 = arith.constant 0 : i32
    %c0_i32_1 = arith.constant 0 : i32
    return %c0_i32, %c0_i32_0 : i32, i32
  }
  func.func @transform_5(%arg0: i32) -> (i32, i32) {
    %c0_i32 = arith.constant 0 : i32
    %c0_i32_0 = arith.constant 0 : i32
    return %arg0, %c0_i32 : i32, i32
  }
}

</mosaic_0001>

<bundles_post_ra>
// kernel: adapter_forward.1
= control target key start
LH: loop header
LB: loop body
LE: loop exit
PB: predicated region body
PF: predicated region fallthrough
CT: control target
= control target key end

     0   :  { %10 = vsyncpa [#allocation3], 0  ;;  %s3929_s0 = inlined_call_operand.hbm [shape: f32[200,512], index: 0, kind: input, shape index: {}]   ;;  %s3930_s1 = inlined_call_operand.hbm [shape: bf16[512,512], index: 1, kind: input, shape index: {}]   ;;  %s3931_s2 = inlined_call_operand.hbm [shape: f32[1,512], index: 2, kind: input, shape index: {}]   ;;  %s3932_s3 = inlined_call_operand.hbm [shape: bf16[512,512], index: 3, kind: input, shape index: {}]   ;;  %s3933_s4 = inlined_call_operand.vmem [shape: f32[1,512], index: 4, kind: input, shape index: {}]   ;;  %s3934_s5 = inlined_call_operand.hbm [shape: f32[200,512], index: 5, kind: output, shape index: {}]  }
   0x1   :  { %12 = vsyncpa [#allocation3 + $0x1], 0 }
   0x2   :  { %13 = vsyncpa [#allocation6], 0 }
   0x3   :  { %14 = vsyncpa [#allocation9], 0 }
   0x4   :  { %15 = vsyncpa [#allocation4], 0 }
   0x5   :  { %17 = vsyncpa [#allocation4 + $0x1], 0  ;;  %s3545_s18 = smov 0   ;;  %s3547_s19 = smov 0  }
   0x6   :  { %s3549_s20 = smov 0   ;;  %s3551_s21 = smov 0  }
   0x7 LB: > { %s3566_s22 = sadd.s32 4294967295, %s3502_s21   ;;  %s2577_s23 = sadd.s32 4294967294, %s3502_s21   ;;  %s3502_s21 = sphi %s3551_s21, %s3957_s21   ;;  %s3498_s20 = sphi %s3549_s20, %s3956_s20   ;;  %s3494_s19 = sphi %s3547_s19, %s3955_s19   ;;  %s3490_s18 = sphi %s3545_s18, %s3954_s18  }
   0x8   : > { %p43_p0 = scmp.ne.s32.totalorder %s3494_s19, %s3490_s18  ;;  %p3935_p1 = scmp.eq.s32.totalorder %s3566_s22, 0 }
   0x9   : > { %p157_p3 = scmp.eq.s32.totalorder %s2577_s23, 4  ;;  %p2578_p5 = scmp.ge.s32.totalorder %s3502_s21, 1 }
   0xa   : > { %p3575_p4 = por %p3935_p1, %p43_p0  ;;  %p164_p7 = scmp.lt.s32.totalorder %s3502_s21, 6 }
   0xb   : > { %p3580_p6 = por %p157_p3, %p43_p0  ;;  %s3504_s27 = smov [#allocation5]  }
   0xc   : > { %s3939_s24 = scalar_select %p3575_p4, 1, 0 }
   0xd   : > { %s3940_s25 = scalar_select %p3580_p6, 1, 0 }
   0xe   : > { %p3585_p8 = pnand %p2578_p5, %p164_p7  ;;  %s176_s28 = sshll.u32 %s3504_s27, 4  ;;  %s177_s28 = int_to_ptr.vmem [resolvable:$true] %s176_s28 }
   0xf   : > { %s3505_s30 = smov [#allocation7]   ;;  %s3506_s7 = smov [#allocation8]  }
  0x10   : > { %s3941_s26 = scalar_select %p3585_p8, 1, 0 }
  0x11   : > { %p2873_p9 = pneg %p3585_p8  ;;  %s190_s6 = sshll.u32 %s3505_s30, 4  ;;  %s191_s6 = int_to_ptr.vmem [resolvable:$true] %s190_s6 }
  0x12   : > { %s200_s8 = sshll.u32 %s3506_s7, 4  ;;  %s3335_s9 = scalar_lea.vmem %s177_s28, 16384  ;;  %s201_s8 = int_to_ptr.vmem [resolvable:$true] %s200_s8 }
  0x13   : > { %p3593_p10 = pnand %p2873_p9, %p3935_p1  ;;  %p3336_p12 = scmp.ne.s32.totalorder %s177_s28, %s3335_s9 }
  0x14   : > { %p3343_p3 = scmp.lt.s32.totalorder %s177_s28, %s177_s28  ;;  %p3344_p5 = scmp.lt.s32.totalorder %s3335_s9, %s3335_s9 }
  0x15   : > { %p3326_p11 = pneg %p3593_p10 }
  0x16   : > { %p3345_p7 = por %p3344_p5, %p3343_p3 }
  0x17   : > { %p3338_p13 = pnand %p3336_p12, %p3326_p11 }
  0x19   : > { %p3339_p0 = pneg %p3338_p13 }
  0x1b   : > { %p3346_p9 = pnand %p3345_p7, %p3339_p0 }
  0x1d   : > { %3349 = shalt.err (!%p3346_p9)
}
  0x1e   : > { %s3507_s10 = smov 256   ;;  %s3508_s11 = smov 16  }
  0x1f   : > { %2876 = dma.hbm_to_vmem [thread:$0]  (!%p3593_p10), %s3930_s1, 16384, %s177_s28, [#allocation6], %s3507_s10, %s3507_s10, %s3508_s11  }
  0x20   : > { %s3361_s14 = scalar_lea.vmem %s191_s6, 64  ;;  %p3369_p2 = scmp.lt.s32.totalorder %s191_s6, %s191_s6 }
  0x21   : > { %p3362_p1 = scmp.ne.s32.totalorder %s191_s6, %s3361_s14  ;;  %p3370_p6 = scmp.lt.s32.totalorder %s3361_s14, %s3361_s14 }
  0x23   : > { %p3364_p12 = pnand %p3362_p1, %p3326_p11  ;;  %p3371_p3 = por %p3370_p6, %p3369_p2 }
  0x25   : > { %p3365_p13 = pneg %p3364_p12 }
  0x27   : > { %p3372_p0 = pnand %p3371_p3, %p3365_p13 }
  0x29   : > { %3375 = shalt.err (!%p3372_p0)
}
  0x2a   : > { %2879 = dma.hbm_to_vmem [thread:$0]  (!%p3593_p10), %s3931_s2, 64, %s191_s6, [#allocation6]  }
  0x2b   : > { %s3387_s17 = scalar_lea.vmem %s201_s8, 16384  ;;  %p3395_p9 = scmp.lt.s32.totalorder %s201_s8, %s201_s8 }
  0x2c   : > { %p3388_p5 = scmp.ne.s32.totalorder %s201_s8, %s3387_s17  ;;  %p3396_p12 = scmp.lt.s32.totalorder %s3387_s17, %s3387_s17 }
  0x2e   : > { %p3390_p7 = pnand %p3388_p5, %p3326_p11  ;;  %p3397_p4 = por %p3396_p12, %p3395_p9 }
  0x30   : > { %p3391_p1 = pneg %p3390_p7 }
  0x32   : > { %p3398_p2 = pnand %p3397_p4, %p3391_p1 }
  0x34   : > { %3401 = shalt.err (!%p3398_p2)
}
  0x35   : > { %2882 = dma.hbm_to_vmem [thread:$0]  (!%p3593_p10), %s3932_s3, 16384, %s201_s8, [#allocation9], %s3507_s10, %s3507_s10, %s3508_s11  }
  0x36   : > { %s3624_s28 = sadd.s32 1, %s3502_s21   ;;  %s30_s29 = sadd.s32 1, %s3498_s20 }
  0x37   : > { %s27_s30 = ssub.s32 %s3502_s21, %s3624_s28  ;;  %p37_p6 = scmp.ne.s32.totalorder %s3498_s20, %s3494_s19 }
  0x38   : > { %p28_p4 = scmp.eq.s32.totalorder %s27_s30, 0  ;;  %p38_p11 = scmp.eq.s32.totalorder %s3502_s21, 0 }
  0x39   : > { %p2894_p13 = scmp.lt.s32.totalorder %s3502_s21, 5  ;;  %p3943_p0 = scmp.eq.s32.totalorder %s3566_s22, 4 }
  0x3a   : > { %s3634_s6 = scalar_select %p28_p4, %s3498_s20, %s30_s29  }
  0x3b   : > { %p39_p3 = por %p38_p11, %p37_p6  ;;  %p3638_p5 = por %p3943_p0, %p37_p6 }
  0x3c   : > { %s217_s9 = sand.u32 1, %s3498_s20   ;;  %s2853_s12 = smul.u32 2560, %s3502_s21 }
  0x3d   : > { %s3944_s7 = scalar_select %p3638_p5, 1, 0 }
  0x3e   : > { %s2855_s8 = smul.u32 160, %s217_s9  ;;  %s3647_s13 = scalar_lea.hbm %s3929_s0, %s2853_s12 }
  0x3f   : > { %p3649_p10 = pnand %p2894_p13, %p39_p3  ;;  %s3655_s17 = scalar_lea.sflag [#allocation3], %s217_s9 }
  0x40   : > { %s221_s15 = scalar_lea.vmem [#allocation2], %s2855_s8  ;;  %s3402_s23 = scalar_lea.hbm %s3647_s13, 2560 }
  0x41   : > { %s229_s16 = sshll.u32 %s221_s15, 4  ;;  %p3403_p7 = scmp.ne.s32.totalorder %s3647_s13, %s3402_s23  ;;  %s3653_s16 = int_to_ptr.vmem [resolvable:$true] %s229_s16 }
  0x42   : > { %p3404_p1 = pneg %p3649_p10  ;;  %s3407_s29 = scalar_lea.hbm %s3929_s0, 12800 }
  0x43   : > { %p3408_p2 = scmp.lt.s32.totalorder %s3647_s13, %s3929_s0  ;;  %p3409_p4 = scmp.lt.s32.totalorder %s3407_s29, %s3402_s23 }
  0x44   : > { %p3405_p9 = pnand %p3404_p1, %p3403_p7 }
  0x45   : > { %p3410_p6 = por %p3409_p4, %p3408_p2 }
  0x46   : > { %p3406_p12 = pneg %p3405_p9 }
  0x48   : > { %p3411_p11 = pnand %p3410_p6, %p3406_p12 }
  0x4a   : > { %3414 = shalt.err (!%p3411_p11)
}
  0x4b   : > { %s3415_s9 = scalar_lea.vmem %s3653_s16, 2560  ;;  %s3509_s8 = smov [#allocation2]  }
  0x4c   : > { %p3416_p13 = scmp.ne.s32.totalorder %s3653_s16, %s3415_s9  ;;  %s3420_s11 = sshll.u32 %s3509_s8, 4  ;;  %s3421_s11 = int_to_ptr.vmem [resolvable:$false] %s3420_s11 }
  0x4d   : > { %s3422_s15 = scalar_lea.vmem %s3421_s11, 5120  ;;  %p3423_p7 = scmp.lt.s32.totalorder %s3653_s16, %s3421_s11 }
  0x4e   : > { %p3418_p3 = pnand %p3416_p13, %p3404_p1  ;;  %p3424_p9 = scmp.lt.s32.totalorder %s3422_s15, %s3415_s9 }
  0x50   : > { %p3419_p0 = pneg %p3418_p3  ;;  %p3425_p5 = por %p3424_p9, %p3423_p7 }
  0x52   : > { %p3426_p8 = pnand %p3425_p5, %p3419_p0 }
  0x54   : > { %3429 = shalt.err (!%p3426_p8)
}
  0x55   : > { %s3510_s23 = smov 512   ;;  %s3511_s27 = smov 32  }
  0x56   : > { %2886 = dma.hbm_to_vmem [thread:$0]  (!%p3649_p10), %s3647_s13, 2560, %s3653_s16, %s3655_s17, %s3510_s23, %s3510_s23, %s3511_s27  }
  0x57   : > { %p3946_p1 = scmp.ne.s32.totalorder %s3941_s26, 0 }
  0x58   : > { %s3679_s30 = sand.u32 (!%p3946_p1), 1, %s3494_s19   ;;  %p3947_p8 = scmp.ne.s32.totalorder (!%p3946_p1), %s3939_s24, 0 }
  0x59   : > { %241 = sbr.rel (%p3946_p1) target bundleno = 731 (0x2db), region = 40  ;;  %s244_s12 = scalar_lea.sflag (!%p3946_p1), [#allocation3], %s3679_s30 }
  0x5a   : > { %s2856_s29 = smul.u32 (!%p3946_p1), 160, %s3679_s30 }
  0x5c   : > { %s3685_s10 = scalar_lea.vmem (!%p3946_p1), [#allocation2], %s2856_s29 }
  0x5e   : > { %3473 = dma.done.wait (%p3947_p8), %s244_s12, 2560  }
  0x5f   : > { %3475 = vsyncadd (%p3947_p8), %s244_s12, 4294964736  ;;  %p3948_p5 = scmp.eq.s32.totalorder %s3566_s22, 0 }
  0x61   : > { %3477 = dma.done.wait (%p3948_p5), [#allocation6], 16448   ;;  %p3949_p10 = pmov %p3948_p5 }
  0x62   : > { %p3950_p12 = pmov %p3948_p5 }
  0x63   : > { %3479 = vsyncadd (%p3949_p10), [#allocation6], 4294950848 }
  0x64   : > { %3481 = dma.done.wait (%p3950_p12), [#allocation9], 16384   ;;  %p3951_p2 = pmov %p3948_p5 }
  0x65   : > { %v2940_v0 = vld [vmem:[#allocation5 + $0xe4] ss:$16 sps:$4 sm:$0xff]   ;;  %v2944_v2 = vld [vmem:[#allocation5 + $0xe0] ss:$16 sps:$4 sm:$0xff]   ;;  %v289_v46 = vld [vmem:[%s3685_s10 + $0x8] sm:$0xff]  ;;  %s3850_s13 = scalar_lea.vmem [#allocation10], %s2856_s29 }
  0x66   : > { %3483 = vsyncadd (%p3951_p2), [#allocation9], 4294950912  ;;  %v2942_v1 = vld [vmem:[#allocation5 + $0x2e4] ss:$16 sps:$4 sm:$0xff]   ;;  %1110 = vmatprep.subr.bf16.mxu0 %v2940_v0  ;;  %v2945_v3 = vld [vmem:[#allocation5 + $0x2e0] ss:$16 sps:$4 sm:$0xff]  }
  0x67   : > { %1171 = vmatprep.subr.bf16.mxu1 %v2942_v1  ;;  %v2946_v4 = vld [vmem:[#allocation5 + $0xc4] ss:$16 sps:$4 sm:$0xff]   ;;  %1111 = vmatpush1.bf16.msra.mxu0 %v2944_v2  ;;  %v2950_v6 = vld [vmem:[#allocation5 + $0xc0] ss:$16 sps:$4 sm:$0xff]   ;;  %v293_v47 = vld [vmem:[%s3685_s10 + $0x28] sm:$0xff]  ;;  %s2854_s14 = smul.u32 2560, %s3566_s22 }
  0x68   : > { %1172 = vmatpush1.bf16.msra.mxu1 %v2945_v3  ;;  %v2948_v5 = vld [vmem:[#allocation5 + $0x2c4] ss:$16 sps:$4 sm:$0xff]   ;;  %1112 = vmatprep.subr.bf16.mxu0 %v2946_v4  ;;  %v2951_v7 = vld [vmem:[#allocation5 + $0x2c0] ss:$16 sps:$4 sm:$0xff]   ;;  %v291_v48 = vld [vmem:[%s3685_s10 + $0x18] sm:$0xff]  ;;  %v3703_v53 = vpack.c.bf16 %v293_v47, %v289_v46  ;;  %s2475_s16 = sshll.u32 %s3850_s13, 4  ;;  %s3885_s16 = int_to_ptr.vmem [resolvable:$true] %s2475_s16 }
  0x69   : > { %1173 = vmatprep.subr.bf16.mxu1 %v2948_v5  ;;  %v2952_v8 = vld [vmem:[#allocation5 + $0xa4] ss:$16 sps:$4 sm:$0xff]   ;;  %v2956_v10 = vld [vmem:[#allocation5 + $0xa0] ss:$16 sps:$4 sm:$0xff]   ;;  %v295_v49 = vld [vmem:[%s3685_s10 + $0x38] sm:$0xff]  ;;  %s3883_s8 = scalar_lea.hbm %s3934_s5, %s2854_s14  ;;  %s2461_s22 = scalar_lea.sflag [#allocation4], %s3679_s30 }
  0x6a   : > { %v2954_v9 = vld [vmem:[#allocation5 + $0x2a4] ss:$16 sps:$4 sm:$0xff]   ;;  %v2957_v11 = vld [vmem:[#allocation5 + $0x2a0] ss:$16 sps:$4 sm:$0xff]   ;;  %v3705_v54 = vpack.c.bf16 %v295_v49, %v291_v48  ;;  %1142 = vmatprep.mubr.bf16.mxu0 %v3703_v53  ;;  %v3065_v47 = vld [vmem:[#allocation5 + $0x26c] ss:$16 sps:$4 sm:$0xff]  }
  0x6b   : > { %1113 = vmatpush1.bf16.msra.mxu0 %v2950_v6  ;;  %v2958_v12 = vld [vmem:[#allocation5 + $0x84] ss:$16 sps:$4 sm:$0xff]   ;;  %v2962_v14 = vld [vmem:[#allocation5 + $0x80] ss:$16 sps:$4 sm:$0xff]   ;;  %v3060_v48 = vld [vmem:[#allocation5 + $0x68] ss:$16 sps:$4 sm:$0xff]  }
  0x6c   : > { %1174 = vmatpush1.bf16.msra.mxu1 %v2951_v7  ;;  %1114 = vmatprep.subr.bf16.mxu0 %v2952_v8  ;;  %v2960_v13 = vld [vmem:[#allocation5 + $0x284] ss:$16 sps:$4 sm:$0xff]   ;;  %v2963_v15 = vld [vmem:[#allocation5 + $0x280] ss:$16 sps:$4 sm:$0xff]   ;;  %v3063_v49 = vld [vmem:[#allocation5 + $0x268] ss:$16 sps:$4 sm:$0xff]  }
  0x6d   : > { %1175 = vmatprep.subr.bf16.mxu1 %v2954_v9  ;;  %v2964_v16 = vld [vmem:[#allocation5 + $0x64] ss:$16 sps:$4 sm:$0xff]   ;;  %v2968_v18 = vld [vmem:[#allocation5 + $0x60] ss:$16 sps:$4 sm:$0xff]   ;;  %1203 = vmatprep.mubr.bf16.mxu1 %v3705_v54  ;;  %s3430_s11 = scalar_lea.vmem %s3885_s16, 2560  ;;  %p3952_p6 = scmp.ne.s32.totalorder %s3944_s7, 0 }
  0x6e   : > { %v2966_v17 = vld [vmem:[#allocation5 + $0x264] ss:$16 sps:$4 sm:$0xff]   ;;  %v2969_v19 = vld [vmem:[#allocation5 + $0x260] ss:$16 sps:$4 sm:$0xff]   ;;  %p3431_p4 = scmp.ne.s32.totalorder %s3885_s16, %s3430_s11  ;;  %s3512_s15 = smov [#allocation10]  }
  0x6f   : > { %1115 = vmatpush1.bf16.msra.mxu0 %v2956_v10  ;;  %v2970_v20 = vld [vmem:[#allocation5 + $0x44] ss:$16 sps:$4 sm:$0xff]   ;;  %v2974_v22 = vld [vmem:[#allocation5 + $0x40] ss:$16 sps:$4 sm:$0xff]   ;;  %v3038_v10 = vld [vmem:[#allocation5 + $0xec] ss:$16 sps:$4 sm:$0xff]  }
  0x70   : > { %1176 = vmatpush1.bf16.msra.mxu1 %v2957_v11  ;;  %1116 = vmatprep.subr.bf16.mxu0 %v2958_v12  ;;  %v2972_v21 = vld [vmem:[#allocation5 + $0x244] ss:$16 sps:$4 sm:$0xff]   ;;  %v2975_v23 = vld [vmem:[#allocation5 + $0x240] ss:$16 sps:$4 sm:$0xff]   ;;  %v3041_v11 = vld [vmem:[#allocation5 + $0x2ec] ss:$16 sps:$4 sm:$0xff]   ;;  %p3432_p11 = pnand %p3431_p4, %p3952_p6 }
  0x71   : > { %1177 = vmatprep.subr.bf16.mxu1 %v2960_v13  ;;  %v2976_v24 = vld [vmem:[#allocation5 + $0x24] ss:$16 sps:$4 sm:$0xff]   ;;  %v2980_v26 = vld [vmem:[#allocation5 + $0x20] ss:$16 sps:$4 sm:$0xff]   ;;  %v297_v12 = vld [vmem:[%s3685_s10 + $0x48] sm:$0xff]  ;;  %s3434_s23 = sshll.u32 %s3512_s15, 4  ;;  %s3435_s23 = int_to_ptr.vmem [resolvable:$false] %s3434_s23 }
  0x72   : > { %v2978_v25 = vld [vmem:[#allocation5 + $0x224] ss:$16 sps:$4 sm:$0xff]   ;;  %v2981_v27 = vld [vmem:[#allocation5 + $0x220] ss:$16 sps:$4 sm:$0xff]   ;;  %v301_v13 = vld [vmem:[%s3685_s10 + $0x68] sm:$0xff]  ;;  %p3433_p13 = pneg %p3432_p11  ;;  %s3436_s27 = scalar_lea.vmem %s3435_s23, 5120 }
  0x73   : > { %1117 = vmatpush1.bf16.msra.mxu0 %v2962_v14  ;;  %v2982_v28 = vld [vmem:[#allocation5 + $0x4] ss:$16 sps:$4 sm:$0xff]   ;;  %v2986_v30 = vld [vmem:[#allocation5] ss:$16 sps:$4 sm:$0xff]   ;;  %v299_v14 = vld [vmem:[%s3685_s10 + $0x58] sm:$0xff]  ;;  %p3437_p3 = scmp.lt.s32.totalorder %s3885_s16, %s3435_s23  ;;  %p3438_p0 = scmp.lt.s32.totalorder %s3436_s27, %s3430_s11 }
  0x74   : > { %1178 = vmatpush1.bf16.msra.mxu1 %v2963_v15  ;;  %1118 = vmatprep.subr.bf16.mxu0 %v2964_v16  ;;  %v2984_v29 = vld [vmem:[#allocation5 + $0x204] ss:$16 sps:$4 sm:$0xff]   ;;  %v2987_v31 = vld [vmem:[#allocation5 + $0x200] ss:$16 sps:$4 sm:$0xff]  }
  0x75   : > { %1179 = vmatprep.subr.bf16.mxu1 %v2966_v17  ;;  %v2988_v32 = vld [vmem:[#allocation5 + $0x1e4] ss:$16 sps:$4 sm:$0xff]   ;;  %v2992_v34 = vld [vmem:[#allocation5 + $0x1e0] ss:$16 sps:$4 sm:$0xff]   ;;  %v303_v17 = vld [vmem:[%s3685_s10 + $0x78] sm:$0xff]  ;;  %p3439_p7 = por %p3438_p0, %p3437_p3 }
  0x76   : > { %v2990_v33 = vld [vmem:[#allocation5 + $0x3e4] ss:$16 sps:$4 sm:$0xff]   ;;  %v2993_v35 = vld [vmem:[#allocation5 + $0x3e0] ss:$16 sps:$4 sm:$0xff]  }
  0x77   : > { %1119 = vmatpush1.bf16.msra.mxu0 %v2968_v18  ;;  %v2994_v36 = vld [vmem:[#allocation5 + $0x1c4] ss:$16 sps:$4 sm:$0xff]   ;;  %v2998_v38 = vld [vmem:[#allocation5 + $0x1c0] ss:$16 sps:$4 sm:$0xff]   ;;  %v3036_v18 = vld [vmem:[#allocation5 + $0xe8] ss:$16 sps:$4 sm:$0xff]   ;;  %p3440_p9 = pnand %p3439_p7, %p3433_p13 }
  0x78   : > { %1180 = vmatpush1.bf16.msra.mxu1 %v2969_v19  ;;  %1120 = vmatprep.subr.bf16.mxu0 %v2970_v20  ;;  %v2996_v37 = vld [vmem:[#allocation5 + $0x3c4] ss:$16 sps:$4 sm:$0xff]   ;;  %v2999_v39 = vld [vmem:[#allocation5 + $0x3c0] ss:$16 sps:$4 sm:$0xff]   ;;  %v3039_v19 = vld [vmem:[#allocation5 + $0x2e8] ss:$16 sps:$4 sm:$0xff]  }
  0x79   : > { %1181 = vmatprep.subr.bf16.mxu1 %v2972_v21  ;;  %v3000_v40 = vld [vmem:[#allocation5 + $0x1a4] ss:$16 sps:$4 sm:$0xff]   ;;  %v3004_v42 = vld [vmem:[#allocation5 + $0x1a0] ss:$16 sps:$4 sm:$0xff]   ;;  %v3044_v20 = vld [vmem:[#allocation5 + $0xcc] ss:$16 sps:$4 sm:$0xff]  }
  0x7a   : > { %v3002_v41 = vld [vmem:[#allocation5 + $0x3a4] ss:$16 sps:$4 sm:$0xff]   ;;  %v3005_v43 = vld [vmem:[#allocation5 + $0x3a0] ss:$16 sps:$4 sm:$0xff]   ;;  %v3047_v21 = vld [vmem:[#allocation5 + $0x2cc] ss:$16 sps:$4 sm:$0xff]  }
  0x7b   : > { %1121 = vmatpush1.bf16.msra.mxu0 %v2974_v22  ;;  %v3006_v44 = vld [vmem:[#allocation5 + $0x184] ss:$16 sps:$4 sm:$0xff]   ;;  %v3010_v50 = vld [vmem:[#allocation5 + $0x180] ss:$16 sps:$4 sm:$0xff]   ;;  %v3042_v22 = vld [vmem:[#allocation5 + $0xc8] ss:$16 sps:$4 sm:$0xff]  }
  0x7c   : > { %1182 = vmatpush1.bf16.msra.mxu1 %v2975_v23  ;;  %1122 = vmatprep.subr.bf16.mxu0 %v2976_v24  ;;  %v3008_v45 = vld [vmem:[#allocation5 + $0x384] ss:$16 sps:$4 sm:$0xff]   ;;  %v3011_v51 = vld [vmem:[#allocation5 + $0x380] ss:$16 sps:$4 sm:$0xff]   ;;  %v3045_v23 = vld [vmem:[#allocation5 + $0x2c8] ss:$16 sps:$4 sm:$0xff]   ;;  %v3721_v24 = vpack.c.bf16 %v301_v13, %v297_v12 }
  0x7d   : > { %1183 = vmatprep.subr.bf16.mxu1 %v2978_v25  ;;  %v3012_v52 = vld [vmem:[#allocation5 + $0x164] ss:$16 sps:$4 sm:$0xff]   ;;  %v3016_v56 = vld [vmem:[#allocation5 + $0x160] ss:$16 sps:$4 sm:$0xff]   ;;  %v3104_v12 = vld [vmem:[#allocation5 + $0x18c] ss:$16 sps:$4 sm:$0xff]  }
  0x7e   : > { %v3014_v55 = vld [vmem:[#allocation5 + $0x364] ss:$16 sps:$4 sm:$0xff]   ;;  %v3017_v57 = vld [vmem:[#allocation5 + $0x360] ss:$16 sps:$4 sm:$0xff]   ;;  %v3107_v13 = vld [vmem:[#allocation5 + $0x38c] ss:$16 sps:$4 sm:$0xff]  }
  0x7f   : > { %1123 = vmatpush1.bf16.msra.mxu0 %v2980_v26  ;;  %v3018_v58 = vld [vmem:[#allocation5 + $0x144] ss:$16 sps:$4 sm:$0xff]   ;;  %v3022_v60 = vld [vmem:[#allocation5 + $0x140] ss:$16 sps:$4 sm:$0xff]  }
  0x80   : > { %1184 = vmatpush1.bf16.msra.mxu1 %v2981_v27  ;;  %1124 = vmatprep.subr.bf16.mxu0 %v2982_v28  ;;  %v3020_v59 = vld [vmem:[#allocation5 + $0x344] ss:$16 sps:$4 sm:$0xff]   ;;  %v3023_v61 = vld [vmem:[#allocation5 + $0x340] ss:$16 sps:$4 sm:$0xff]   ;;  %v3725_v27 = vpack.c.bf16 %v303_v17, %v299_v14  ;;  %v3050_v28 = vld [vmem:[#allocation5 + $0xac] ss:$16 sps:$4 sm:$0xff]  }
  0x81   : > { %1185 = vmatprep.subr.bf16.mxu1 %v2984_v29  ;;  %v3024_v62 = vld [vmem:[#allocation5 + $0x124] ss:$16 sps:$4 sm:$0xff]   ;;  %v3028_v0 = vld [vmem:[#allocation5 + $0x120] ss:$16 sps:$4 sm:$0xff]   ;;  %v3102_v14 = vld [vmem:[#allocation5 + $0x188] ss:$16 sps:$4 sm:$0xff]  }
  0x82   : > { %v3026_v63 = vld [vmem:[#allocation5 + $0x324] ss:$16 sps:$4 sm:$0xff]   ;;  %v3029_v1 = vld [vmem:[#allocation5 + $0x320] ss:$16 sps:$4 sm:$0xff]   ;;  %v3105_v17 = vld [vmem:[#allocation5 + $0x388] ss:$16 sps:$4 sm:$0xff]  }
  0x83   : > { %1125 = vmatpush1.bf16.msra.mxu0 %v2986_v30  ;;  %v3030_v2 = vld [vmem:[#allocation5 + $0x104] ss:$16 sps:$4 sm:$0xff]   ;;  %v3034_v4 = vld [vmem:[#allocation5 + $0x100] ss:$16 sps:$4 sm:$0xff]  }
  0x84   : > { %1186 = vmatpush1.bf16.msra.mxu1 %v2987_v31  ;;  %1126 = vmatprep.subr.bf16.mxu0 %v2988_v32  ;;  %v3032_v3 = vld [vmem:[#allocation5 + $0x304] ss:$16 sps:$4 sm:$0xff]   ;;  %v3035_v5 = vld [vmem:[#allocation5 + $0x300] ss:$16 sps:$4 sm:$0xff]   ;;  %v3053_v31 = vld [vmem:[#allocation5 + $0x2ac] ss:$16 sps:$4 sm:$0xff]  }
  0x85   : > { %1187 = vmatprep.subr.bf16.mxu1 %v2990_v33  ;;  %v288_v6 = vld [vmem:[%s3685_s10] sm:$0xff]  ;;  %v290_v8 = vld [vmem:[%s3685_s10 + $0x10] sm:$0xff]  ;;  %v3048_v32 = vld [vmem:[#allocation5 + $0xa8] ss:$16 sps:$4 sm:$0xff]  }
  0x86   : > { %v292_v7 = vld [vmem:[%s3685_s10 + $0x20] sm:$0xff]  ;;  %v294_v9 = vld [vmem:[%s3685_s10 + $0x30] sm:$0xff]  ;;  %v3051_v33 = vld [vmem:[#allocation5 + $0x2a8] ss:$16 sps:$4 sm:$0xff]  }
  0x87   : > { %1127 = vmatpush2.bf16.msra.mxu0 %v2992_v34  ;;  %v3716_v15 = vpack.c.bf16 %v292_v7, %v288_v6  ;;  %v3718_v16 = vpack.c.bf16 %v294_v9, %v290_v8  ;;  %v296_v25 = vld [vmem:[%s3685_s10 + $0x40] sm:$0xff]  ;;  %v298_v29 = vld [vmem:[%s3685_s10 + $0x50] sm:$0xff]  ;;  %v3090_v6 = vld [vmem:[#allocation5 + $0x1c8] ss:$16 sps:$4 sm:$0xff]  }
  0x88   : > { %1188 = vmatpush2.bf16.msra.mxu1 %v2993_v35  ;;  %1128 = vmatprep.subr.bf16.mxu0 %v2994_v36  ;;  %v300_v26 = vld [vmem:[%s3685_s10 + $0x60] sm:$0xff]  ;;  %v302_v30 = vld [vmem:[%s3685_s10 + $0x70] sm:$0xff]  ;;  %v305_v36 = vld [vmem:[%s3685_s10 + $0x88] sm:$0xff] }
  0x89   : > { %1189 = vmatprep.subr.bf16.mxu1 %v2996_v37  ;;  %v3733_v34 = vpack.c.bf16 %v300_v26, %v296_v25  ;;  %v3735_v35 = vpack.c.bf16 %v302_v30, %v298_v29  ;;  %v307_v37 = vld [vmem:[%s3685_s10 + $0x98] sm:$0xff]  ;;  %v306_v46 = vld [vmem:[%s3685_s10 + $0x90] sm:$0xff] }
  0x8a   : > { %v3093_v7 = vld [vmem:[#allocation5 + $0x3c8] ss:$16 sps:$4 sm:$0xff]   ;;  %v3098_v8 = vld [vmem:[#allocation5 + $0x1ac] ss:$16 sps:$4 sm:$0xff]  }
  0x8b   : > { %1129 = vmatpush2.bf16.msra.mxu0 %v2998_v38  ;;  %v3056_v38 = vld [vmem:[#allocation5 + $0x8c] ss:$16 sps:$4 sm:$0xff]   ;;  %v3114_v25 = vld [vmem:[#allocation5 + $0x148] ss:$16 sps:$4 sm:$0xff]  }
  0x8c   : > { %1190 = vmatpush2.bf16.msra.mxu1 %v2999_v39  ;;  %1130 = vmatprep.subr.bf16.mxu0 %v3000_v40  ;;  %v3059_v39 = vld [vmem:[#allocation5 + $0x28c] ss:$16 sps:$4 sm:$0xff]   ;;  %v3054_v40 = vld [vmem:[#allocation5 + $0x88] ss:$16 sps:$4 sm:$0xff]  }
  0x8d   : > { %1191 = vmatprep.subr.bf16.mxu1 %v3002_v41  ;;  %v3057_v41 = vld [vmem:[#allocation5 + $0x288] ss:$16 sps:$4 sm:$0xff]   ;;  %v3101_v9 = vld [vmem:[#allocation5 + $0x3ac] ss:$16 sps:$4 sm:$0xff]  }
  0x8e   : > { %v3117_v26 = vld [vmem:[#allocation5 + $0x348] ss:$16 sps:$4 sm:$0xff]   ;;  %v3125_v29 = vld [vmem:[#allocation5 + $0x32c] ss:$16 sps:$4 sm:$0xff]  }
  0x8f   : > { %1131 = vmatpush2.bf16.msra.mxu0 %v3004_v42  ;;  %v3739_v42 = vpack.c.bf16 %v305_v36, %v305_v36  ;;  %v3120_v30 = vld [vmem:[#allocation5 + $0x128] ss:$16 sps:$4 sm:$0xff]  }
  0x90   : > { %1192 = vmatpush2.bf16.msra.mxu1 %v3005_v43  ;;  %1132 = vmatprep.subr.bf16.mxu0 %v3006_v44  ;;  %v3741_v43 = vpack.c.bf16 %v307_v37, %v307_v37  ;;  %v3062_v44 = vld [vmem:[#allocation5 + $0x6c] ss:$16 sps:$4 sm:$0xff]   ;;  %v3126_v36 = vld [vmem:[#allocation5 + $0x108] ss:$16 sps:$4 sm:$0xff]  }
  0x91   : > { %1193 = vmatprep.subr.bf16.mxu1 %v3008_v45  ;;  %v304_v45 = vld [vmem:[%s3685_s10 + $0x80] sm:$0xff]  ;;  %v3129_v37 = vld [vmem:[#allocation5 + $0x308] ss:$16 sps:$4 sm:$0xff]  }
  0x93   : > { %1133 = vmatpush2.bf16.msra.mxu0 %v3010_v50  ;;  %v3749_v50 = vpack.c.bf16 %v304_v45, %v304_v45  ;;  %v3138_v45 = vld [vmem:[#allocation8 + $0xa0] ss:$16 sps:$4 sm:$0xff]  }
  0x94   : > { %1194 = vmatpush2.bf16.msra.mxu1 %v3011_v51  ;;  %1134 = vmatprep.subr.bf16.mxu0 %v3012_v52  ;;  %v3751_v51 = vpack.c.bf16 %v306_v46, %v306_v46  ;;  %v3068_v52 = vld [vmem:[#allocation5 + $0x4c] ss:$16 sps:$4 sm:$0xff]   ;;  %v3143_v46 = vld [vmem:[#allocation8 + $0x84] ss:$16 sps:$4 sm:$0xff]  }
  0x95   : > { %1195 = vmatprep.subr.bf16.mxu1 %v3014_v55  ;;  %v3071_v55 = vld [vmem:[#allocation5 + $0x24c] ss:$16 sps:$4 sm:$0xff]  }
  0x97   : > { %1135 = vmatpush2.bf16.msra.mxu0 %v3016_v56  ;;  %v3066_v56 = vld [vmem:[#allocation5 + $0x48] ss:$16 sps:$4 sm:$0xff]  }
  0x98   : > { %1196 = vmatpush2.bf16.msra.mxu1 %v3017_v57  ;;  %1136 = vmatprep.subr.bf16.mxu0 %v3018_v58  ;;  %v3069_v57 = vld [vmem:[#allocation5 + $0x248] ss:$16 sps:$4 sm:$0xff]   ;;  %v3074_v58 = vld [vmem:[#allocation5 + $0x2c] ss:$16 sps:$4 sm:$0xff]  }
  0x99   : > { %1197 = vmatprep.subr.bf16.mxu1 %v3020_v59  ;;  %v3077_v59 = vld [vmem:[#allocation5 + $0x22c] ss:$16 sps:$4 sm:$0xff]  }
  0x9b   : > { %1137 = vmatpush2.bf16.msra.mxu0 %v3022_v60  ;;  %v3072_v60 = vld [vmem:[#allocation5 + $0x28] ss:$16 sps:$4 sm:$0xff]  }
  0x9c   : > { %1198 = vmatpush2.bf16.msra.mxu1 %v3023_v61  ;;  %1138 = vmatprep.subr.bf16.mxu0 %v3024_v62  ;;  %v3075_v61 = vld [vmem:[#allocation5 + $0x228] ss:$16 sps:$4 sm:$0xff]   ;;  %v3080_v62 = vld [vmem:[#allocation5 + $0xc] ss:$16 sps:$4 sm:$0xff]  }
  0x9d   : > { %1199 = vmatprep.subr.bf16.mxu1 %v3026_v63  ;;  %v3083_v63 = vld [vmem:[#allocation5 + $0x20c] ss:$16 sps:$4 sm:$0xff]  }
  0x9f   : > { %1139 = vmatpush2.bf16.msra.mxu0 %v3028_v0  ;;  %v3078_v0 = vld [vmem:[#allocation5 + $0x8] ss:$16 sps:$4 sm:$0xff]  }
  0xa0   : > { %1200 = vmatpush2.bf16.msra.mxu1 %v3029_v1  ;;  %1140 = vmatprep.subr.bf16.mxu0 %v3030_v2  ;;  %v3081_v1 = vld [vmem:[#allocation5 + $0x208] ss:$16 sps:$4 sm:$0xff]   ;;  %v3086_v2 = vld [vmem:[#allocation5 + $0x1ec] ss:$16 sps:$4 sm:$0xff]  }
  0xa1   : > { %1201 = vmatprep.subr.bf16.mxu1 %v3032_v3  ;;  %v3089_v3 = vld [vmem:[#allocation5 + $0x3ec] ss:$16 sps:$4 sm:$0xff]  }
  0xa3   : > { %1141 = vmatpush2.bf16.msra.mxu0 %v3034_v4  ;;  %v3084_v4 = vld [vmem:[#allocation5 + $0x1e8] ss:$16 sps:$4 sm:$0xff]  }
  0xa4   : > { %1202 = vmatpush2.bf16.msra.mxu1 %v3035_v5  ;;  %1232 = vmatprep.subr.bf16.mxu0 %v3038_v10  ;;  %v3095_v5 = vld [vmem:[#allocation5 + $0x3cc] ss:$16 sps:$4 sm:$0xff]   ;;  %v3096_v10 = vld [vmem:[#allocation5 + $0x1a8] ss:$16 sps:$4 sm:$0xff]  }
  0xa5   : > { %1293 = vmatprep.subr.bf16.mxu1 %v3041_v11  ;;  %v3099_v11 = vld [vmem:[#allocation5 + $0x3a8] ss:$16 sps:$4 sm:$0xff]  }
  0xa6   : > { %1143 = vmatmul.mubr.bf16.vlgmr.msra.gmra.mxu0 %v3716_v15 }
  0xa7   : > { %1204 = vmatmul.mubr.bf16.vlgmr.msra.gmra.mxu1 %v3718_v16  ;;  %1233 = vmatpush1.bf16.msra.mxu0 %v3036_v18  ;;  %v3110_v18 = vld [vmem:[#allocation5 + $0x16c] ss:$16 sps:$4 sm:$0xff]  }
  0xa8   : > { %1294 = vmatpush1.bf16.msra.mxu1 %v3039_v19  ;;  %1234 = vmatprep.subr.bf16.mxu0 %v3044_v20  ;;  %v3113_v19 = vld [vmem:[#allocation5 + $0x36c] ss:$16 sps:$4 sm:$0xff]   ;;  %v3108_v20 = vld [vmem:[#allocation5 + $0x168] ss:$16 sps:$4 sm:$0xff]  }
  0xa9   : > { %1295 = vmatprep.subr.bf16.mxu1 %v3047_v21  ;;  %1152 = vmatprep.mubr.bf16.mxu0 %v3721_v24  ;;  %v3111_v21 = vld [vmem:[#allocation5 + $0x368] ss:$16 sps:$4 sm:$0xff]  }
  0xaa   : > { %1213 = vmatprep.mubr.bf16.mxu1 %v3725_v27 }
  0xab   : > { %1235 = vmatpush1.bf16.msra.mxu0 %v3042_v22  ;;  %v3116_v22 = vld [vmem:[#allocation5 + $0x14c] ss:$16 sps:$4 sm:$0xff]  }
  0xac   : > { %1296 = vmatpush1.bf16.msra.mxu1 %v3045_v23  ;;  %1236 = vmatprep.subr.bf16.mxu0 %v3050_v28  ;;  %v3119_v23 = vld [vmem:[#allocation5 + $0x34c] ss:$16 sps:$4 sm:$0xff]  }
  0xad   : > { %1297 = vmatprep.subr.bf16.mxu1 %v3053_v31  ;;  %v3122_v28 = vld [vmem:[#allocation5 + $0x12c] ss:$16 sps:$4 sm:$0xff]   ;;  %v3123_v31 = vld [vmem:[#allocation5 + $0x328] ss:$16 sps:$4 sm:$0xff]  }
  0xae   : > { %1153 = vmatmul.mubr.bf16.gmra.mxu0 %v3733_v34 }
  0xaf   : > { %1214 = vmatmul.mubr.bf16.gmra.mxu1 %v3735_v35  ;;  %1237 = vmatpush1.bf16.msra.mxu0 %v3048_v32  ;;  %v3128_v32 = vld [vmem:[#allocation5 + $0x10c] ss:$16 sps:$4 sm:$0xff]  }
  0xb0   : > { %1298 = vmatpush1.bf16.msra.mxu1 %v3051_v33  ;;  %1238 = vmatprep.subr.bf16.mxu0 %v3056_v38  ;;  %v3131_v33 = vld [vmem:[#allocation5 + $0x30c] ss:$16 sps:$4 sm:$0xff]   ;;  %v3134_v38 = vld [vmem:[#allocation8 + $0xe4] ss:$16 sps:$4 sm:$0xff]  }
  0xb1   : > { %1299 = vmatprep.subr.bf16.mxu1 %v3059_v39  ;;  %1162 = vmatprep.mubr.bf16.mxu0 %v3739_v42  ;;  %v3132_v39 = vld [vmem:[#allocation8 + $0xe0] ss:$16 sps:$4 sm:$0xff]  }
  0xb2   : > { %1223 = vmatprep.mubr.bf16.mxu1 %v3741_v43 }
  0xb3   : > { %1239 = vmatpush1.bf16.msra.mxu0 %v3054_v40  ;;  %v3137_v40 = vld [vmem:[#allocation8 + $0xc4] ss:$16 sps:$4 sm:$0xff]  }
  0xb4   : > { %1300 = vmatpush1.bf16.msra.mxu1 %v3057_v41  ;;  %1240 = vmatprep.subr.bf16.mxu0 %v3062_v44  ;;  %v3135_v41 = vld [vmem:[#allocation8 + $0xc0] ss:$16 sps:$4 sm:$0xff]   ;;  %v3140_v44 = vld [vmem:[#allocation8 + $0xa4] ss:$16 sps:$4 sm:$0xff]  }
  0xb5   : > { %1301 = vmatprep.subr.bf16.mxu1 %v3065_v47  ;;  %v3149_v47 = vld [vmem:[#allocation8 + $0x44] ss:$16 sps:$4 sm:$0xff]  }
  0xb6   : > { %1163 = vmatmul.mubr.bf16.gmra.mxu0 %v3749_v50 }
  0xb7   : > { %1224 = vmatmul.mubr.bf16.gmra.mxu1 %v3751_v51  ;;  %1241 = vmatpush1.bf16.msra.mxu0 %v3060_v48  ;;  %v3180_v48 = vld [vmem:[#allocation8 + $0x2e0] ss:$16 sps:$4 sm:$0xff]  }
  0xb8   : > { %1302 = vmatpush1.bf16.msra.mxu1 %v3063_v49  ;;  %1242 = vmatprep.subr.bf16.mxu0 %v3068_v52  ;;  %v3150_v49 = vld [vmem:[#allocation8 + $0x20] ss:$16 sps:$4 sm:$0xff]   ;;  %v3194_v52 = vld [vmem:[#allocation8 + $0x2a4] ss:$16 sps:$4 sm:$0xff]  }
  0xb9   : > { %1303 = vmatprep.subr.bf16.mxu1 %v3071_v55  ;;  %1264 = vmatprep.mubr.bf16.mxu0 %v3703_v53  ;;  %v3087_v53 = vld [vmem:[#allocation5 + $0x3e8] ss:$16 sps:$4 sm:$0xff]  }
  0xba   : > { %1325 = vmatprep.mubr.bf16.mxu1 %v3705_v54  ;;  %v3092_v54 = vld [vmem:[#allocation5 + $0x1cc] ss:$16 sps:$4 sm:$0xff]   ;;  %v3155_v55 = vld [vmem:[#allocation8 + $0x4] ss:$16 sps:$4 sm:$0xff]  }
  0xbb   : > { %1243 = vmatpush1.bf16.msra.mxu0 %v3066_v56  ;;  %v3192_v56 = vld [vmem:[#allocation8 + $0x2a0] ss:$16 sps:$4 sm:$0xff]  }
  0xbc   : > { %1304 = vmatpush1.bf16.msra.mxu1 %v3069_v57  ;;  %1244 = vmatprep.subr.bf16.mxu0 %v3074_v58  ;;  %v3200_v57 = vld [vmem:[#allocation8 + $0x284] ss:$16 sps:$4 sm:$0xff]  }
  0xbd   : > { %1305 = vmatprep.subr.bf16.mxu1 %v3077_v59  ;;  %v3158_v58 = vld [vmem:[#allocation8 + $0x1e4] ss:$16 sps:$4 sm:$0xff]   ;;  %v3204_v59 = vld [vmem:[#allocation8 + $0x260] ss:$16 sps:$4 sm:$0xff]  }
  0xbf   : > { %1245 = vmatpush1.bf16.msra.mxu0 %v3072_v60  ;;  %v3206_v60 = vld [vmem:[#allocation8 + $0x264] ss:$16 sps:$4 sm:$0xff]  }
  0xc0   : > { %1306 = vmatpush1.bf16.msra.mxu1 %v3075_v61  ;;  %1246 = vmatprep.subr.bf16.mxu0 %v3080_v62  ;;  %v3156_v61 = vld [vmem:[#allocation8 + $0x1e0] ss:$16 sps:$4 sm:$0xff]   ;;  %v3161_v62 = vld [vmem:[#allocation8 + $0x1c4] ss:$16 sps:$4 sm:$0xff]  }
  0xc1   : > { %1307 = vmatprep.subr.bf16.mxu1 %v3083_v63  ;;  %v3210_v63 = vld [vmem:[#allocation8 + $0x240] ss:$16 sps:$4 sm:$0xff]  }
  0xc3   : > { %1247 = vmatpush1.bf16.msra.mxu0 %v3078_v0  ;;  %v3212_v0 = vld [vmem:[#allocation8 + $0x244] ss:$16 sps:$4 sm:$0xff]  }
  0xc4   : > { %1308 = vmatpush1.bf16.msra.mxu1 %v3081_v1  ;;  %1248 = vmatprep.subr.bf16.mxu0 %v3086_v2  ;;  %v3159_v1 = vld [vmem:[#allocation8 + $0x1c0] ss:$16 sps:$4 sm:$0xff]   ;;  %v3164_v2 = vld [vmem:[#allocation8 + $0x1a4] ss:$16 sps:$4 sm:$0xff]  }
  0xc5   : > { %1309 = vmatprep.subr.bf16.mxu1 %v3089_v3  ;;  %v3216_v3 = vld [vmem:[#allocation8 + $0x220] ss:$16 sps:$4 sm:$0xff]  }
  0xc7   : > { %1249 = vmatpush2.bf16.msra.mxu0 %v3084_v4  ;;  %v3218_v4 = vld [vmem:[#allocation8 + $0x224] ss:$16 sps:$4 sm:$0xff]  }
  0xc8   : > { %1310 = vmatpush2.bf16.msra.mxu1 %v3087_v53  ;;  %1250 = vmatprep.subr.bf16.mxu0 %v3092_v54  ;;  %v3162_v53 = vld [vmem:[#allocation8 + $0x1a0] ss:$16 sps:$4 sm:$0xff]   ;;  %v3167_v54 = vld [vmem:[#allocation8 + $0x184] ss:$16 sps:$4 sm:$0xff]  }
  0xc9   : > { %1311 = vmatprep.subr.bf16.mxu1 %v3095_v5  ;;  %v3222_v5 = vld [vmem:[#allocation8 + $0x200] ss:$16 sps:$4 sm:$0xff]  }
  0xcb   : > { %1251 = vmatpush2.bf16.msra.mxu0 %v3090_v6  ;;  %v3224_v6 = vld [vmem:[#allocation8 + $0x204] ss:$16 sps:$4 sm:$0xff]  }
  0xcc   : > { %1312 = vmatpush2.bf16.msra.mxu1 %v3093_v7  ;;  %1252 = vmatprep.subr.bf16.mxu0 %v3098_v8  ;;  %v3165_v7 = vld [vmem:[#allocation8 + $0x180] ss:$16 sps:$4 sm:$0xff]   ;;  %v3170_v8 = vld [vmem:[#allocation8 + $0x164] ss:$16 sps:$4 sm:$0xff]  }
  0xcd   : > { %1313 = vmatprep.subr.bf16.mxu1 %v3101_v9  ;;  %v3228_v9 = vld [vmem:[#allocation8 + $0x3e0] ss:$16 sps:$4 sm:$0xff]  }
  0xcf   : > { %1253 = vmatpush2.bf16.msra.mxu0 %v3096_v10  ;;  %v3230_v10 = vld [vmem:[#allocation8 + $0x3e4] ss:$16 sps:$4 sm:$0xff]  }
  0xd0   : > { %1314 = vmatpush2.bf16.msra.mxu1 %v3099_v11  ;;  %1254 = vmatprep.subr.bf16.mxu0 %v3104_v12  ;;  %v3168_v11 = vld [vmem:[#allocation8 + $0x160] ss:$16 sps:$4 sm:$0xff]   ;;  %v3173_v12 = vld [vmem:[#allocation8 + $0x144] ss:$16 sps:$4 sm:$0xff]  }
  0xd1   : > { %1315 = vmatprep.subr.bf16.mxu1 %v3107_v13  ;;  %v3234_v13 = vld [vmem:[#allocation8 + $0x3c0] ss:$16 sps:$4 sm:$0xff]  }
  0xd3   : > { %1255 = vmatpush2.bf16.msra.mxu0 %v3102_v14  ;;  %v3236_v14 = vld [vmem:[#allocation8 + $0x3c4] ss:$16 sps:$4 sm:$0xff]  }
  0xd4   : > { %1316 = vmatpush2.bf16.msra.mxu1 %v3105_v17  ;;  %1256 = vmatprep.subr.bf16.mxu0 %v3110_v18  ;;  %v3171_v17 = vld [vmem:[#allocation8 + $0x140] ss:$16 sps:$4 sm:$0xff]   ;;  %v3176_v18 = vld [vmem:[#allocation8 + $0x124] ss:$16 sps:$4 sm:$0xff]  }
  0xd5   : > { %1317 = vmatprep.subr.bf16.mxu1 %v3113_v19  ;;  %v3240_v19 = vld [vmem:[#allocation8 + $0x3a0] ss:$16 sps:$4 sm:$0xff]  }
  0xd7   : > { %1257 = vmatpush2.bf16.msra.mxu0 %v3108_v20  ;;  %v3242_v20 = vld [vmem:[#allocation8 + $0x3a4] ss:$16 sps:$4 sm:$0xff]  }
  0xd8   : > { %1318 = vmatpush2.bf16.msra.mxu1 %v3111_v21  ;;  %1258 = vmatprep.subr.bf16.mxu0 %v3116_v22  ;;  %v3174_v21 = vld [vmem:[#allocation8 + $0x120] ss:$16 sps:$4 sm:$0xff]   ;;  %v3179_v22 = vld [vmem:[#allocation8 + $0x104] ss:$16 sps:$4 sm:$0xff]  }
  0xd9   : > { %1319 = vmatprep.subr.bf16.mxu1 %v3119_v23  ;;  %v3246_v23 = vld [vmem:[#allocation8 + $0x380] ss:$16 sps:$4 sm:$0xff]  }
  0xdb   : > { %1259 = vmatpush2.bf16.msra.mxu0 %v3114_v25  ;;  %v3248_v25 = vld [vmem:[#allocation8 + $0x384] ss:$16 sps:$4 sm:$0xff]  }
  0xdc   : > { %1320 = vmatpush2.bf16.msra.mxu1 %v3117_v26  ;;  %1260 = vmatprep.subr.bf16.mxu0 %v3122_v28  ;;  %v3177_v26 = vld [vmem:[#allocation8 + $0x100] ss:$16 sps:$4 sm:$0xff]   ;;  %v3185_v28 = vld [vmem:[#allocation8 + $0xec] ss:$16 sps:$4 sm:$0xff]  }
  0xdd   : > { %1321 = vmatprep.subr.bf16.mxu1 %v3125_v29  ;;  %v3252_v29 = vld [vmem:[#allocation8 + $0x360] ss:$16 sps:$4 sm:$0xff]  }
  0xdf   : > { %1261 = vmatpush2.bf16.msra.mxu0 %v3120_v30  ;;  %v3254_v30 = vld [vmem:[#allocation8 + $0x364] ss:$16 sps:$4 sm:$0xff]  }
  0xe0   : > { %1322 = vmatpush2.bf16.msra.mxu1 %v3123_v31  ;;  %1262 = vmatprep.subr.bf16.mxu0 %v3128_v32  ;;  %v3260_v31 = vld [vmem:[#allocation8 + $0x344] ss:$16 sps:$4 sm:$0xff]   ;;  %v3258_v32 = vld [vmem:[#allocation8 + $0x340] ss:$16 sps:$4 sm:$0xff]  }
  0xe1   : > { %1323 = vmatprep.subr.bf16.mxu1 %v3131_v33  ;;  %v3266_v33 = vld [vmem:[#allocation8 + $0x324] ss:$16 sps:$4 sm:$0xff]  }
  0xe3   : > { %1263 = vmatpush2.bf16.msra.mxu0 %v3126_v36  ;;  %v3264_v36 = vld [vmem:[#allocation8 + $0x320] ss:$16 sps:$4 sm:$0xff]  }
  0xe4   : > { %1324 = vmatpush2.bf16.msra.mxu1 %v3129_v37  ;;  %2176 = vmatprep.subr.bf16.mxu0 %v3134_v38  ;;  %v3272_v37 = vld [vmem:[#allocation8 + $0x304] ss:$16 sps:$4 sm:$0xff]   ;;  %v3270_v38 = vld [vmem:[#allocation8 + $0x300] ss:$16 sps:$4 sm:$0xff]  }
  0xe6   : > { %1265 = vmatmul.mubr.bf16.vlgmr.msra.gmra.mxu0 %v3716_v15  ;;  %v3141_v15 = vld [vmem:[#allocation8 + $0x80] ss:$16 sps:$4 sm:$0xff]  }
  0xe7   : > { %1326 = vmatmul.mubr.bf16.vlgmr.msra.gmra.mxu1 %v3718_v16  ;;  %1274 = vmatprep.mubr.bf16.mxu0 %v3721_v24  ;;  %v3146_v16 = vld [vmem:[#allocation8 + $0x64] ss:$16 sps:$4 sm:$0xff]   ;;  %v3144_v24 = vld [vmem:[#allocation8 + $0x60] ss:$16 sps:$4 sm:$0xff]  }
  0xe8   : > { %1335 = vmatprep.mubr.bf16.mxu1 %v3725_v27  ;;  %2177 = vmatpush1.bf16.msra.mxu0 %v3132_v39  ;;  %v3182_v27 = vld [vmem:[#allocation8 + $0x2e4] ss:$16 sps:$4 sm:$0xff]   ;;  %v3278_v39 = vld [vmem:[#allocation8 + $0x2ec] ss:$16 sps:$4 sm:$0xff]  }
  0xe9   : > { %2178 = vmatprep.subr.bf16.mxu0 %v3137_v40  ;;  %2237 = vmatprep.subr.bf16.mxu1 %v3182_v27  ;;  %v450_v40 = vlaneseq }
  0xea   : > { %2238 = vmatpush1.bf16.msra.mxu1 %v3180_v48 }
  0xec   : > { %2179 = vmatpush1.bf16.msra.mxu0 %v3135_v41  ;;  %v3767_v41 = vshrl.u32 %v450_v40, 7  ;;  %v3195_v40 = vld [vmem:[#allocation8 + $0xa8] ss:$16 sps:$4 sm:$0xff]  }
  0xed   : > { %2180 = vmatprep.subr.bf16.mxu0 %v3140_v44 }
  0xee   : > { %1275 = vmatmul.mubr.bf16.gmra.mxu0 %v3733_v34  ;;  %v3147_v34 = vld [vmem:[#allocation8 + $0x40] ss:$16 sps:$4 sm:$0xff]   ;;  %v456_v44 = vsub.s32 1, %v3767_v41 }
  0xef   : > { %1336 = vmatmul.mubr.bf16.gmra.mxu1 %v3735_v35  ;;  %1284 = vmatprep.mubr.bf16.mxu0 %v3739_v42  ;;  %v3188_v35 = vld [vmem:[#allocation8 + $0x2c4] ss:$16 sps:$4 sm:$0xff]  }
  0xf0   : > { %1345 = vmatprep.mubr.bf16.mxu1 %v3741_v43  ;;  %2181 = vmatpush1.bf16.msra.mxu0 %v3138_v45  ;;  %v3152_v42 = vld [vmem:[#allocation8 + $0x24] ss:$16 sps:$4 sm:$0xff]   ;;  %v3186_v43 = vld [vmem:[#allocation8 + $0x2c0] ss:$16 sps:$4 sm:$0xff]   ;;  %v3770_v45 = vld [vmem:[#allocation7] sm:$0xf] }
  0xf1   : > { %2182 = vmatprep.subr.bf16.mxu0 %v3143_v46  ;;  %2239 = vmatprep.subr.bf16.mxu1 %v3188_v35  ;;  %v452_v46 = vsub.s32 0, %v3767_v41 }
  0xf2   : > { %2240 = vmatpush1.bf16.msra.mxu1 %v3186_v43 }
  0xf3   : > { %2241 = vmatprep.subr.bf16.mxu1 %v3194_v52 }
  0xf4   : > { %2183 = vmatpush1.bf16.msra.mxu0 %v3141_v15  ;;  %v457_v15 = vrot.slane %v3770_v45, %v456_v44 }
  0xf5   : > { %2184 = vmatprep.subr.bf16.mxu0 %v3146_v16  ;;  %v453_v16 = vrot.slane %v3770_v45, %v452_v46 }
  0xf6   : > { %1285 = vmatmul.mubr.bf16.gmra.mxu0 %v3749_v50  ;;  %2242 = vmatpush1.bf16.msra.mxu1 %v3192_v56  ;;  %v3198_v50 = vld [vmem:[#allocation8 + $0x280] ss:$16 sps:$4 sm:$0xff]  }
  0xf7   : > { %1346 = vmatmul.mubr.bf16.gmra.mxu1 %v3751_v51  ;;  %v3153_v51 = vld [vmem:[#allocation8] ss:$16 sps:$4 sm:$0xff]   ;;  %2243 = vmatprep.subr.bf16.mxu1 %v3200_v57 }
  0xf8   : > { %2185 = vmatpush1.bf16.msra.mxu0 %v3144_v24 }
  0xf9   : > { %2186 = vmatprep.subr.bf16.mxu0 %v3149_v47 }
  0xfa   : > { %2244 = vmatpush1.bf16.msra.mxu1 %v3198_v50 }
  0xfb   : > { %2245 = vmatprep.subr.bf16.mxu1 %v3206_v60 }
  0xfc   : > { %2187 = vmatpush1.bf16.msra.mxu0 %v3147_v34 }
  0xfd   : > { %2188 = vmatprep.subr.bf16.mxu0 %v3152_v42 }
  0xfe   : > { %2246 = vmatpush1.bf16.msra.mxu1 %v3204_v59 }
  0xff   : > { %2247 = vmatprep.subr.bf16.mxu1 %v3212_v0 }
 0x100   : > { %2189 = vmatpush1.bf16.msra.mxu0 %v3150_v49 }
 0x101   : > { %2190 = vmatprep.subr.bf16.mxu0 %v3155_v55 }
 0x102   : > { %2248 = vmatpush1.bf16.msra.mxu1 %v3210_v63 }
 0x103   : > { %2249 = vmatprep.subr.bf16.mxu1 %v3218_v4 }
 0x104   : > { %2191 = vmatpush1.bf16.msra.mxu0 %v3153_v51 }
 0x105   : > { %2192 = vmatprep.subr.bf16.mxu0 %v3158_v58 }
 0x106   : > { %2250 = vmatpush1.bf16.msra.mxu1 %v3216_v3 }
 0x107   : > { %2251 = vmatprep.subr.bf16.mxu1 %v3224_v6 }
 0x108   : > { %2193 = vmatpush2.bf16.msra.mxu0 %v3156_v61 }
 0x109   : > { %2194 = vmatprep.subr.bf16.mxu0 %v3161_v62 }
 0x10a   : > { %2252 = vmatpush1.bf16.msra.mxu1 %v3222_v5 }
 0x10b   : > { %2253 = vmatprep.subr.bf16.mxu1 %v3230_v10 }
 0x10c   : > { %2195 = vmatpush2.bf16.msra.mxu0 %v3159_v1 }
 0x10d   : > { %2196 = vmatprep.subr.bf16.mxu0 %v3164_v2 }
 0x10e   : > { %2254 = vmatpush2.bf16.msra.mxu1 %v3228_v9  ;;  %v3183_v9 = vld [vmem:[#allocation8 + $0xe8] ss:$16 sps:$4 sm:$0xff]  }
 0x10f   : > { %2255 = vmatprep.subr.bf16.mxu1 %v3236_v14 }
 0x110   : > { %2197 = vmatpush2.bf16.msra.mxu0 %v3162_v53 }
 0x111   : > { %2198 = vmatprep.subr.bf16.mxu0 %v3167_v54 }
 0x112   : > { %2256 = vmatpush2.bf16.msra.mxu1 %v3234_v13  ;;  %v3191_v13 = vld [vmem:[#allocation8 + $0xcc] ss:$16 sps:$4 sm:$0xff]  }
 0x113   : > { %2257 = vmatprep.subr.bf16.mxu1 %v3242_v20 }
 0x114   : > { %2199 = vmatpush2.bf16.msra.mxu0 %v3165_v7 }
 0x115   : > { %2200 = vmatprep.subr.bf16.mxu0 %v3170_v8 }
 0x116   : > { %2258 = vmatpush2.bf16.msra.mxu1 %v3240_v19 }
 0x117   : > { %2259 = vmatprep.subr.bf16.mxu1 %v3248_v25  ;;  %v3189_v25 = vld [vmem:[#allocation8 + $0xc8] ss:$16 sps:$4 sm:$0xff]  }
 0x118   : > { %2201 = vmatpush2.bf16.msra.mxu0 %v3168_v11 }
 0x119   : > { %2202 = vmatprep.subr.bf16.mxu0 %v3173_v12 }
 0x11a   : > { %2260 = vmatpush2.bf16.msra.mxu1 %v3246_v23 }
 0x11b   : > { %2261 = vmatprep.subr.bf16.mxu1 %v3254_v30 }
 0x11c   : > { %2203 = vmatpush2.bf16.msra.mxu0 %v3171_v17 }
 0x11d   : > { %2204 = vmatprep.subr.bf16.mxu0 %v3176_v18 }
 0x11e   : > { %2262 = vmatpush2.bf16.msra.mxu1 %v3252_v29  ;;  %v3197_v29 = vld [vmem:[#allocation8 + $0xac] ss:$16 sps:$4 sm:$0xff]  }
 0x11f   : > { %2263 = vmatprep.subr.bf16.mxu1 %v3260_v31 }
 0x120   : > { %2205 = vmatpush2.bf16.msra.mxu0 %v3174_v21 }
 0x121   : > { %2206 = vmatprep.subr.bf16.mxu0 %v3179_v22 }
 0x122   : > { %2264 = vmatpush2.bf16.msra.mxu1 %v3258_v32 }
 0x123   : > { %2265 = vmatprep.subr.bf16.mxu1 %v3266_v33 }
 0x124   : > { %2207 = vmatpush2.bf16.msra.mxu0 %v3177_v26 }
 0x125   : > { %2298 = vmatprep.subr.bf16.mxu0 %v3185_v28 }
 0x126   : > { %2266 = vmatpush2.bf16.msra.mxu1 %v3264_v36 }
 0x127   : > { %2267 = vmatprep.subr.bf16.mxu1 %v3272_v37 }
 0x12a   : > { %2268 = vmatpush2.bf16.msra.mxu1 %v3270_v38 }
 0x12b   : > { %2359 = vmatprep.subr.bf16.mxu1 %v3278_v39 }
 0x166   : > { %v1144_v24 = vpop.f32.mrf.mxu0 }
 0x167   : > { %v1205_v27 = vpop.f32.mrf.mxu1  ;;  %v1145_v35 = vadd.f32 %v1144_v24, %v453_v16 }
 0x168   : > { %v1146_v47 = vpop.f32.mrf.mxu0 }
 0x169   : > { %v1207_v48 = vpop.f32.mrf.mxu1  ;;  %v1147_v34 = vadd.f32 %v1146_v47, %v457_v15  ;;  %v1206_v51 = vadd.f32 %v1205_v27, %v1145_v35  ;;  %v3203_v27 = vld [vmem:[#allocation8 + $0x8c] ss:$16 sps:$4 sm:$0xff]   ;;  %v3201_v35 = vld [vmem:[#allocation8 + $0x88] ss:$16 sps:$4 sm:$0xff]  }
 0x16a   : > { %v1148_v42 = vpop.f32.mrf.mxu0 }
 0x16b   : > { %v1209_v43 = vpop.f32.mrf.mxu1  ;;  %v1149_v49 = vadd.f32 %v1148_v42, %v453_v16  ;;  %v1208_v56 = vadd.f32 %v1207_v48, %v1147_v34  ;;  %v1354_v4 = vmax.f32 %v1206_v51, 0.0  ;;  %v3209_v42 = vld [vmem:[#allocation8 + $0x6c] ss:$16 sps:$4 sm:$0xff]   ;;  %v3225_v51 = vld [vmem:[#allocation8 + $0x8] ss:$16 sps:$4 sm:$0xff]  }
 0x16c   : > { %v1150_v52 = vpop.f32.mrf.mxu0 }
 0x16d   : > { %v1211_v55 = vpop.f32.mrf.mxu1  ;;  %v1210_v50 = vadd.f32 %v1209_v43, %v1149_v49  ;;  %v1151_v57 = vadd.f32 %v1150_v52, %v457_v15  ;;  %v1355_v1 = vmax.f32 %v1208_v56, 0.0  ;;  %v3207_v49 = vld [vmem:[#allocation8 + $0x68] ss:$16 sps:$4 sm:$0xff]   ;;  %v3215_v52 = vld [vmem:[#allocation8 + $0x4c] ss:$16 sps:$4 sm:$0xff]  }
 0x16e   : > { %v1154_v58 = vpop.f32.mrf.mxu0  ;;  %v3221_v56 = vld [vmem:[#allocation8 + $0x2c] ss:$16 sps:$4 sm:$0xff]  }
 0x16f   : > { %v1215_v59 = vpop.f32.mrf.mxu1  ;;  %v1212_v60 = vadd.f32 %v1211_v55, %v1151_v57  ;;  %v1155_v61 = vadd.f32 %v1154_v58, %v453_v16  ;;  %v1358_v62 = vmax.f32 %v1210_v50, 0.0  ;;  %v3213_v55 = vld [vmem:[#allocation8 + $0x48] ss:$16 sps:$4 sm:$0xff]   ;;  %v3227_v57 = vld [vmem:[#allocation8 + $0xc] ss:$16 sps:$4 sm:$0xff]  }
 0x170   : > { %v1156_v63 = vpop.f32.mrf.mxu0  ;;  %v3219_v50 = vld [vmem:[#allocation8 + $0x28] ss:$16 sps:$4 sm:$0xff]   ;;  %v3233_v58 = vld [vmem:[#allocation8 + $0x1ec] ss:$16 sps:$4 sm:$0xff]  }
 0x171   : > { %v1217_v0 = vpop.f32.mrf.mxu1  ;;  %v1359_v2 = vmax.f32 %v1212_v60, 0.0  ;;  %v1157_v3 = vadd.f32 %v1156_v63, %v457_v15  ;;  %v1216_v53 = vadd.f32 %v1215_v59, %v1155_v61  ;;  %v3779_v10 = vpack.c.bf16 %v1358_v62, %v1354_v4  ;;  %v3231_v59 = vld [vmem:[#allocation8 + $0x1e8] ss:$16 sps:$4 sm:$0xff]   ;;  %v3239_v60 = vld [vmem:[#allocation8 + $0x1cc] ss:$16 sps:$4 sm:$0xff]  }
 0x172   : > { %v1158_v54 = vpop.f32.mrf.mxu0  ;;  %v3237_v61 = vld [vmem:[#allocation8 + $0x1c8] ss:$16 sps:$4 sm:$0xff]   ;;  %v3245_v62 = vld [vmem:[#allocation8 + $0x1ac] ss:$16 sps:$4 sm:$0xff]   ;;  %v460_v4 = vsub.s32 2, %v3767_v41 }
 0x173   : > { %v1219_v5 = vpop.f32.mrf.mxu1  ;;  %v1375_v6 = vpack.c.bf16 %v1359_v2, %v1355_v1  ;;  %v1159_v7 = vadd.f32 %v1158_v54, %v453_v16  ;;  %v1218_v8 = vadd.f32 %v1217_v0, %v1157_v3  ;;  %v1362_v18 = vmax.f32 %v1216_v53, 0.0  ;;  %v3243_v63 = vld [vmem:[#allocation8 + $0x1a8] ss:$16 sps:$4 sm:$0xff]   ;;  %v3251_v0 = vld [vmem:[#allocation8 + $0x18c] ss:$16 sps:$4 sm:$0xff]  }
 0x174   : > { %v1160_v11 = vpop.f32.mrf.mxu0  ;;  %v3249_v1 = vld [vmem:[#allocation8 + $0x188] ss:$16 sps:$4 sm:$0xff]   ;;  %v3257_v2 = vld [vmem:[#allocation8 + $0x16c] ss:$16 sps:$4 sm:$0xff]   ;;  %v464_v3 = vsub.s32 3, %v3767_v41 }
 0x175   : > { %v1221_v12 = vpop.f32.mrf.mxu1  ;;  %v1161_v14 = vadd.f32 %v1160_v11, %v457_v15  ;;  %v1220_v17 = vadd.f32 %v1219_v5, %v1159_v7  ;;  %2208 = vmatprep.mubr.bf16.mxu0 %v1375_v6  ;;  %v1363_v21 = vmax.f32 %v1218_v8, 0.0  ;;  %v3255_v53 = vld [vmem:[#allocation8 + $0x168] ss:$16 sps:$4 sm:$0xff]   ;;  %v3263_v54 = vld [vmem:[#allocation8 + $0x14c] ss:$16 sps:$4 sm:$0xff]  }
 0x176   : > { %2209 = vmatmul.mubr.bf16.vlgmr.msra.gmra.mxu0 %v3779_v10  ;;  %v1164_v19 = vpop.f32.mrf.mxu0  ;;  %v3799_v5 = vrot.slane %v3770_v45, %v464_v3 }
 0x177   : > { %v1225_v20 = vpop.f32.mrf.mxu1  ;;  %v1366_v22 = vmax.f32 %v1220_v17, 0.0  ;;  %v1222_v23 = vadd.f32 %v1221_v12, %v1161_v14  ;;  %2299 = vmatpush1.bf16.msra.mxu0 %v3183_v9  ;;  %v1165_v26 = vadd.f32 %v1164_v19, %v453_v16  ;;  %v3261_v9 = vld [vmem:[#allocation8 + $0x148] ss:$16 sps:$4 sm:$0xff]  }
 0x178   : > { %2300 = vmatprep.subr.bf16.mxu0 %v3191_v13  ;;  %v1166_v28 = vpop.f32.mrf.mxu0  ;;  %v3269_v13 = vld [vmem:[#allocation8 + $0x12c] ss:$16 sps:$4 sm:$0xff]  }
 0x179   : > { %v1227_v30 = vpop.f32.mrf.mxu1  ;;  %v1367_v31 = vmax.f32 %v1222_v23, 0.0  ;;  %v1167_v32 = vadd.f32 %v1166_v28, %v457_v15  ;;  %v3782_v33 = vpack.c.bf16 %v1366_v22, %v1362_v18  ;;  %v1226_v36 = vadd.f32 %v1225_v20, %v1165_v26  ;;  %v3275_v23 = vld [vmem:[#allocation8 + $0x10c] ss:$16 sps:$4 sm:$0xff]  }
 0x17a   : > { %v1168_v37 = vpop.f32.mrf.mxu0 }
 0x17b   : > { %v1229_v38 = vpop.f32.mrf.mxu1  ;;  %v3784_v39 = vpack.c.bf16 %v1367_v31, %v1363_v21  ;;  %2301 = vmatpush1.bf16.msra.mxu0 %v3189_v25  ;;  %v1228_v24 = vadd.f32 %v1227_v30, %v1167_v32  ;;  %v1370_v34 = vmax.f32 %v1226_v36, 0.0  ;;  %v3267_v21 = vld [vmem:[#allocation8 + $0x128] ss:$16 sps:$4 sm:$0xff]  }
 0x17c   : > { %2302 = vmatprep.subr.bf16.mxu0 %v3197_v29  ;;  %v1169_v47 = vpop.f32.mrf.mxu0  ;;  %v3273_v37 = vld [vmem:[#allocation8 + $0x108] ss:$16 sps:$4 sm:$0xff]  }
 0x17d   : > { %v1230_v16 = vpop.f32.mrf.mxu1  ;;  %2218 = vmatprep.mubr.bf16.mxu0 %v3784_v39  ;;  %v1371_v48 = vmax.f32 %v1228_v24, 0.0  ;;  %v3791_v43 = vpack.c.bf16 %v1370_v34, %v1370_v34 }
 0x17e   : > { %2219 = vmatmul.mubr.bf16.gmra.mxu0 %v3782_v33 }
 0x17f   : > { %v3788_v15 = vpack.c.bf16 %v1371_v48, %v1371_v48  ;;  %2303 = vmatpush1.bf16.msra.mxu0 %v3195_v40 }
 0x180   : > { %2304 = vmatprep.subr.bf16.mxu0 %v3203_v27 }
 0x181   : > { %2228 = vmatprep.mubr.bf16.mxu0 %v3788_v15 }
 0x183   : > { %2305 = vmatpush1.bf16.msra.mxu0 %v3201_v35 }
 0x184   : > { %2306 = vmatprep.subr.bf16.mxu0 %v3209_v42 }
 0x186   : > { %2229 = vmatmul.mubr.bf16.gmra.mxu0 %v3791_v43 }
 0x187   : > { %2307 = vmatpush1.bf16.msra.mxu0 %v3207_v49  ;;  %2330 = vmatprep.mubr.bf16.mxu0 %v1375_v6  ;;  %v3804_v6 = vrot.slane %v3770_v45, %v460_v4 }
 0x188   : > { %2308 = vmatprep.subr.bf16.mxu0 %v3215_v52 }
 0x18b   : > { %2309 = vmatpush1.bf16.msra.mxu0 %v3213_v55 }
 0x18c   : > { %2310 = vmatprep.subr.bf16.mxu0 %v3221_v56  ;;  %v3276_v56 = vld [vmem:[#allocation8 + $0x2e8] ss:$16 sps:$4 sm:$0xff]  }
 0x18f   : > { %2311 = vmatpush1.bf16.msra.mxu0 %v3219_v50 }
 0x190   : > { %2312 = vmatprep.subr.bf16.mxu0 %v3227_v57 }
 0x193   : > { %2313 = vmatpush1.bf16.msra.mxu0 %v3225_v51 }
 0x194   : > { %2314 = vmatprep.subr.bf16.mxu0 %v3233_v58  ;;  %v3281_v58 = vld [vmem:[#allocation8 + $0x2cc] ss:$16 sps:$4 sm:$0xff]  }
 0x197   : > { %2315 = vmatpush2.bf16.msra.mxu0 %v3231_v59 }
 0x198   : > { %2316 = vmatprep.subr.bf16.mxu0 %v3239_v60 }
 0x19b   : > { %2317 = vmatpush2.bf16.msra.mxu0 %v3237_v61 }
 0x19c   : > { %2318 = vmatprep.subr.bf16.mxu0 %v3245_v62 }
 0x19f   : > { %2319 = vmatpush2.bf16.msra.mxu0 %v3243_v63 }
 0x1a0   : > { %2320 = vmatprep.subr.bf16.mxu0 %v3251_v0 }
 0x1a3   : > { %2321 = vmatpush2.bf16.msra.mxu0 %v3249_v1 }
 0x1a4   : > { %2322 = vmatprep.subr.bf16.mxu0 %v3257_v2 }
 0x1a6   : > { %v1266_v7 = vpop.f32.mrf.mxu0 }
 0x1a7   : > { %v1327_v8 = vpop.f32.mrf.mxu1  ;;  %2323 = vmatpush2.bf16.msra.mxu0 %v3255_v53  ;;  %v1267_v17 = vadd.f32 %v1266_v7, %v3804_v6  ;;  %v3279_v53 = vld [vmem:[#allocation8 + $0x2c8] ss:$16 sps:$4 sm:$0xff]  }
 0x1a8   : > { %v1268_v11 = vpop.f32.mrf.mxu0  ;;  %2324 = vmatprep.subr.bf16.mxu0 %v3263_v54 }
 0x1a9   : > { %v1329_v12 = vpop.f32.mrf.mxu1  ;;  %v1269_v14 = vadd.f32 %v1268_v11, %v3799_v5  ;;  %v1328_v29 = vadd.f32 %v1327_v8, %v1267_v17  ;;  %v3284_v8 = vld [vmem:[#allocation8 + $0x2ac] ss:$16 sps:$4 sm:$0xff]  }
 0x1aa   : > { %v1270_v18 = vpop.f32.mrf.mxu0 }
 0x1ab   : > { %v1331_v19 = vpop.f32.mrf.mxu1  ;;  %v1271_v20 = vadd.f32 %v1270_v18, %v3804_v6  ;;  %2325 = vmatpush2.bf16.msra.mxu0 %v3261_v9  ;;  %v1330_v25 = vadd.f32 %v1329_v12, %v1269_v14  ;;  %v1356_v48 = vmax.f32 %v1328_v29, 0.0  ;;  %v3293_v29 = vld [vmem:[#allocation8 + $0x24c] ss:$16 sps:$4 sm:$0xff]  }
 0x1ac   : > { %v1272_v45 = vpop.f32.mrf.mxu0  ;;  %2326 = vmatprep.subr.bf16.mxu0 %v3269_v13 }
 0x1ad   : > { %v1333_v22 = vpop.f32.mrf.mxu1  ;;  %v1332_v26 = vadd.f32 %v1331_v19, %v1271_v20  ;;  %v1273_v28 = vadd.f32 %v1272_v45, %v3799_v5  ;;  %v1357_v27 = vmax.f32 %v1330_v25, 0.0  ;;  %v3287_v20 = vld [vmem:[#allocation8 + $0x28c] ss:$16 sps:$4 sm:$0xff]  }
 0x1ae   : > { %v1276_v30 = vpop.f32.mrf.mxu0  ;;  %v3290_v25 = vld [vmem:[#allocation8 + $0x26c] ss:$16 sps:$4 sm:$0xff]  }
 0x1af   : > { %v1337_v31 = vpop.f32.mrf.mxu1  ;;  %v1334_v32 = vadd.f32 %v1333_v22, %v1273_v28  ;;  %v1277_v36 = vadd.f32 %v1276_v30, %v3804_v6  ;;  %2327 = vmatpush2.bf16.msra.mxu0 %v3267_v21  ;;  %v1360_v38 = vmax.f32 %v1332_v26, 0.0  ;;  %v3288_v28 = vld [vmem:[#allocation8 + $0x268] ss:$16 sps:$4 sm:$0xff]   ;;  %v3296_v30 = vld [vmem:[#allocation8 + $0x22c] ss:$16 sps:$4 sm:$0xff]  }
 0x1b0   : > { %v1278_v40 = vpop.f32.mrf.mxu0  ;;  %2328 = vmatprep.subr.bf16.mxu0 %v3275_v23  ;;  %v3285_v23 = vld [vmem:[#allocation8 + $0x288] ss:$16 sps:$4 sm:$0xff]  }
 0x1b1   : > { %v1339_v24 = vpop.f32.mrf.mxu1  ;;  %v1361_v47 = vmax.f32 %v1334_v32, 0.0  ;;  %v1279_v16 = vadd.f32 %v1278_v40, %v3799_v5  ;;  %v1338_v34 = vadd.f32 %v1337_v31, %v1277_v36  ;;  %v3813_v50 = vpack.c.bf16 %v1360_v38, %v1356_v48  ;;  %v3299_v31 = vld [vmem:[#allocation8 + $0x20c] ss:$16 sps:$4 sm:$0xff]   ;;  %v3297_v32 = vld [vmem:[#allocation8 + $0x208] ss:$16 sps:$4 sm:$0xff]  }
 0x1b2   : > { %v1280_v35 = vpop.f32.mrf.mxu0  ;;  %v3302_v36 = vld [vmem:[#allocation8 + $0x3ec] ss:$16 sps:$4 sm:$0xff]   ;;  %v3312_v48 = vld [vmem:[#allocation8 + $0x368] ss:$16 sps:$4 sm:$0xff]  }
 0x1b3   : > { %v1341_v42 = vpop.f32.mrf.mxu1  ;;  %v1377_v49 = vpack.c.bf16 %v1361_v47, %v1357_v27  ;;  %v1281_v52 = vadd.f32 %v1280_v35, %v3804_v6  ;;  %v1340_v55 = vadd.f32 %v1339_v24, %v1279_v16  ;;  %2329 = vmatpush2.bf16.msra.mxu0 %v3273_v37  ;;  %v1364_v61 = vmax.f32 %v1338_v34, 0.0  ;;  %v3300_v37 = vld [vmem:[#allocation8 + $0x3e8] ss:$16 sps:$4 sm:$0xff]   ;;  %v3305_v38 = vld [vmem:[#allocation8 + $0x3cc] ss:$16 sps:$4 sm:$0xff]  }
 0x1b4   : > { %v1282_v57 = vpop.f32.mrf.mxu0  ;;  %v3308_v40 = vld [vmem:[#allocation8 + $0x3ac] ss:$16 sps:$4 sm:$0xff]   ;;  %v3306_v24 = vld [vmem:[#allocation8 + $0x3a8] ss:$16 sps:$4 sm:$0xff]  }
 0x1b5   : > { %v1343_v51 = vpop.f32.mrf.mxu1  ;;  %v1283_v59 = vadd.f32 %v1282_v57, %v3799_v5  ;;  %v1342_v60 = vadd.f32 %v1341_v42, %v1281_v52  ;;  %2269 = vmatprep.mubr.bf16.mxu1 %v1377_v49  ;;  %v1365_v0 = vmax.f32 %v1340_v55, 0.0  ;;  %v3311_v27 = vld [vmem:[#allocation8 + $0x38c] ss:$16 sps:$4 sm:$0xff]   ;;  %v3309_v47 = vld [vmem:[#allocation8 + $0x388] ss:$16 sps:$4 sm:$0xff]  }
 0x1b6   : > { %2331 = vmatmul.mubr.bf16.vlgmr.msra.gmra.mxu0 %v3779_v10  ;;  %2270 = vmatmul.mubr.bf16.vlgmr.msra.gmra.mxu1 %v3813_v50  ;;  %v1286_v62 = vpop.f32.mrf.mxu0  ;;  %v3314_v16 = vld [vmem:[#allocation8 + $0x36c] ss:$16 sps:$4 sm:$0xff]   ;;  %v3315_v35 = vld [vmem:[#allocation8 + $0x348] ss:$16 sps:$4 sm:$0xff]  }
 0x1b7   : > { %v1347_v63 = vpop.f32.mrf.mxu1  ;;  %v1368_v1 = vmax.f32 %v1342_v60, 0.0  ;;  %v1344_v2 = vadd.f32 %v1343_v51, %v1283_v59  ;;  %2340 = vmatprep.mubr.bf16.mxu0 %v3784_v39  ;;  %2360 = vmatpush1.bf16.msra.mxu1 %v3276_v56  ;;  %v1287_v54 = vadd.f32 %v1286_v62, %v3804_v6  ;;  %v3282_v39 = vld [vmem:[#allocation8 + $0x2a8] ss:$16 sps:$4 sm:$0xff]   ;;  %v3317_v34 = vld [vmem:[#allocation8 + $0x34c] ss:$16 sps:$4 sm:$0xff]  }
 0x1b8   : > { %2361 = vmatprep.subr.bf16.mxu1 %v3281_v58  ;;  %v1288_v7 = vpop.f32.mrf.mxu0  ;;  %v3320_v42 = vld [vmem:[#allocation8 + $0x32c] ss:$16 sps:$4 sm:$0xff]   ;;  %v3321_v55 = vld [vmem:[#allocation8 + $0x308] ss:$16 sps:$4 sm:$0xff]  }
 0x1b9   : > { %v1349_v9 = vpop.f32.mrf.mxu1  ;;  %v1369_v11 = vmax.f32 %v1344_v2, 0.0  ;;  %v1289_v10 = vadd.f32 %v1288_v7, %v3799_v5  ;;  %v3821_v12 = vpack.c.bf16 %v1368_v1, %v1364_v61  ;;  %v1348_v13 = vadd.f32 %v1347_v63, %v1287_v54  ;;  %v3323_v52 = vld [vmem:[#allocation8 + $0x30c] ss:$16 sps:$4 sm:$0xff]  }
 0x1ba   : > { %v1290_v14 = vpop.f32.mrf.mxu0 }
 0x1bb   : > { %v1351_v17 = vpop.f32.mrf.mxu1  ;;  %v3823_v18 = vpack.c.bf16 %v1369_v11, %v1365_v0  ;;  %2362 = vmatpush1.bf16.msra.mxu1 %v3279_v53  ;;  %v1350_v19 = vadd.f32 %v1349_v9, %v1289_v10  ;;  %v1372_v22 = vmax.f32 %v1348_v13, 0.0 }
 0x1bc   : > { %2363 = vmatprep.subr.bf16.mxu1 %v3284_v8  ;;  %v1291_v6 = vpop.f32.mrf.mxu0 }
 0x1bd   : > { %v1352_v21 = vpop.f32.mrf.mxu1  ;;  %2279 = vmatprep.mubr.bf16.mxu1 %v3823_v18  ;;  %v1373_v45 = vmax.f32 %v1350_v19, 0.0  ;;  %v1384_v26 = vpack.c.bf16 %v1372_v22, %v1372_v22 }
 0x1be   : > { %2341 = vmatmul.mubr.bf16.gmra.mxu0 %v3782_v33  ;;  %2280 = vmatmul.mubr.bf16.gmra.mxu1 %v3821_v12  ;;  %v3291_v33 = vld [vmem:[#allocation8 + $0x248] ss:$16 sps:$4 sm:$0xff]  }
 0x1bf   : > { %v1385_v5 = vpack.c.bf16 %v1373_v45, %v1373_v45  ;;  %2350 = vmatprep.mubr.bf16.mxu0 %v3788_v15  ;;  %2364 = vmatpush1.bf16.msra.mxu1 %v3282_v39  ;;  %v3294_v15 = vld [vmem:[#allocation8 + $0x228] ss:$16 sps:$4 sm:$0xff]  }
 0x1c0   : > { %2365 = vmatprep.subr.bf16.mxu1 %v3287_v20 }
 0x1c1   : > { %2289 = vmatprep.mubr.bf16.mxu1 %v1385_v5 }
 0x1c3   : > { %2366 = vmatpush1.bf16.msra.mxu1 %v3285_v23 }
 0x1c4   : > { %2367 = vmatprep.subr.bf16.mxu1 %v3290_v25 }
 0x1c6   : > { %2351 = vmatmul.mubr.bf16.gmra.mxu0 %v3791_v43  ;;  %2290 = vmatmul.mubr.bf16.gmra.mxu1 %v1384_v26  ;;  %v3303_v43 = vld [vmem:[#allocation8 + $0x3c8] ss:$16 sps:$4 sm:$0xff]  }
 0x1c7   : > { %2368 = vmatpush1.bf16.msra.mxu1 %v3288_v28  ;;  %2391 = vmatprep.mubr.bf16.mxu1 %v1377_v49  ;;  %v3318_v49 = vld [vmem:[#allocation8 + $0x328] ss:$16 sps:$4 sm:$0xff]  }
 0x1c8   : > { %2369 = vmatprep.subr.bf16.mxu1 %v3293_v29 }
 0x1cb   : > { %2370 = vmatpush1.bf16.msra.mxu1 %v3291_v33 }
 0x1cc   : > { %2371 = vmatprep.subr.bf16.mxu1 %v3296_v30 }
 0x1cf   : > { %2372 = vmatpush1.bf16.msra.mxu1 %v3294_v15 }
 0x1d0   : > { %2373 = vmatprep.subr.bf16.mxu1 %v3299_v31 }
 0x1d3   : > { %2374 = vmatpush1.bf16.msra.mxu1 %v3297_v32 }
 0x1d4   : > { %2375 = vmatprep.subr.bf16.mxu1 %v3302_v36 }
 0x1d7   : > { %2376 = vmatpush2.bf16.msra.mxu1 %v3300_v37 }
 0x1d8   : > { %2377 = vmatprep.subr.bf16.mxu1 %v3305_v38 }
 0x1db   : > { %2378 = vmatpush2.bf16.msra.mxu1 %v3303_v43 }
 0x1dc   : > { %2379 = vmatprep.subr.bf16.mxu1 %v3308_v40 }
 0x1df   : > { %2380 = vmatpush2.bf16.msra.mxu1 %v3306_v24 }
 0x1e0   : > { %2381 = vmatprep.subr.bf16.mxu1 %v3311_v27 }
 0x1e3   : > { %2382 = vmatpush2.bf16.msra.mxu1 %v3309_v47 }
 0x1e4   : > { %2383 = vmatprep.subr.bf16.mxu1 %v3314_v16 }
 0x1e7   : > { %2384 = vmatpush2.bf16.msra.mxu1 %v3312_v48 }
 0x1e8   : > { %2385 = vmatprep.subr.bf16.mxu1 %v3317_v34 }
 0x1eb   : > { %2386 = vmatpush2.bf16.msra.mxu1 %v3315_v35 }
 0x1ec   : > { %2387 = vmatprep.subr.bf16.mxu1 %v3320_v42 }
 0x1ef   : > { %2388 = vmatpush2.bf16.msra.mxu1 %v3318_v49 }
 0x1f0   : > { %2389 = vmatprep.subr.bf16.mxu1 %v3323_v52 }
 0x1f3   : > { %2390 = vmatpush2.bf16.msra.mxu1 %v3321_v55 }
 0x1f6   : > { %2392 = vmatmul.mubr.bf16.vlgmr.msra.gmra.mxu1 %v3813_v50  ;;  %v3836_v50 = vld [vmem:[%s3933_s4] sm:$0xf] }
 0x1f7   : > { %2401 = vmatprep.mubr.bf16.mxu1 %v3823_v18  ;;  %v1519_v53 = vrot.slane %v3836_v50, %v452_v46  ;;  %v1523_v54 = vrot.slane %v3836_v50, %v456_v44 }
 0x1fe   : > { %2402 = vmatmul.mubr.bf16.gmra.mxu1 %v3821_v12 }
 0x1ff   : > { %2411 = vmatprep.mubr.bf16.mxu1 %v1385_v5 }
 0x206   : > { %2412 = vmatmul.mubr.bf16.gmra.mxu1 %v1384_v26 }
 0x236   : > { %v2210_v56 = vpop.f32.mrf.mxu0 }
 0x237   : > { %v2211_v7 = vadd.f32 %v2210_v56, %v1519_v53 }
 0x238   : > { %v2212_v57 = vpop.f32.mrf.mxu0 }
 0x239   : > { %v2213_v11 = vadd.f32 %v2212_v57, %v1523_v54 }
 0x23a   : > { %v2214_v51 = vpop.f32.mrf.mxu0 }
 0x23b   : > { %v2215_v14 = vadd.f32 %v2214_v51, %v1519_v53 }
 0x23c   : > { %v2216_v58 = vpop.f32.mrf.mxu0 }
 0x23d   : > { %v2217_v20 = vadd.f32 %v2216_v58, %v1523_v54 }
 0x23e   : > { %v2220_v59 = vpop.f32.mrf.mxu0 }
 0x23f   : > { %v2221_v45 = vadd.f32 %v2220_v59, %v1519_v53 }
 0x240   : > { %v2222_v60 = vpop.f32.mrf.mxu0 }
 0x241   : > { %v2223_v26 = vadd.f32 %v2222_v60, %v1523_v54 }
 0x242   : > { %v2224_v61 = vpop.f32.mrf.mxu0 }
 0x243   : > { %v2225_v15 = vadd.f32 %v2224_v61, %v1519_v53 }
 0x244   : > { %v2226_v62 = vpop.f32.mrf.mxu0 }
 0x245   : > { %v2227_v38 = vadd.f32 %v2226_v62, %v1523_v54 }
 0x246   : > { %v2230_v63 = vpop.f32.mrf.mxu0 }
 0x247   : > { %v2231_v47 = vadd.f32 %v2230_v63, %v1519_v53  ;;  %v1527_v63 = vrot.slane %v3836_v50, %v460_v4 }
 0x248   : > { %v2232_v0 = vpop.f32.mrf.mxu0 }
 0x249   : > { %v2233_v42 = vadd.f32 %v2232_v0, %v1523_v54  ;;  %v1531_v0 = vrot.slane %v3836_v50, %v464_v3 }
 0x24a   : > { %v2234_v1 = vpop.f32.mrf.mxu0 }
 0x24c   : > { %v2235_v2 = vpop.f32.mrf.mxu0 }
 0x276   : > { %v3844_v8 = vpop.f32.mrf.mxu0  ;;  %v2271_v9 = vpop.f32.mrf.mxu1 }
 0x277   : > { %v2272_v10 = vadd.f32 %v2271_v9, %v2211_v7  ;;  %v2333_v1 = vadd.f32 %v3844_v8, %v1527_v63 }
 0x278   : > { %v3846_v12 = vpop.f32.mrf.mxu0  ;;  %v2273_v13 = vpop.f32.mrf.mxu1 }
 0x279   : > { %v2420_v17 = vmax.f32 %v2272_v10, 0.0  ;;  %v2274_v18 = vadd.f32 %v2273_v13, %v2213_v11  ;;  %v2335_v53 = vadd.f32 %v3846_v12, %v1531_v0 }
 0x27a   : > { %v2336_v39 = vpop.f32.mrf.mxu0  ;;  %v2275_v19 = vpop.f32.mrf.mxu1 }
 0x27b   : > { %2440 = vst [vmem:[%s3850_s13] sm:$0xff] %v2420_v17  ;;  %v2421_v44 = vmax.f32 %v2274_v18, 0.0  ;;  %v2276_v46 = vadd.f32 %v2275_v19, %v2215_v14  ;;  %v2337_v9 = vadd.f32 %v2336_v39, %v1527_v63 }
 0x27c   : > { %v2338_v6 = vpop.f32.mrf.mxu0  ;;  %v2277_v21 = vpop.f32.mrf.mxu1 }
 0x27d   : > { %2441 = vst [vmem:[%s3850_s13 + $0x8] sm:$0xff] %v2421_v44  ;;  %v2424_v22 = vmax.f32 %v2276_v46, 0.0  ;;  %v2278_v5 = vadd.f32 %v2277_v21, %v2217_v20  ;;  %v2339_v14 = vadd.f32 %v2338_v6, %v1531_v0 }
 0x27e   : > { %v2342_v23 = vpop.f32.mrf.mxu0  ;;  %v2281_v25 = vpop.f32.mrf.mxu1 }
 0x27f   : > { %2444 = vst [vmem:[%s3850_s13 + $0x20] sm:$0xff] %v2424_v22  ;;  %v2425_v28 = vmax.f32 %v2278_v5, 0.0  ;;  %v2282_v29 = vadd.f32 %v2281_v25, %v2221_v45  ;;  %v2343_v3 = vadd.f32 %v2342_v23, %v1527_v63 }
 0x280   : > { %v2344_v33 = vpop.f32.mrf.mxu0  ;;  %v2283_v30 = vpop.f32.mrf.mxu1 }
 0x281   : > { %2445 = vst [vmem:[%s3850_s13 + $0x28] sm:$0xff] %v2425_v28  ;;  %v2428_v31 = vmax.f32 %v2282_v29, 0.0  ;;  %v2284_v32 = vadd.f32 %v2283_v30, %v2223_v26  ;;  %v2345_v12 = vadd.f32 %v2344_v33, %v1531_v0 }
 0x282   : > { %v2346_v36 = vpop.f32.mrf.mxu0  ;;  %v2285_v37 = vpop.f32.mrf.mxu1 }
 0x283   : > { %2448 = vst [vmem:[%s3850_s13 + $0x40] sm:$0xff] %v2428_v31  ;;  %v2429_v43 = vmax.f32 %v2284_v32, 0.0  ;;  %v2286_v40 = vadd.f32 %v2285_v37, %v2225_v15  ;;  %v2347_v44 = vadd.f32 %v2346_v36, %v1527_v63 }
 0x284   : > { %v2348_v24 = vpop.f32.mrf.mxu0  ;;  %v2287_v27 = vpop.f32.mrf.mxu1 }
 0x285   : > { %2449 = vst [vmem:[%s3850_s13 + $0x48] sm:$0xff] %v2429_v43  ;;  %v2432_v16 = vmax.f32 %v2286_v40, 0.0  ;;  %v2288_v48 = vadd.f32 %v2287_v27, %v2227_v38  ;;  %v2349_v45 = vadd.f32 %v2348_v24, %v1531_v0 }
 0x286   : > { %v2352_v34 = vpop.f32.mrf.mxu0  ;;  %v2291_v35 = vpop.f32.mrf.mxu1 }
 0x287   : > { %2452 = vst [vmem:[%s3850_s13 + $0x60] sm:$0xff] %v2432_v16  ;;  %v2433_v49 = vmax.f32 %v2288_v48, 0.0  ;;  %v2292_v52 = vadd.f32 %v2291_v35, %v2231_v47  ;;  %v2353_v25 = vadd.f32 %v2352_v34, %v1527_v63 }
 0x288   : > { %v2354_v55 = vpop.f32.mrf.mxu0  ;;  %v2293_v56 = vpop.f32.mrf.mxu1 }
 0x289   : > { %2453 = vst [vmem:[%s3850_s13 + $0x68] sm:$0xff] %v2433_v49  ;;  %v2436_v57 = vmax.f32 %v2292_v52, 0.0  ;;  %v2294_v51 = vadd.f32 %v2293_v56, %v2233_v42  ;;  %v2355_v33 = vadd.f32 %v2354_v55, %v1531_v0 }
 0x28a   : > { %v2356_v58 = vpop.f32.mrf.mxu0  ;;  %v2295_v59 = vpop.f32.mrf.mxu1 }
 0x28b   : > { %2456 = vst [vmem:[%s3850_s13 + $0x80] sm:$0xff] %v2436_v57  ;;  %v2437_v60 = vmax.f32 %v2294_v51, 0.0 }
 0x28c   : > { %v2357_v61 = vpop.f32.mrf.mxu0  ;;  %v2296_v62 = vpop.f32.mrf.mxu1 }
 0x28d   : > { %2457 = vst [vmem:[%s3850_s13 + $0x88] sm:$0xff] %v2437_v60 }
 0x2b6   : > { %v2393_v2 = vpop.f32.mrf.mxu1 }
 0x2b7   : > { %v2394_v54 = vadd.f32 %v2393_v2, %v2333_v1 }
 0x2b8   : > { %v2395_v7 = vpop.f32.mrf.mxu1 }
 0x2b9   : > { %v2422_v11 = vmax.f32 %v2394_v54, 0.0  ;;  %v2396_v10 = vadd.f32 %v2395_v7, %v2335_v53 }
 0x2ba   : > { %v2397_v13 = vpop.f32.mrf.mxu1 }
 0x2bb   : > { %2442 = vst [vmem:[%s3850_s13 + $0x10] sm:$0xff] %v2422_v11  ;;  %v2423_v4 = vmax.f32 %v2396_v10, 0.0  ;;  %v2398_v41 = vadd.f32 %v2397_v13, %v2337_v9 }
 0x2bc   : > { %v2399_v17 = vpop.f32.mrf.mxu1 }
 0x2bd   : > { %2443 = vst [vmem:[%s3850_s13 + $0x18] sm:$0xff] %v2423_v4  ;;  %v2426_v50 = vmax.f32 %v2398_v41, 0.0  ;;  %v2400_v8 = vadd.f32 %v2399_v17, %v2339_v14 }
 0x2be   : > { %v2403_v18 = vpop.f32.mrf.mxu1 }
 0x2bf   : > { %2446 = vst [vmem:[%s3850_s13 + $0x30] sm:$0xff] %v2426_v50  ;;  %v2427_v19 = vmax.f32 %v2400_v8, 0.0  ;;  %v2404_v39 = vadd.f32 %v2403_v18, %v2343_v3 }
 0x2c0   : > { %v2405_v20 = vpop.f32.mrf.mxu1 }
 0x2c1   : > { %2447 = vst [vmem:[%s3850_s13 + $0x38] sm:$0xff] %v2427_v19  ;;  %v2430_v46 = vmax.f32 %v2404_v39, 0.0  ;;  %v2406_v6 = vadd.f32 %v2405_v20, %v2345_v12 }
 0x2c2   : > { %v2407_v21 = vpop.f32.mrf.mxu1 }
 0x2c3   : > { %2450 = vst [vmem:[%s3850_s13 + $0x50] sm:$0xff] %v2430_v46  ;;  %v2431_v22 = vmax.f32 %v2406_v6, 0.0  ;;  %v2408_v5 = vadd.f32 %v2407_v21, %v2347_v44 }
 0x2c4   : > { %v2409_v23 = vpop.f32.mrf.mxu1 }
 0x2c5   : > { %2451 = vst [vmem:[%s3850_s13 + $0x58] sm:$0xff] %v2431_v22  ;;  %v2434_v26 = vmax.f32 %v2408_v5, 0.0  ;;  %v2410_v28 = vadd.f32 %v2409_v23, %v2349_v45 }
 0x2c6   : > { %v2413_v29 = vpop.f32.mrf.mxu1 }
 0x2c7   : > { %2454 = vst [vmem:[%s3850_s13 + $0x70] sm:$0xff] %v2434_v26  ;;  %v2435_v30 = vmax.f32 %v2410_v28, 0.0  ;;  %v2414_v15 = vadd.f32 %v2413_v29, %v2353_v25 }
 0x2c8   : > { %v2415_v31 = vpop.f32.mrf.mxu1 }
 0x2c9   : > { %2455 = vst [vmem:[%s3850_s13 + $0x78] sm:$0xff] %v2435_v30  ;;  %v2438_v32 = vmax.f32 %v2414_v15, 0.0  ;;  %v2416_v36 = vadd.f32 %v2415_v31, %v2355_v33 }
 0x2ca   : > { %v2417_v37 = vpop.f32.mrf.mxu1 }
 0x2cb   : > { %2458 = vst [vmem:[%s3850_s13 + $0x90] sm:$0xff] %v2438_v32  ;;  %v2439_v38 = vmax.f32 %v2416_v36, 0.0 }
 0x2cc   : > { %v2418_v43 = vpop.f32.mrf.mxu1 }
 0x2cd   : > { %2459 = vst [vmem:[%s3850_s13 + $0x98] sm:$0xff] %v2439_v38 }
 0x2ce   : > { %3443 = shalt.err (!%p3440_p9)
}
 0x2cf   : > { %s3444_s29 = scalar_lea.hbm %s3883_s8, 2560  ;;  %s3448_s24 = scalar_lea.hbm %s3934_s5, 12800 }
 0x2d0   : > { %p3445_p1 = scmp.ne.s32.totalorder %s3883_s8, %s3444_s29  ;;  %p3449_p10 = scmp.lt.s32.totalorder %s3883_s8, %s3934_s5 }
 0x2d1   : > { %p3450_p12 = scmp.lt.s32.totalorder %s3448_s24, %s3444_s29 }
 0x2d2   : > { %p3446_p8 = pnand %p3445_p1, %p3952_p6 }
 0x2d3   : > { %p3451_p2 = por %p3450_p12, %p3449_p10 }
 0x2d4   : > { %p3447_p5 = pneg %p3446_p8 }
 0x2d6   : > { %p3452_p4 = pnand %p3451_p2, %p3447_p5 }
 0x2d8   : > { %3455 = shalt.err (!%p3452_p4)
}
 0x2d9   : > { %s3513_s14 = smov 512   ;;  %s3514_s17 = smov 32  }
 0x2da   : > { %2871 = dma.vmem_to_hbm [thread:$0]  (%p3952_p6), %s3885_s16, 2560, %s3883_s8, %s2461_s22, %s3513_s14, %s3513_s14, %s3514_s17  }
 0x2db PF: > { %p2898_p11 = scmp.ge.s32.totalorder %s3502_s21, 2  ;;  %s2490_s9 = sand.u32 1, %s3490_s18  }
 0x2dc   : > { %p3953_p13 = scmp.ne.s32.totalorder %s3940_s25, 0  ;;  %s2491_s11 = scalar_lea.sflag [#allocation4], %s2490_s9 }
 0x2de   : > { %p2888_p3 = pnand %p2898_p11, %p3953_p13 }
 0x2e0   : > { %p2889_p0 = pneg %p2888_p3 }
 0x2e2   : > { %3485 = dma.done.wait (%p2889_p0), %s2491_s11, 2560  }
 0x2e3   : > { %3487 = vsyncadd (%p2889_p0), %s2491_s11, 4294964736  ;;  %p20_p7 = scmp.ge.s32.totalorder %s3624_s28, 7   ;;  %s3954_s18 = smov %s3494_s19 }
 0x2e4   : > { %s3955_s19 = smov %s3498_s20  ;;  %s3956_s20 = smov %s3634_s6 }
 0x2e5   : > { %s3957_s21 = smov %s3624_s28  ;;  %22 = sbr.rel (!%p20_p7) target bundleno = 7 (0x7), region = 97 }
 0x2ea   :  { %2496 = vsyncpa [#allocation3], 1 }
 0x2eb   :  { %2498 = vsyncpa [#allocation3 + $0x1], 1 }
 0x2ec   :  { %2499 = vsyncpa [#allocation6], 1 }
 0x2ed   :  { %2500 = vsyncpa [#allocation9], 1 }
 0x2ee   :  { %2501 = vsyncpa [#allocation4], 1 }
 0x2ef   :  { %2503 = vsyncpa [#allocation4 + $0x1], 1 }

// kernel: adapter_forward.1
= control target key start
LH: loop header
LB: loop body
LE: loop exit
PB: predicated region body
PF: predicated region fallthrough
CT: control target
= control target key end

     0   :  { %10 = vsyncpa [#allocation3], 0  ;;  %s3929_s0 = inlined_call_operand.hbm [shape: f32[200,512], index: 0, kind: input, shape index: {}]   ;;  %s3930_s1 = inlined_call_operand.hbm [shape: bf16[512,512], index: 1, kind: input, shape index: {}]   ;;  %s3931_s2 = inlined_call_operand.hbm [shape: f32[1,512], index: 2, kind: input, shape index: {}]   ;;  %s3932_s3 = inlined_call_operand.hbm [shape: bf16[512,512], index: 3, kind: input, shape index: {}]   ;;  %s3933_s4 = inlined_call_operand.vmem [shape: f32[1,512], index: 4, kind: input, shape index: {}]   ;;  %s3934_s5 = inlined_call_operand.hbm [shape: f32[200,512], index: 5, kind: output, shape index: {}]  }
   0x1   :  { %12 = vsyncpa [#allocation3 + $0x1], 0 }
   0x2   :  { %13 = vsyncpa [#allocation6], 0 }
   0x3   :  { %14 = vsyncpa [#allocation9], 0 }
   0x4   :  { %15 = vsyncpa [#allocation4], 0 }
   0x5   :  { %17 = vsyncpa [#allocation4 + $0x1], 0  ;;  %s3545_s18 = smov 0   ;;  %s3547_s19 = smov 0  }
   0x6   :  { %s3549_s20 = smov 0   ;;  %s3551_s21 = smov 0  }
   0x7 LB: > { %s3566_s22 = sadd.s32 4294967295, %s3502_s21   ;;  %s2577_s23 = sadd.s32 4294967294, %s3502_s21   ;;  %s3502_s21 = sphi %s3551_s21, %s3957_s21   ;;  %s3498_s20 = sphi %s3549_s20, %s3956_s20   ;;  %s3494_s19 = sphi %s3547_s19, %s3955_s19   ;;  %s3490_s18 = sphi %s3545_s18, %s3954_s18  }
   0x8   : > { %p43_p0 = scmp.ne.s32.totalorder %s3494_s19, %s3490_s18  ;;  %p3935_p1 = scmp.eq.s32.totalorder %s3566_s22, 0 }
   0x9   : > { %p157_p3 = scmp.eq.s32.totalorder %s2577_s23, 4  ;;  %p2578_p5 = scmp.ge.s32.totalorder %s3502_s21, 1 }
   0xa   : > { %p3575_p4 = por %p3935_p1, %p43_p0  ;;  %p164_p7 = scmp.lt.s32.totalorder %s3502_s21, 6 }
   0xb   : > { %p3580_p6 = por %p157_p3, %p43_p0  ;;  %s3504_s27 = smov [#allocation5]  }
   0xc   : > { %s3939_s24 = scalar_select %p3575_p4, 1, 0 }
   0xd   : > { %s3940_s25 = scalar_select %p3580_p6, 1, 0 }
   0xe   : > { %p3585_p8 = pnand %p2578_p5, %p164_p7  ;;  %s176_s28 = sshll.u32 %s3504_s27, 4  ;;  %s177_s28 = int_to_ptr.vmem [resolvable:$true] %s176_s28 }
   0xf   : > { %s3505_s30 = smov [#allocation7]   ;;  %s3506_s7 = smov [#allocation8]  }
  0x10   : > { %s3941_s26 = scalar_select %p3585_p8, 1, 0 }
  0x11   : > { %p2873_p9 = pneg %p3585_p8  ;;  %s190_s6 = sshll.u32 %s3505_s30, 4  ;;  %s191_s6 = int_to_ptr.vmem [resolvable:$true] %s190_s6 }
  0x12   : > { %s200_s8 = sshll.u32 %s3506_s7, 4  ;;  %s3335_s9 = scalar_lea.vmem %s177_s28, 16384  ;;  %s201_s8 = int_to_ptr.vmem [resolvable:$true] %s200_s8 }
  0x13   : > { %p3593_p10 = pnand %p2873_p9, %p3935_p1  ;;  %p3336_p12 = scmp.ne.s32.totalorder %s177_s28, %s3335_s9 }
  0x14   : > { %p3343_p3 = scmp.lt.s32.totalorder %s177_s28, %s177_s28  ;;  %p3344_p5 = scmp.lt.s32.totalorder %s3335_s9, %s3335_s9 }
  0x15   : > { %p3326_p11 = pneg %p3593_p10 }
  0x16   : > { %p3345_p7 = por %p3344_p5, %p3343_p3 }
  0x17   : > { %p3338_p13 = pnand %p3336_p12, %p3326_p11 }
  0x19   : > { %p3339_p0 = pneg %p3338_p13 }
  0x1b   : > { %p3346_p9 = pnand %p3345_p7, %p3339_p0 }
  0x1d   : > { %3349 = shalt.err (!%p3346_p9)
}
  0x1e   : > { %s3507_s10 = smov 256   ;;  %s3508_s11 = smov 16  }
  0x1f   : > { %2876 = dma.hbm_to_vmem [thread:$0]  (!%p3593_p10), %s3930_s1, 16384, %s177_s28, [#allocation6], %s3507_s10, %s3507_s10, %s3508_s11  }
  0x20   : > { %s3361_s14 = scalar_lea.vmem %s191_s6, 64  ;;  %p3369_p2 = scmp.lt.s32.totalorder %s191_s6, %s191_s6 }
  0x21   : > { %p3362_p1 = scmp.ne.s32.totalorder %s191_s6, %s3361_s14  ;;  %p3370_p6 = scmp.lt.s32.totalorder %s3361_s14, %s3361_s14 }
  0x23   : > { %p3364_p12 = pnand %p3362_p1, %p3326_p11  ;;  %p3371_p3 = por %p3370_p6, %p3369_p2 }
  0x25   : > { %p3365_p13 = pneg %p3364_p12 }
  0x27   : > { %p3372_p0 = pnand %p3371_p3, %p3365_p13 }
  0x29   : > { %3375 = shalt.err (!%p3372_p0)
}
  0x2a   : > { %2879 = dma.hbm_to_vmem [thread:$0]  (!%p3593_p10), %s3931_s2, 64, %s191_s6, [#allocation6]  }
  0x2b   : > { %s3387_s17 = scalar_lea.vmem %s201_s8, 16384  ;;  %p3395_p9 = scmp.lt.s32.totalorder %s201_s8, %s201_s8 }
  0x2c   : > { %p3388_p5 = scmp.ne.s32.totalorder %s201_s8, %s3387_s17  ;;  %p3396_p12 = scmp.lt.s32.totalorder %s3387_s17, %s3387_s17 }
  0x2e   : > { %p3390_p7 = pnand %p3388_p5, %p3326_p11  ;;  %p3397_p4 = por %p3396_p12, %p3395_p9 }
  0x30   : > { %p3391_p1 = pneg %p3390_p7 }
  0x32   : > { %p3398_p2 = pnand %p3397_p4, %p3391_p1 }
  0x34   : > { %3401 = shalt.err (!%p3398_p2)
}
  0x35   : > { %2882 = dma.hbm_to_vmem [thread:$0]  (!%p3593_p10), %s3932_s3, 16384, %s201_s8, [#allocation9], %s3507_s10, %s3507_s10, %s3508_s11  }
  0x36   : > { %s3624_s28 = sadd.s32 1, %s3502_s21   ;;  %s30_s29 = sadd.s32 1, %s3498_s20 }
  0x37   : > { %s27_s30 = ssub.s32 %s3502_s21, %s3624_s28  ;;  %p37_p6 = scmp.ne.s32.totalorder %s3498_s20, %s3494_s19 }
  0x38   : > { %p28_p4 = scmp.eq.s32.totalorder %s27_s30, 0  ;;  %p38_p11 = scmp.eq.s32.totalorder %s3502_s21, 0 }
  0x39   : > { %p2894_p13 = scmp.lt.s32.totalorder %s3502_s21, 5  ;;  %p3943_p0 = scmp.eq.s32.totalorder %s3566_s22, 4 }
  0x3a   : > { %s3634_s6 = scalar_select %p28_p4, %s3498_s20, %s30_s29  }
  0x3b   : > { %p39_p3 = por %p38_p11, %p37_p6  ;;  %p3638_p5 = por %p3943_p0, %p37_p6 }
  0x3c   : > { %s217_s9 = sand.u32 1, %s3498_s20   ;;  %s2853_s12 = smul.u32 2560, %s3502_s21 }
  0x3d   : > { %s3944_s7 = scalar_select %p3638_p5, 1, 0 }
  0x3e   : > { %s2855_s8 = smul.u32 160, %s217_s9  ;;  %s3647_s13 = scalar_lea.hbm %s3929_s0, %s2853_s12 }
  0x3f   : > { %p3649_p10 = pnand %p2894_p13, %p39_p3  ;;  %s3655_s17 = scalar_lea.sflag [#allocation3], %s217_s9 }
  0x40   : > { %s221_s15 = scalar_lea.vmem [#allocation2], %s2855_s8  ;;  %s3402_s23 = scalar_lea.hbm %s3647_s13, 2560 }
  0x41   : > { %s229_s16 = sshll.u32 %s221_s15, 4  ;;  %p3403_p7 = scmp.ne.s32.totalorder %s3647_s13, %s3402_s23  ;;  %s3653_s16 = int_to_ptr.vmem [resolvable:$true] %s229_s16 }
  0x42   : > { %p3404_p1 = pneg %p3649_p10  ;;  %s3407_s29 = scalar_lea.hbm %s3929_s0, 12800 }
  0x43   : > { %p3408_p2 = scmp.lt.s32.totalorder %s3647_s13, %s3929_s0  ;;  %p3409_p4 = scmp.lt.s32.totalorder %s3407_s29, %s3402_s23 }
  0x44   : > { %p3405_p9 = pnand %p3404_p1, %p3403_p7 }
  0x45   : > { %p3410_p6 = por %p3409_p4, %p3408_p2 }
  0x46   : > { %p3406_p12 = pneg %p3405_p9 }
  0x48   : > { %p3411_p11 = pnand %p3410_p6, %p3406_p12 }
  0x4a   : > { %3414 = shalt.err (!%p3411_p11)
}
  0x4b   : > { %s3415_s9 = scalar_lea.vmem %s3653_s16, 2560  ;;  %s3509_s8 = smov [#allocation2]  }
  0x4c   : > { %p3416_p13 = scmp.ne.s32.totalorder %s3653_s16, %s3415_s9  ;;  %s3420_s11 = sshll.u32 %s3509_s8, 4  ;;  %s3421_s11 = int_to_ptr.vmem [resolvable:$false] %s3420_s11 }
  0x4d   : > { %s3422_s15 = scalar_lea.vmem %s3421_s11, 5120  ;;  %p3423_p7 = scmp.lt.s32.totalorder %s3653_s16, %s3421_s11 }
  0x4e   : > { %p3418_p3 = pnand %p3416_p13, %p3404_p1  ;;  %p3424_p9 = scmp.lt.s32.totalorder %s3422_s15, %s3415_s9 }
  0x50   : > { %p3419_p0 = pneg %p3418_p3  ;;  %p3425_p5 = por %p3424_p9, %p3423_p7 }
  0x52   : > { %p3426_p8 = pnand %p3425_p5, %p3419_p0 }
  0x54   : > { %3429 = shalt.err (!%p3426_p8)
}
  0x55   : > { %s3510_s23 = smov 512   ;;  %s3511_s27 = smov 32  }
  0x56   : > { %2886 = dma.hbm_to_vmem [thread:$0]  (!%p3649_p10), %s3647_s13, 2560, %s3653_s16, %s3655_s17, %s3510_s23, %s3510_s23, %s3511_s27  }
  0x57   : > { %p3946_p1 = scmp.ne.s32.totalorder %s3941_s26, 0 }
  0x58   : > { %s3679_s30 = sand.u32 (!%p3946_p1), 1, %s3494_s19   ;;  %p3947_p8 = scmp.ne.s32.totalorder (!%p3946_p1), %s3939_s24, 0 }
  0x59   : > { %241 = sbr.rel (%p3946_p1) target bundleno = 731 (0x2db), region = 40  ;;  %s244_s12 = scalar_lea.sflag (!%p3946_p1), [#allocation3], %s3679_s30 }
  0x5a   : > { %s2856_s29 = smul.u32 (!%p3946_p1), 160, %s3679_s30 }
  0x5c   : > { %s3685_s10 = scalar_lea.vmem (!%p3946_p1), [#allocation2], %s2856_s29 }
  0x5e   : > { %3473 = dma.done.wait (%p3947_p8), %s244_s12, 2560  }
  0x5f   : > { %3475 = vsyncadd (%p3947_p8), %s244_s12, 4294964736  ;;  %p3948_p5 = scmp.eq.s32.totalorder %s3566_s22, 0 }
  0x61   : > { %3477 = dma.done.wait (%p3948_p5), [#allocation6], 16448   ;;  %p3949_p10 = pmov %p3948_p5 }
  0x62   : > { %p3950_p12 = pmov %p3948_p5 }
  0x63   : > { %3479 = vsyncadd (%p3949_p10), [#allocation6], 4294950848 }
  0x64   : > { %3481 = dma.done.wait (%p3950_p12), [#allocation9], 16384   ;;  %p3951_p2 = pmov %p3948_p5 }
  0x65   : > { %v2940_v0 = vld [vmem:[#allocation5 + $0xe4] ss:$16 sps:$4 sm:$0xff]   ;;  %v2944_v2 = vld [vmem:[#allocation5 + $0xe0] ss:$16 sps:$4 sm:$0xff]   ;;  %v289_v46 = vld [vmem:[%s3685_s10 + $0x8] sm:$0xff]  ;;  %s3850_s13 = scalar_lea.vmem [#allocation10], %s2856_s29 }
  0x66   : > { %3483 = vsyncadd (%p3951_p2), [#allocation9], 4294950912  ;;  %v2942_v1 = vld [vmem:[#allocation5 + $0x2e4] ss:$16 sps:$4 sm:$0xff]   ;;  %1110 = vmatprep.subr.bf16.mxu0 %v2940_v0  ;;  %v2945_v3 = vld [vmem:[#allocation5 + $0x2e0] ss:$16 sps:$4 sm:$0xff]  }
  0x67   : > { %1171 = vmatprep.subr.bf16.mxu1 %v2942_v1  ;;  %v2946_v4 = vld [vmem:[#allocation5 + $0xc4] ss:$16 sps:$4 sm:$0xff]   ;;  %1111 = vmatpush1.bf16.msra.mxu0 %v2944_v2  ;;  %v2950_v6 = vld [vmem:[#allocation5 + $0xc0] ss:$16 sps:$4 sm:$0xff]   ;;  %v293_v47 = vld [vmem:[%s3685_s10 + $0x28] sm:$0xff]  ;;  %s2854_s14 = smul.u32 2560, %s3566_s22 }
  0x68   : > { %1172 = vmatpush1.bf16.msra.mxu1 %v2945_v3  ;;  %v2948_v5 = vld [vmem:[#allocation5 + $0x2c4] ss:$16 sps:$4 sm:$0xff]   ;;  %1112 = vmatprep.subr.bf16.mxu0 %v2946_v4  ;;  %v2951_v7 = vld [vmem:[#allocation5 + $0x2c0] ss:$16 sps:$4 sm:$0xff]   ;;  %v291_v48 = vld [vmem:[%s3685_s10 + $0x18] sm:$0xff]  ;;  %v3703_v53 = vpack.c.bf16 %v293_v47, %v289_v46  ;;  %s2475_s16 = sshll.u32 %s3850_s13, 4  ;;  %s3885_s16 = int_to_ptr.vmem [resolvable:$true] %s2475_s16 }
  0x69   : > { %1173 = vmatprep.subr.bf16.mxu1 %v2948_v5  ;;  %v2952_v8 = vld [vmem:[#allocation5 + $0xa4] ss:$16 sps:$4 sm:$0xff]   ;;  %v2956_v10 = vld [vmem:[#allocation5 + $0xa0] ss:$16 sps:$4 sm:$0xff]   ;;  %v295_v49 = vld [vmem:[%s3685_s10 + $0x38] sm:$0xff]  ;;  %s3883_s8 = scalar_lea.hbm %s3934_s5, %s2854_s14  ;;  %s2461_s22 = scalar_lea.sflag [#allocation4], %s3679_s30 }
  0x6a   : > { %v2954_v9 = vld [vmem:[#allocation5 + $0x2a4] ss:$16 sps:$4 sm:$0xff]   ;;  %v2957_v11 = vld [vmem:[#allocation5 + $0x2a0] ss:$16 sps:$4 sm:$0xff]   ;;  %v3705_v54 = vpack.c.bf16 %v295_v49, %v291_v48  ;;  %1142 = vmatprep.mubr.bf16.mxu0 %v3703_v53  ;;  %v3065_v47 = vld [vmem:[#allocation5 + $0x26c] ss:$16 sps:$4 sm:$0xff]  }
  0x6b   : > { %1113 = vmatpush1.bf16.msra.mxu0 %v2950_v6  ;;  %v2958_v12 = vld [vmem:[#allocation5 + $0x84] ss:$16 sps:$4 sm:$0xff]   ;;  %v2962_v14 = vld [vmem:[#allocation5 + $0x80] ss:$16 sps:$4 sm:$0xff]   ;;  %v3060_v48 = vld [vmem:[#allocation5 + $0x68] ss:$16 sps:$4 sm:$0xff]  }
  0x6c   : > { %1174 = vmatpush1.bf16.msra.mxu1 %v2951_v7  ;;  %1114 = vmatprep.subr.bf16.mxu0 %v2952_v8  ;;  %v2960_v13 = vld [vmem:[#allocation5 + $0x284] ss:$16 sps:$4 sm:$0xff]   ;;  %v2963_v15 = vld [vmem:[#allocation5 + $0x280] ss:$16 sps:$4 sm:$0xff]   ;;  %v3063_v49 = vld [vmem:[#allocation5 + $0x268] ss:$16 sps:$4 sm:$0xff]  }
  0x6d   : > { %1175 = vmatprep.subr.bf16.mxu1 %v2954_v9  ;;  %v2964_v16 = vld [vmem:[#allocation5 + $0x64] ss:$16 sps:$4 sm:$0xff]   ;;  %v2968_v18 = vld [vmem:[#allocation5 + $0x60] ss:$16 sps:$4 sm:$0xff]   ;;  %1203 = vmatprep.mubr.bf16.mxu1 %v3705_v54  ;;  %s3430_s11 = scalar_lea.vmem %s3885_s16, 2560  ;;  %p3952_p6 = scmp.ne.s32.totalorder %s3944_s7, 0 }
  0x6e   : > { %v2966_v17 = vld [vmem:[#allocation5 + $0x264] ss:$16 sps:$4 sm:$0xff]   ;;  %v2969_v19 = vld [vmem:[#allocation5 + $0x260] ss:$16 sps:$4 sm:$0xff]   ;;  %p3431_p4 = scmp.ne.s32.totalorder %s3885_s16, %s3430_s11  ;;  %s3512_s15 = smov [#allocation10]  }
  0x6f   : > { %1115 = vmatpush1.bf16.msra.mxu0 %v2956_v10  ;;  %v2970_v20 = vld [vmem:[#allocation5 + $0x44] ss:$16 sps:$4 sm:$0xff]   ;;  %v2974_v22 = vld [vmem:[#allocation5 + $0x40] ss:$16 sps:$4 sm:$0xff]   ;;  %v3038_v10 = vld [vmem:[#allocation5 + $0xec] ss:$16 sps:$4 sm:$0xff]  }
  0x70   : > { %1176 = vmatpush1.bf16.msra.mxu1 %v2957_v11  ;;  %1116 = vmatprep.subr.bf16.mxu0 %v2958_v12  ;;  %v2972_v21 = vld [vmem:[#allocation5 + $0x244] ss:$16 sps:$4 sm:$0xff]   ;;  %v2975_v23 = vld [vmem:[#allocation5 + $0x240] ss:$16 sps:$4 sm:$0xff]   ;;  %v3041_v11 = vld [vmem:[#allocation5 + $0x2ec] ss:$16 sps:$4 sm:$0xff]   ;;  %p3432_p11 = pnand %p3431_p4, %p3952_p6 }
  0x71   : > { %1177 = vmatprep.subr.bf16.mxu1 %v2960_v13  ;;  %v2976_v24 = vld [vmem:[#allocation5 + $0x24] ss:$16 sps:$4 sm:$0xff]   ;;  %v2980_v26 = vld [vmem:[#allocation5 + $0x20] ss:$16 sps:$4 sm:$0xff]   ;;  %v297_v12 = vld [vmem:[%s3685_s10 + $0x48] sm:$0xff]  ;;  %s3434_s23 = sshll.u32 %s3512_s15, 4  ;;  %s3435_s23 = int_to_ptr.vmem [resolvable:$false] %s3434_s23 }
  0x72   : > { %v2978_v25 = vld [vmem:[#allocation5 + $0x224] ss:$16 sps:$4 sm:$0xff]   ;;  %v2981_v27 = vld [vmem:[#allocation5 + $0x220] ss:$16 sps:$4 sm:$0xff]   ;;  %v301_v13 = vld [vmem:[%s3685_s10 + $0x68] sm:$0xff]  ;;  %p3433_p13 = pneg %p3432_p11  ;;  %s3436_s27 = scalar_lea.vmem %s3435_s23, 5120 }
  0x73   : > { %1117 = vmatpush1.bf16.msra.mxu0 %v2962_v14  ;;  %v2982_v28 = vld [vmem:[#allocation5 + $0x4] ss:$16 sps:$4 sm:$0xff]   ;;  %v2986_v30 = vld [vmem:[#allocation5] ss:$16 sps:$4 sm:$0xff]   ;;  %v299_v14 = vld [vmem:[%s3685_s10 + $0x58] sm:$0xff]  ;;  %p3437_p3 = scmp.lt.s32.totalorder %s3885_s16, %s3435_s23  ;;  %p3438_p0 = scmp.lt.s32.totalorder %s3436_s27, %s3430_s11 }
  0x74   : > { %1178 = vmatpush1.bf16.msra.mxu1 %v2963_v15  ;;  %1118 = vmatprep.subr.bf16.mxu0 %v2964_v16  ;;  %v2984_v29 = vld [vmem:[#allocation5 + $0x204] ss:$16 sps:$4 sm:$0xff]   ;;  %v2987_v31 = vld [vmem:[#allocation5 + $0x200] ss:$16 sps:$4 sm:$0xff]  }
  0x75   : > { %1179 = vmatprep.subr.bf16.mxu1 %v2966_v17  ;;  %v2988_v32 = vld [vmem:[#allocation5 + $0x1e4] ss:$16 sps:$4 sm:$0xff]   ;;  %v2992_v34 = vld [vmem:[#allocation5 + $0x1e0] ss:$16 sps:$4 sm:$0xff]   ;;  %v303_v17 = vld [vmem:[%s3685_s10 + $0x78] sm:$0xff]  ;;  %p3439_p7 = por %p3438_p0, %p3437_p3 }
  0x76   : > { %v2990_v33 = vld [vmem:[#allocation5 + $0x3e4] ss:$16 sps:$4 sm:$0xff]   ;;  %v2993_v35 = vld [vmem:[#allocation5 + $0x3e0] ss:$16 sps:$4 sm:$0xff]  }
  0x77   : > { %1119 = vmatpush1.bf16.msra.mxu0 %v2968_v18  ;;  %v2994_v36 = vld [vmem:[#allocation5 + $0x1c4] ss:$16 sps:$4 sm:$0xff]   ;;  %v2998_v38 = vld [vmem:[#allocation5 + $0x1c0] ss:$16 sps:$4 sm:$0xff]   ;;  %v3036_v18 = vld [vmem:[#allocation5 + $0xe8] ss:$16 sps:$4 sm:$0xff]   ;;  %p3440_p9 = pnand %p3439_p7, %p3433_p13 }
  0x78   : > { %1180 = vmatpush1.bf16.msra.mxu1 %v2969_v19  ;;  %1120 = vmatprep.subr.bf16.mxu0 %v2970_v20  ;;  %v2996_v37 = vld [vmem:[#allocation5 + $0x3c4] ss:$16 sps:$4 sm:$0xff]   ;;  %v2999_v39 = vld [vmem:[#allocation5 + $0x3c0] ss:$16 sps:$4 sm:$0xff]   ;;  %v3039_v19 = vld [vmem:[#allocation5 + $0x2e8] ss:$16 sps:$4 sm:$0xff]  }
  0x79   : > { %1181 = vmatprep.subr.bf16.mxu1 %v2972_v21  ;;  %v3000_v40 = vld [vmem:[#allocation5 + $0x1a4] ss:$16 sps:$4 sm:$0xff]   ;;  %v3004_v42 = vld [vmem:[#allocation5 + $0x1a0] ss:$16 sps:$4 sm:$0xff]   ;;  %v3044_v20 = vld [vmem:[#allocation5 + $0xcc] ss:$16 sps:$4 sm:$0xff]  }
  0x7a   : > { %v3002_v41 = vld [vmem:[#allocation5 + $0x3a4] ss:$16 sps:$4 sm:$0xff]   ;;  %v3005_v43 = vld [vmem:[#allocation5 + $0x3a0] ss:$16 sps:$4 sm:$0xff]   ;;  %v3047_v21 = vld [vmem:[#allocation5 + $0x2cc] ss:$16 sps:$4 sm:$0xff]  }
  0x7b   : > { %1121 = vmatpush1.bf16.msra.mxu0 %v2974_v22  ;;  %v3006_v44 = vld [vmem:[#allocation5 + $0x184] ss:$16 sps:$4 sm:$0xff]   ;;  %v3010_v50 = vld [vmem:[#allocation5 + $0x180] ss:$16 sps:$4 sm:$0xff]   ;;  %v3042_v22 = vld [vmem:[#allocation5 + $0xc8] ss:$16 sps:$4 sm:$0xff]  }
  0x7c   : > { %1182 = vmatpush1.bf16.msra.mxu1 %v2975_v23  ;;  %1122 = vmatprep.subr.bf16.mxu0 %v2976_v24  ;;  %v3008_v45 = vld [vmem:[#allocation5 + $0x384] ss:$16 sps:$4 sm:$0xff]   ;;  %v3011_v51 = vld [vmem:[#allocation5 + $0x380] ss:$16 sps:$4 sm:$0xff]   ;;  %v3045_v23 = vld [vmem:[#allocation5 + $0x2c8] ss:$16 sps:$4 sm:$0xff]   ;;  %v3721_v24 = vpack.c.bf16 %v301_v13, %v297_v12 }
  0x7d   : > { %1183 = vmatprep.subr.bf16.mxu1 %v2978_v25  ;;  %v3012_v52 = vld [vmem:[#allocation5 + $0x164] ss:$16 sps:$4 sm:$0xff]   ;;  %v3016_v56 = vld [vmem:[#allocation5 + $0x160] ss:$16 sps:$4 sm:$0xff]   ;;  %v3104_v12 = vld [vmem:[#allocation5 + $0x18c] ss:$16 sps:$4 sm:$0xff]  }
  0x7e   : > { %v3014_v55 = vld [vmem:[#allocation5 + $0x364] ss:$16 sps:$4 sm:$0xff]   ;;  %v3017_v57 = vld [vmem:[#allocation5 + $0x360] ss:$16 sps:$4 sm:$0xff]   ;;  %v3107_v13 = vld [vmem:[#allocation5 + $0x38c] ss:$16 sps:$4 sm:$0xff]  }
  0x7f   : > { %1123 = vmatpush1.bf16.msra.mxu0 %v2980_v26  ;;  %v3018_v58 = vld [vmem:[#allocation5 + $0x144] ss:$16 sps:$4 sm:$0xff]   ;;  %v3022_v60 = vld [vmem:[#allocation5 + $0x140] ss:$16 sps:$4 sm:$0xff]  }
  0x80   : > { %1184 = vmatpush1.bf16.msra.mxu1 %v2981_v27  ;;  %1124 = vmatprep.subr.bf16.mxu0 %v2982_v28  ;;  %v3020_v59 = vld [vmem:[#allocation5 + $0x344] ss:$16 sps:$4 sm:$0xff]   ;;  %v3023_v61 = vld [vmem:[#allocation5 + $0x340] ss:$16 sps:$4 sm:$0xff]   ;;  %v3725_v27 = vpack.c.bf16 %v303_v17, %v299_v14  ;;  %v3050_v28 = vld [vmem:[#allocation5 + $0xac] ss:$16 sps:$4 sm:$0xff]  }
  0x81   : > { %1185 = vmatprep.subr.bf16.mxu1 %v2984_v29  ;;  %v3024_v62 = vld [vmem:[#allocation5 + $0x124] ss:$16 sps:$4 sm:$0xff]   ;;  %v3028_v0 = vld [vmem:[#allocation5 + $0x120] ss:$16 sps:$4 sm:$0xff]   ;;  %v3102_v14 = vld [vmem:[#allocation5 + $0x188] ss:$16 sps:$4 sm:$0xff]  }
  0x82   : > { %v3026_v63 = vld [vmem:[#allocation5 + $0x324] ss:$16 sps:$4 sm:$0xff]   ;;  %v3029_v1 = vld [vmem:[#allocation5 + $0x320] ss:$16 sps:$4 sm:$0xff]   ;;  %v3105_v17 = vld [vmem:[#allocation5 + $0x388] ss:$16 sps:$4 sm:$0xff]  }
  0x83   : > { %1125 = vmatpush1.bf16.msra.mxu0 %v2986_v30  ;;  %v3030_v2 = vld [vmem:[#allocation5 + $0x104] ss:$16 sps:$4 sm:$0xff]   ;;  %v3034_v4 = vld [vmem:[#allocation5 + $0x100] ss:$16 sps:$4 sm:$0xff]  }
  0x84   : > { %1186 = vmatpush1.bf16.msra.mxu1 %v2987_v31  ;;  %1126 = vmatprep.subr.bf16.mxu0 %v2988_v32  ;;  %v3032_v3 = vld [vmem:[#allocation5 + $0x304] ss:$16 sps:$4 sm:$0xff]   ;;  %v3035_v5 = vld [vmem:[#allocation5 + $0x300] ss:$16 sps:$4 sm:$0xff]   ;;  %v3053_v31 = vld [vmem:[#allocation5 + $0x2ac] ss:$16 sps:$4 sm:$0xff]  }
  0x85   : > { %1187 = vmatprep.subr.bf16.mxu1 %v2990_v33  ;;  %v288_v6 = vld [vmem:[%s3685_s10] sm:$0xff]  ;;  %v290_v8 = vld [vmem:[%s3685_s10 + $0x10] sm:$0xff]  ;;  %v3048_v32 = vld [vmem:[#allocation5 + $0xa8] ss:$16 sps:$4 sm:$0xff]  }
  0x86   : > { %v292_v7 = vld [vmem:[%s3685_s10 + $0x20] sm:$0xff]  ;;  %v294_v9 = vld [vmem:[%s3685_s10 + $0x30] sm:$0xff]  ;;  %v3051_v33 = vld [vmem:[#allocation5 + $0x2a8] ss:$16 sps:$4 sm:$0xff]  }
  0x87   : > { %1127 = vmatpush2.bf16.msra.mxu0 %v2992_v34  ;;  %v3716_v15 = vpack.c.bf16 %v292_v7, %v288_v6  ;;  %v3718_v16 = vpack.c.bf16 %v294_v9, %v290_v8  ;;  %v296_v25 = vld [vmem:[%s3685_s10 + $0x40] sm:$0xff]  ;;  %v298_v29 = vld [vmem:[%s3685_s10 + $0x50] sm:$0xff]  ;;  %v3090_v6 = vld [vmem:[#allocation5 + $0x1c8] ss:$16 sps:$4 sm:$0xff]  }
  0x88   : > { %1188 = vmatpush2.bf16.msra.mxu1 %v2993_v35  ;;  %1128 = vmatprep.subr.bf16.mxu0 %v2994_v36  ;;  %v300_v26 = vld [vmem:[%s3685_s10 + $0x60] sm:$0xff]  ;;  %v302_v30 = vld [vmem:[%s3685_s10 + $0x70] sm:$0xff]  ;;  %v305_v36 = vld [vmem:[%s3685_s10 + $0x88] sm:$0xff] }
  0x89   : > { %1189 = vmatprep.subr.bf16.mxu1 %v2996_v37  ;;  %v3733_v34 = vpack.c.bf16 %v300_v26, %v296_v25  ;;  %v3735_v35 = vpack.c.bf16 %v302_v30, %v298_v29  ;;  %v307_v37 = vld [vmem:[%s3685_s10 + $0x98] sm:$0xff]  ;;  %v306_v46 = vld [vmem:[%s3685_s10 + $0x90] sm:$0xff] }
  0x8a   : > { %v3093_v7 = vld [vmem:[#allocation5 + $0x3c8] ss:$16 sps:$4 sm:$0xff]   ;;  %v3098_v8 = vld [vmem:[#allocation5 + $0x1ac] ss:$16 sps:$4 sm:$0xff]  }
  0x8b   : > { %1129 = vmatpush2.bf16.msra.mxu0 %v2998_v38  ;;  %v3056_v38 = vld [vmem:[#allocation5 + $0x8c] ss:$16 sps:$4 sm:$0xff]   ;;  %v3114_v25 = vld [vmem:[#allocation5 + $0x148] ss:$16 sps:$4 sm:$0xff]  }
  0x8c   : > { %1190 = vmatpush2.bf16.msra.mxu1 %v2999_v39  ;;  %1130 = vmatprep.subr.bf16.mxu0 %v3000_v40  ;;  %v3059_v39 = vld [vmem:[#allocation5 + $0x28c] ss:$16 sps:$4 sm:$0xff]   ;;  %v3054_v40 = vld [vmem:[#allocation5 + $0x88] ss:$16 sps:$4 sm:$0xff]  }
  0x8d   : > { %1191 = vmatprep.subr.bf16.mxu1 %v3002_v41  ;;  %v3057_v41 = vld [vmem:[#allocation5 + $0x288] ss:$16 sps:$4 sm:$0xff]   ;;  %v3101_v9 = vld [vmem:[#allocation5 + $0x3ac] ss:$16 sps:$4 sm:$0xff]  }
  0x8e   : > { %v3117_v26 = vld [vmem:[#allocation5 + $0x348] ss:$16 sps:$4 sm:$0xff]   ;;  %v3125_v29 = vld [vmem:[#allocation5 + $0x32c] ss:$16 sps:$4 sm:$0xff]  }
  0x8f   : > { %1131 = vmatpush2.bf16.msra.mxu0 %v3004_v42  ;;  %v3739_v42 = vpack.c.bf16 %v305_v36, %v305_v36  ;;  %v3120_v30 = vld [vmem:[#allocation5 + $0x128] ss:$16 sps:$4 sm:$0xff]  }
  0x90   : > { %1192 = vmatpush2.bf16.msra.mxu1 %v3005_v43  ;;  %1132 = vmatprep.subr.bf16.mxu0 %v3006_v44  ;;  %v3741_v43 = vpack.c.bf16 %v307_v37, %v307_v37  ;;  %v3062_v44 = vld [vmem:[#allocation5 + $0x6c] ss:$16 sps:$4 sm:$0xff]   ;;  %v3126_v36 = vld [vmem:[#allocation5 + $0x108] ss:$16 sps:$4 sm:$0xff]  }
  0x91   : > { %1193 = vmatprep.subr.bf16.mxu1 %v3008_v45  ;;  %v304_v45 = vld [vmem:[%s3685_s10 + $0x80] sm:$0xff]  ;;  %v3129_v37 = vld [vmem:[#allocation5 + $0x308] ss:$16 sps:$4 sm:$0xff]  }
  0x93   : > { %1133 = vmatpush2.bf16.msra.mxu0 %v3010_v50  ;;  %v3749_v50 = vpack.c.bf16 %v304_v45, %v304_v45  ;;  %v3138_v45 = vld [vmem:[#allocation8 + $0xa0] ss:$16 sps:$4 sm:$0xff]  }
  0x94   : > { %1194 = vmatpush2.bf16.msra.mxu1 %v3011_v51  ;;  %1134 = vmatprep.subr.bf16.mxu0 %v3012_v52  ;;  %v3751_v51 = vpack.c.bf16 %v306_v46, %v306_v46  ;;  %v3068_v52 = vld [vmem:[#allocation5 + $0x4c] ss:$16 sps:$4 sm:$0xff]   ;;  %v3143_v46 = vld [vmem:[#allocation8 + $0x84] ss:$16 sps:$4 sm:$0xff]  }
  0x95   : > { %1195 = vmatprep.subr.bf16.mxu1 %v3014_v55  ;;  %v3071_v55 = vld [vmem:[#allocation5 + $0x24c] ss:$16 sps:$4 sm:$0xff]  }
  0x97   : > { %1135 = vmatpush2.bf16.msra.mxu0 %v3016_v56  ;;  %v3066_v56 = vld [vmem:[#allocation5 + $0x48] ss:$16 sps:$4 sm:$0xff]  }
  0x98   : > { %1196 = vmatpush2.bf16.msra.mxu1 %v3017_v57  ;;  %1136 = vmatprep.subr.bf16.mxu0 %v3018_v58  ;;  %v3069_v57 = vld [vmem:[#allocation5 + $0x248] ss:$16 sps:$4 sm:$0xff]   ;;  %v3074_v58 = vld [vmem:[#allocation5 + $0x2c] ss:$16 sps:$4 sm:$0xff]  }
  0x99   : > { %1197 = vmatprep.subr.bf16.mxu1 %v3020_v59  ;;  %v3077_v59 = vld [vmem:[#allocation5 + $0x22c] ss:$16 sps:$4 sm:$0xff]  }
  0x9b   : > { %1137 = vmatpush2.bf16.msra.mxu0 %v3022_v60  ;;  %v3072_v60 = vld [vmem:[#allocation5 + $0x28] ss:$16 sps:$4 sm:$0xff]  }
  0x9c   : > { %1198 = vmatpush2.bf16.msra.mxu1 %v3023_v61  ;;  %1138 = vmatprep.subr.bf16.mxu0 %v3024_v62  ;;  %v3075_v61 = vld [vmem:[#allocation5 + $0x228] ss:$16 sps:$4 sm:$0xff]   ;;  %v3080_v62 = vld [vmem:[#allocation5 + $0xc] ss:$16 sps:$4 sm:$0xff]  }
  0x9d   : > { %1199 = vmatprep.subr.bf16.mxu1 %v3026_v63  ;;  %v3083_v63 = vld [vmem:[#allocation5 + $0x20c] ss:$16 sps:$4 sm:$0xff]  }
  0x9f   : > { %1139 = vmatpush2.bf16.msra.mxu0 %v3028_v0  ;;  %v3078_v0 = vld [vmem:[#allocation5 + $0x8] ss:$16 sps:$4 sm:$0xff]  }
  0xa0   : > { %1200 = vmatpush2.bf16.msra.mxu1 %v3029_v1  ;;  %1140 = vmatprep.subr.bf16.mxu0 %v3030_v2  ;;  %v3081_v1 = vld [vmem:[#allocation5 + $0x208] ss:$16 sps:$4 sm:$0xff]   ;;  %v3086_v2 = vld [vmem:[#allocation5 + $0x1ec] ss:$16 sps:$4 sm:$0xff]  }
  0xa1   : > { %1201 = vmatprep.subr.bf16.mxu1 %v3032_v3  ;;  %v3089_v3 = vld [vmem:[#allocation5 + $0x3ec] ss:$16 sps:$4 sm:$0xff]  }
  0xa3   : > { %1141 = vmatpush2.bf16.msra.mxu0 %v3034_v4  ;;  %v3084_v4 = vld [vmem:[#allocation5 + $0x1e8] ss:$16 sps:$4 sm:$0xff]  }
  0xa4   : > { %1202 = vmatpush2.bf16.msra.mxu1 %v3035_v5  ;;  %1232 = vmatprep.subr.bf16.mxu0 %v3038_v10  ;;  %v3095_v5 = vld [vmem:[#allocation5 + $0x3cc] ss:$16 sps:$4 sm:$0xff]   ;;  %v3096_v10 = vld [vmem:[#allocation5 + $0x1a8] ss:$16 sps:$4 sm:$0xff]  }
  0xa5   : > { %1293 = vmatprep.subr.bf16.mxu1 %v3041_v11  ;;  %v3099_v11 = vld [vmem:[#allocation5 + $0x3a8] ss:$16 sps:$4 sm:$0xff]  }
  0xa6   : > { %1143 = vmatmul.mubr.bf16.vlgmr.msra.gmra.mxu0 %v3716_v15 }
  0xa7   : > { %1204 = vmatmul.mubr.bf16.vlgmr.msra.gmra.mxu1 %v3718_v16  ;;  %1233 = vmatpush1.bf16.msra.mxu0 %v3036_v18  ;;  %v3110_v18 = vld [vmem:[#allocation5 + $0x16c] ss:$16 sps:$4 sm:$0xff]  }
  0xa8   : > { %1294 = vmatpush1.bf16.msra.mxu1 %v3039_v19  ;;  %1234 = vmatprep.subr.bf16.mxu0 %v3044_v20  ;;  %v3113_v19 = vld [vmem:[#allocation5 + $0x36c] ss:$16 sps:$4 sm:$0xff]   ;;  %v3108_v20 = vld [vmem:[#allocation5 + $0x168] ss:$16 sps:$4 sm:$0xff]  }
  0xa9   : > { %1295 = vmatprep.subr.bf16.mxu1 %v3047_v21  ;;  %1152 = vmatprep.mubr.bf16.mxu0 %v3721_v24  ;;  %v3111_v21 = vld [vmem:[#allocation5 + $0x368] ss:$16 sps:$4 sm:$0xff]  }
  0xaa   : > { %1213 = vmatprep.mubr.bf16.mxu1 %v3725_v27 }
  0xab   : > { %1235 = vmatpush1.bf16.msra.mxu0 %v3042_v22  ;;  %v3116_v22 = vld [vmem:[#allocation5 + $0x14c] ss:$16 sps:$4 sm:$0xff]  }
  0xac   : > { %1296 = vmatpush1.bf16.msra.mxu1 %v3045_v23  ;;  %1236 = vmatprep.subr.bf16.mxu0 %v3050_v28  ;;  %v3119_v23 = vld [vmem:[#allocation5 + $0x34c] ss:$16 sps:$4 sm:$0xff]  }
  0xad   : > { %1297 = vmatprep.subr.bf16.mxu1 %v3053_v31  ;;  %v3122_v28 = vld [vmem:[#allocation5 + $0x12c] ss:$16 sps:$4 sm:$0xff]   ;;  %v3123_v31 = vld [vmem:[#allocation5 + $0x328] ss:$16 sps:$4 sm:$0xff]  }
  0xae   : > { %1153 = vmatmul.mubr.bf16.gmra.mxu0 %v3733_v34 }
  0xaf   : > { %1214 = vmatmul.mubr.bf16.gmra.mxu1 %v3735_v35  ;;  %1237 = vmatpush1.bf16.msra.mxu0 %v3048_v32  ;;  %v3128_v32 = vld [vmem:[#allocation5 + $0x10c] ss:$16 sps:$4 sm:$0xff]  }
  0xb0   : > { %1298 = vmatpush1.bf16.msra.mxu1 %v3051_v33  ;;  %1238 = vmatprep.subr.bf16.mxu0 %v3056_v38  ;;  %v3131_v33 = vld [vmem:[#allocation5 + $0x30c] ss:$16 sps:$4 sm:$0xff]   ;;  %v3134_v38 = vld [vmem:[#allocation8 + $0xe4] ss:$16 sps:$4 sm:$0xff]  }
  0xb1   : > { %1299 = vmatprep.subr.bf16.mxu1 %v3059_v39  ;;  %1162 = vmatprep.mubr.bf16.mxu0 %v3739_v42  ;;  %v3132_v39 = vld [vmem:[#allocation8 + $0xe0] ss:$16 sps:$4 sm:$0xff]  }
  0xb2   : > { %1223 = vmatprep.mubr.bf16.mxu1 %v3741_v43 }
  0xb3   : > { %1239 = vmatpush1.bf16.msra.mxu0 %v3054_v40  ;;  %v3137_v40 = vld [vmem:[#allocation8 + $0xc4] ss:$16 sps:$4 sm:$0xff]  }
  0xb4   : > { %1300 = vmatpush1.bf16.msra.mxu1 %v3057_v41  ;;  %1240 = vmatprep.subr.bf16.mxu0 %v3062_v44  ;;  %v3135_v41 = vld [vmem:[#allocation8 + $0xc0] ss:$16 sps:$4 sm:$0xff]   ;;  %v3140_v44 = vld [vmem:[#allocation8 + $0xa4] ss:$16 sps:$4 sm:$0xff]  }
  0xb5   : > { %1301 = vmatprep.subr.bf16.mxu1 %v3065_v47  ;;  %v3149_v47 = vld [vmem:[#allocation8 + $0x44] ss:$16 sps:$4 sm:$0xff]  }
  0xb6   : > { %1163 = vmatmul.mubr.bf16.gmra.mxu0 %v3749_v50 }
  0xb7   : > { %1224 = vmatmul.mubr.bf16.gmra.mxu1 %v3751_v51  ;;  %1241 = vmatpush1.bf16.msra.mxu0 %v3060_v48  ;;  %v3180_v48 = vld [vmem:[#allocation8 + $0x2e0] ss:$16 sps:$4 sm:$0xff]  }
  0xb8   : > { %1302 = vmatpush1.bf16.msra.mxu1 %v3063_v49  ;;  %1242 = vmatprep.subr.bf16.mxu0 %v3068_v52  ;;  %v3150_v49 = vld [vmem:[#allocation8 + $0x20] ss:$16 sps:$4 sm:$0xff]   ;;  %v3194_v52 = vld [vmem:[#allocation8 + $0x2a4] ss:$16 sps:$4 sm:$0xff]  }
  0xb9   : > { %1303 = vmatprep.subr.bf16.mxu1 %v3071_v55  ;;  %1264 = vmatprep.mubr.bf16.mxu0 %v3703_v53  ;;  %v3087_v53 = vld [vmem:[#allocation5 + $0x3e8] ss:$16 sps:$4 sm:$0xff]  }
  0xba   : > { %1325 = vmatprep.mubr.bf16.mxu1 %v3705_v54  ;;  %v3092_v54 = vld [vmem:[#allocation5 + $0x1cc] ss:$16 sps:$4 sm:$0xff]   ;;  %v3155_v55 = vld [vmem:[#allocation8 + $0x4] ss:$16 sps:$4 sm:$0xff]  }
  0xbb   : > { %1243 = vmatpush1.bf16.msra.mxu0 %v3066_v56  ;;  %v3192_v56 = vld [vmem:[#allocation8 + $0x2a0] ss:$16 sps:$4 sm:$0xff]  }
  0xbc   : > { %1304 = vmatpush1.bf16.msra.mxu1 %v3069_v57  ;;  %1244 = vmatprep.subr.bf16.mxu0 %v3074_v58  ;;  %v3200_v57 = vld [vmem:[#allocation8 + $0x284] ss:$16 sps:$4 sm:$0xff]  }
  0xbd   : > { %1305 = vmatprep.subr.bf16.mxu1 %v3077_v59  ;;  %v3158_v58 = vld [vmem:[#allocation8 + $0x1e4] ss:$16 sps:$4 sm:$0xff]   ;;  %v3204_v59 = vld [vmem:[#allocation8 + $0x260] ss:$16 sps:$4 sm:$0xff]  }
  0xbf   : > { %1245 = vmatpush1.bf16.msra.mxu0 %v3072_v60  ;;  %v3206_v60 = vld [vmem:[#allocation8 + $0x264] ss:$16 sps:$4 sm:$0xff]  }
  0xc0   : > { %1306 = vmatpush1.bf16.msra.mxu1 %v3075_v61  ;;  %1246 = vmatprep.subr.bf16.mxu0 %v3080_v62  ;;  %v3156_v61 = vld [vmem:[#allocation8 + $0x1e0] ss:$16 sps:$4 sm:$0xff]   ;;  %v3161_v62 = vld [vmem:[#allocation8 + $0x1c4] ss:$16 sps:$4 sm:$0xff]  }
  0xc1   : > { %1307 = vmatprep.subr.bf16.mxu1 %v3083_v63  ;;  %v3210_v63 = vld [vmem:[#allocation8 + $0x240] ss:$16 sps:$4 sm:$0xff]  }
  0xc3   : > { %1247 = vmatpush1.bf16.msra.mxu0 %v3078_v0  ;;  %v3212_v0 = vld [vmem:[#allocation8 + $0x244] ss:$16 sps:$4 sm:$0xff]  }
  0xc4   : > { %1308 = vmatpush1.bf16.msra.mxu1 %v3081_v1  ;;  %1248 = vmatprep.subr.bf16.mxu0 %v3086_v2  ;;  %v3159_v1 = vld [vmem:[#allocation8 + $0x1c0] ss:$16 sps:$4 sm:$0xff]   ;;  %v3164_v2 = vld [vmem:[#allocation8 + $0x1a4] ss:$16 sps:$4 sm:$0xff]  }
  0xc5   : > { %1309 = vmatprep.subr.bf16.mxu1 %v3089_v3  ;;  %v3216_v3 = vld [vmem:[#allocation8 + $0x220] ss:$16 sps:$4 sm:$0xff]  }
  0xc7   : > { %1249 = vmatpush2.bf16.msra.mxu0 %v3084_v4  ;;  %v3218_v4 = vld [vmem:[#allocation8 + $0x224] ss:$16 sps:$4 sm:$0xff]  }
  0xc8   : > { %1310 = vmatpush2.bf16.msra.mxu1 %v3087_v53  ;;  %1250 = vmatprep.subr.bf16.mxu0 %v3092_v54  ;;  %v3162_v53 = vld [vmem:[#allocation8 + $0x1a0] ss:$16 sps:$4 sm:$0xff]   ;;  %v3167_v54 = vld [vmem:[#allocation8 + $0x184] ss:$16 sps:$4 sm:$0xff]  }
  0xc9   : > { %1311 = vmatprep.subr.bf16.mxu1 %v3095_v5  ;;  %v3222_v5 = vld [vmem:[#allocation8 + $0x200] ss:$16 sps:$4 sm:$0xff]  }
  0xcb   : > { %1251 = vmatpush2.bf16.msra.mxu0 %v3090_v6  ;;  %v3224_v6 = vld [vmem:[#allocation8 + $0x204] ss:$16 sps:$4 sm:$0xff]  }
  0xcc   : > { %1312 = vmatpush2.bf16.msra.mxu1 %v3093_v7  ;;  %1252 = vmatprep.subr.bf16.mxu0 %v3098_v8  ;;  %v3165_v7 = vld [vmem:[#allocation8 + $0x180] ss:$16 sps:$4 sm:$0xff]   ;;  %v3170_v8 = vld [vmem:[#allocation8 + $0x164] ss:$16 sps:$4 sm:$0xff]  }
  0xcd   : > { %1313 = vmatprep.subr.bf16.mxu1 %v3101_v9  ;;  %v3228_v9 = vld [vmem:[#allocation8 + $0x3e0] ss:$16 sps:$4 sm:$0xff]  }
  0xcf   : > { %1253 = vmatpush2.bf16.msra.mxu0 %v3096_v10  ;;  %v3230_v10 = vld [vmem:[#allocation8 + $0x3e4] ss:$16 sps:$4 sm:$0xff]  }
  0xd0   : > { %1314 = vmatpush2.bf16.msra.mxu1 %v3099_v11  ;;  %1254 = vmatprep.subr.bf16.mxu0 %v3104_v12  ;;  %v3168_v11 = vld [vmem:[#allocation8 + $0x160] ss:$16 sps:$4 sm:$0xff]   ;;  %v3173_v12 = vld [vmem:[#allocation8 + $0x144] ss:$16 sps:$4 sm:$0xff]  }
  0xd1   : > { %1315 = vmatprep.subr.bf16.mxu1 %v3107_v13  ;;  %v3234_v13 = vld [vmem:[#allocation8 + $0x3c0] ss:$16 sps:$4 sm:$0xff]  }
  0xd3   : > { %1255 = vmatpush2.bf16.msra.mxu0 %v3102_v14  ;;  %v3236_v14 = vld [vmem:[#allocation8 + $0x3c4] ss:$16 sps:$4 sm:$0xff]  }
  0xd4   : > { %1316 = vmatpush2.bf16.msra.mxu1 %v3105_v17  ;;  %1256 = vmatprep.subr.bf16.mxu0 %v3110_v18  ;;  %v3171_v17 = vld [vmem:[#allocation8 + $0x140] ss:$16 sps:$4 sm:$0xff]   ;;  %v3176_v18 = vld [vmem:[#allocation8 + $0x124] ss:$16 sps:$4 sm:$0xff]  }
  0xd5   : > { %1317 = vmatprep.subr.bf16.mxu1 %v3113_v19  ;;  %v3240_v19 = vld [vmem:[#allocation8 + $0x3a0] ss:$16 sps:$4 sm:$0xff]  }
  0xd7   : > { %1257 = vmatpush2.bf16.msra.mxu0 %v3108_v20  ;;  %v3242_v20 = vld [vmem:[#allocation8 + $0x3a4] ss:$16 sps:$4 sm:$0xff]  }
  0xd8   : > { %1318 = vmatpush2.bf16.msra.mxu1 %v3111_v21  ;;  %1258 = vmatprep.subr.bf16.mxu0 %v3116_v22  ;;  %v3174_v21 = vld [vmem:[#allocation8 + $0x120] ss:$16 sps:$4 sm:$0xff]   ;;  %v3179_v22 = vld [vmem:[#allocation8 + $0x104] ss:$16 sps:$4 sm:$0xff]  }
  0xd9   : > { %1319 = vmatprep.subr.bf16.mxu1 %v3119_v23  ;;  %v3246_v23 = vld [vmem:[#allocation8 + $0x380] ss:$16 sps:$4 sm:$0xff]  }
  0xdb   : > { %1259 = vmatpush2.bf16.msra.mxu0 %v3114_v25  ;;  %v3248_v25 = vld [vmem:[#allocation8 + $0x384] ss:$16 sps:$4 sm:$0xff]  }
  0xdc   : > { %1320 = vmatpush2.bf16.msra.mxu1 %v3117_v26  ;;  %1260 = vmatprep.subr.bf16.mxu0 %v3122_v28  ;;  %v3177_v26 = vld [vmem:[#allocation8 + $0x100] ss:$16 sps:$4 sm:$0xff]   ;;  %v3185_v28 = vld [vmem:[#allocation8 + $0xec] ss:$16 sps:$4 sm:$0xff]  }
  0xdd   : > { %1321 = vmatprep.subr.bf16.mxu1 %v3125_v29  ;;  %v3252_v29 = vld [vmem:[#allocation8 + $0x360] ss:$16 sps:$4 sm:$0xff]  }
  0xdf   : > { %1261 = vmatpush2.bf16.msra.mxu0 %v3120_v30  ;;  %v3254_v30 = vld [vmem:[#allocation8 + $0x364] ss:$16 sps:$4 sm:$0xff]  }
  0xe0   : > { %1322 = vmatpush2.bf16.msra.mxu1 %v3123_v31  ;;  %1262 = vmatprep.subr.bf16.mxu0 %v3128_v32  ;;  %v3260_v31 = vld [vmem:[#allocation8 + $0x344] ss:$16 sps:$4 sm:$0xff]   ;;  %v3258_v32 = vld [vmem:[#allocation8 + $0x340] ss:$16 sps:$4 sm:$0xff]  }
  0xe1   : > { %1323 = vmatprep.subr.bf16.mxu1 %v3131_v33  ;;  %v3266_v33 = vld [vmem:[#allocation8 + $0x324] ss:$16 sps:$4 sm:$0xff]  }
  0xe3   : > { %1263 = vmatpush2.bf16.msra.mxu0 %v3126_v36  ;;  %v3264_v36 = vld [vmem:[#allocation8 + $0x320] ss:$16 sps:$4 sm:$0xff]  }
  0xe4   : > { %1324 = vmatpush2.bf16.msra.mxu1 %v3129_v37  ;;  %2176 = vmatprep.subr.bf16.mxu0 %v3134_v38  ;;  %v3272_v37 = vld [vmem:[#allocation8 + $0x304] ss:$16 sps:$4 sm:$0xff]   ;;  %v3270_v38 = vld [vmem:[#allocation8 + $0x300] ss:$16 sps:$4 sm:$0xff]  }
  0xe6   : > { %1265 = vmatmul.mubr.bf16.vlgmr.msra.gmra.mxu0 %v3716_v15  ;;  %v3141_v15 = vld [vmem:[#allocation8 + $0x80] ss:$16 sps:$4 sm:$0xff]  }
  0xe7   : > { %1326 = vmatmul.mubr.bf16.vlgmr.msra.gmra.mxu1 %v3718_v16  ;;  %1274 = vmatprep.mubr.bf16.mxu0 %v3721_v24  ;;  %v3146_v16 = vld [vmem:[#allocation8 + $0x64] ss:$16 sps:$4 sm:$0xff]   ;;  %v3144_v24 = vld [vmem:[#allocation8 + $0x60] ss:$16 sps:$4 sm:$0xff]  }
  0xe8   : > { %1335 = vmatprep.mubr.bf16.mxu1 %v3725_v27  ;;  %2177 = vmatpush1.bf16.msra.mxu0 %v3132_v39  ;;  %v3182_v27 = vld [vmem:[#allocation8 + $0x2e4] ss:$16 sps:$4 sm:$0xff]   ;;  %v3278_v39 = vld [vmem:[#allocation8 + $0x2ec] ss:$16 sps:$4 sm:$0xff]  }
  0xe9   : > { %2178 = vmatprep.subr.bf16.mxu0 %v3137_v40  ;;  %2237 = vmatprep.subr.bf16.mxu1 %v3182_v27  ;;  %v450_v40 = vlaneseq }
  0xea   : > { %2238 = vmatpush1.bf16.msra.mxu1 %v3180_v48 }
  0xec   : > { %2179 = vmatpush1.bf16.msra.mxu0 %v3135_v41  ;;  %v3767_v41 = vshrl.u32 %v450_v40, 7  ;;  %v3195_v40 = vld [vmem:[#allocation8 + $0xa8] ss:$16 sps:$4 sm:$0xff]  }
  0xed   : > { %2180 = vmatprep.subr.bf16.mxu0 %v3140_v44 }
  0xee   : > { %1275 = vmatmul.mubr.bf16.gmra.mxu0 %v3733_v34  ;;  %v3147_v34 = vld [vmem:[#allocation8 + $0x40] ss:$16 sps:$4 sm:$0xff]   ;;  %v456_v44 = vsub.s32 1, %v3767_v41 }
  0xef   : > { %1336 = vmatmul.mubr.bf16.gmra.mxu1 %v3735_v35  ;;  %1284 = vmatprep.mubr.bf16.mxu0 %v3739_v42  ;;  %v3188_v35 = vld [vmem:[#allocation8 + $0x2c4] ss:$16 sps:$4 sm:$0xff]  }
  0xf0   : > { %1345 = vmatprep.mubr.bf16.mxu1 %v3741_v43  ;;  %2181 = vmatpush1.bf16.msra.mxu0 %v3138_v45  ;;  %v3152_v42 = vld [vmem:[#allocation8 + $0x24] ss:$16 sps:$4 sm:$0xff]   ;;  %v3186_v43 = vld [vmem:[#allocation8 + $0x2c0] ss:$16 sps:$4 sm:$0xff]   ;;  %v3770_v45 = vld [vmem:[#allocation7] sm:$0xf] }
  0xf1   : > { %2182 = vmatprep.subr.bf16.mxu0 %v3143_v46  ;;  %2239 = vmatprep.subr.bf16.mxu1 %v3188_v35  ;;  %v452_v46 = vsub.s32 0, %v3767_v41 }
  0xf2   : > { %2240 = vmatpush1.bf16.msra.mxu1 %v3186_v43 }
  0xf3   : > { %2241 = vmatprep.subr.bf16.mxu1 %v3194_v52 }
  0xf4   : > { %2183 = vmatpush1.bf16.msra.mxu0 %v3141_v15  ;;  %v457_v15 = vrot.slane %v3770_v45, %v456_v44 }
  0xf5   : > { %2184 = vmatprep.subr.bf16.mxu0 %v3146_v16  ;;  %v453_v16 = vrot.slane %v3770_v45, %v452_v46 }
  0xf6   : > { %1285 = vmatmul.mubr.bf16.gmra.mxu0 %v3749_v50  ;;  %2242 = vmatpush1.bf16.msra.mxu1 %v3192_v56  ;;  %v3198_v50 = vld [vmem:[#allocation8 + $0x280] ss:$16 sps:$4 sm:$0xff]  }
  0xf7   : > { %1346 = vmatmul.mubr.bf16.gmra.mxu1 %v3751_v51  ;;  %v3153_v51 = vld [vmem:[#allocation8] ss:$16 sps:$4 sm:$0xff]   ;;  %2243 = vmatprep.subr.bf16.mxu1 %v3200_v57 }
  0xf8   : > { %2185 = vmatpush1.bf16.msra.mxu0 %v3144_v24 }
  0xf9   : > { %2186 = vmatprep.subr.bf16.mxu0 %v3149_v47 }
  0xfa   : > { %2244 = vmatpush1.bf16.msra.mxu1 %v3198_v50 }
  0xfb   : > { %2245 = vmatprep.subr.bf16.mxu1 %v3206_v60 }
  0xfc   : > { %2187 = vmatpush1.bf16.msra.mxu0 %v3147_v34 }
  0xfd   : > { %2188 = vmatprep.subr.bf16.mxu0 %v3152_v42 }
  0xfe   : > { %2246 = vmatpush1.bf16.msra.mxu1 %v3204_v59 }
  0xff   : > { %2247 = vmatprep.subr.bf16.mxu1 %v3212_v0 }
 0x100   : > { %2189 = vmatpush1.bf16.msra.mxu0 %v3150_v49 }
 0x101   : > { %2190 = vmatprep.subr.bf16.mxu0 %v3155_v55 }
 0x102   : > { %2248 = vmatpush1.bf16.msra.mxu1 %v3210_v63 }
 0x103   : > { %2249 = vmatprep.subr.bf16.mxu1 %v3218_v4 }
 0x104   : > { %2191 = vmatpush1.bf16.msra.mxu0 %v3153_v51 }
 0x105   : > { %2192 = vmatprep.subr.bf16.mxu0 %v3158_v58 }
 0x106   : > { %2250 = vmatpush1.bf16.msra.mxu1 %v3216_v3 }
 0x107   : > { %2251 = vmatprep.subr.bf16.mxu1 %v3224_v6 }
 0x108   : > { %2193 = vmatpush2.bf16.msra.mxu0 %v3156_v61 }
 0x109   : > { %2194 = vmatprep.subr.bf16.mxu0 %v3161_v62 }
 0x10a   : > { %2252 = vmatpush1.bf16.msra.mxu1 %v3222_v5 }
 0x10b   : > { %2253 = vmatprep.subr.bf16.mxu1 %v3230_v10 }
 0x10c   : > { %2195 = vmatpush2.bf16.msra.mxu0 %v3159_v1 }
 0x10d   : > { %2196 = vmatprep.subr.bf16.mxu0 %v3164_v2 }
 0x10e   : > { %2254 = vmatpush2.bf16.msra.mxu1 %v3228_v9  ;;  %v3183_v9 = vld [vmem:[#allocation8 + $0xe8] ss:$16 sps:$4 sm:$0xff]  }
 0x10f   : > { %2255 = vmatprep.subr.bf16.mxu1 %v3236_v14 }
 0x110   : > { %2197 = vmatpush2.bf16.msra.mxu0 %v3162_v53 }
 0x111   : > { %2198 = vmatprep.subr.bf16.mxu0 %v3167_v54 }
 0x112   : > { %2256 = vmatpush2.bf16.msra.mxu1 %v3234_v13  ;;  %v3191_v13 = vld [vmem:[#allocation8 + $0xcc] ss:$16 sps:$4 sm:$0xff]  }
 0x113   : > { %2257 = vmatprep.subr.bf16.mxu1 %v3242_v20 }
 0x114   : > { %2199 = vmatpush2.bf16.msra.mxu0 %v3165_v7 }
 0x115   : > { %2200 = vmatprep.subr.bf16.mxu0 %v3170_v8 }
 0x116   : > { %2258 = vmatpush2.bf16.msra.mxu1 %v3240_v19 }
 0x117   : > { %2259 = vmatprep.subr.bf16.mxu1 %v3248_v25  ;;  %v3189_v25 = vld [vmem:[#allocation8 + $0xc8] ss:$16 sps:$4 sm:$0xff]  }
 0x118   : > { %2201 = vmatpush2.bf16.msra.mxu0 %v3168_v11 }
 0x119   : > { %2202 = vmatprep.subr.bf16.mxu0 %v3173_v12 }
 0x11a   : > { %2260 = vmatpush2.bf16.msra.mxu1 %v3246_v23 }
 0x11b   : > { %2261 = vmatprep.subr.bf16.mxu1 %v3254_v30 }
 0x11c   : > { %2203 = vmatpush2.bf16.msra.mxu0 %v3171_v17 }
 0x11d   : > { %2204 = vmatprep.subr.bf16.mxu0 %v3176_v18 }
 0x11e   : > { %2262 = vmatpush2.bf16.msra.mxu1 %v3252_v29  ;;  %v3197_v29 = vld [vmem:[#allocation8 + $0xac] ss:$16 sps:$4 sm:$0xff]  }
 0x11f   : > { %2263 = vmatprep.subr.bf16.mxu1 %v3260_v31 }
 0x120   : > { %2205 = vmatpush2.bf16.msra.mxu0 %v3174_v21 }
 0x121   : > { %2206 = vmatprep.subr.bf16.mxu0 %v3179_v22 }
 0x122   : > { %2264 = vmatpush2.bf16.msra.mxu1 %v3258_v32 }
 0x123   : > { %2265 = vmatprep.subr.bf16.mxu1 %v3266_v33 }
 0x124   : > { %2207 = vmatpush2.bf16.msra.mxu0 %v3177_v26 }
 0x125   : > { %2298 = vmatprep.subr.bf16.mxu0 %v3185_v28 }
 0x126   : > { %2266 = vmatpush2.bf16.msra.mxu1 %v3264_v36 }
 0x127   : > { %2267 = vmatprep.subr.bf16.mxu1 %v3272_v37 }
 0x12a   : > { %2268 = vmatpush2.bf16.msra.mxu1 %v3270_v38 }
 0x12b   : > { %2359 = vmatprep.subr.bf16.mxu1 %v3278_v39 }
 0x166   : > { %v1144_v24 = vpop.f32.mrf.mxu0 }
 0x167   : > { %v1205_v27 = vpop.f32.mrf.mxu1  ;;  %v1145_v35 = vadd.f32 %v1144_v24, %v453_v16 }
 0x168   : > { %v1146_v47 = vpop.f32.mrf.mxu0 }
 0x169   : > { %v1207_v48 = vpop.f32.mrf.mxu1  ;;  %v1147_v34 = vadd.f32 %v1146_v47, %v457_v15  ;;  %v1206_v51 = vadd.f32 %v1205_v27, %v1145_v35  ;;  %v3203_v27 = vld [vmem:[#allocation8 + $0x8c] ss:$16 sps:$4 sm:$0xff]   ;;  %v3201_v35 = vld [vmem:[#allocation8 + $0x88] ss:$16 sps:$4 sm:$0xff]  }
 0x16a   : > { %v1148_v42 = vpop.f32.mrf.mxu0 }
 0x16b   : > { %v1209_v43 = vpop.f32.mrf.mxu1  ;;  %v1149_v49 = vadd.f32 %v1148_v42, %v453_v16  ;;  %v1208_v56 = vadd.f32 %v1207_v48, %v1147_v34  ;;  %v1354_v4 = vmax.f32 %v1206_v51, 0.0  ;;  %v3209_v42 = vld [vmem:[#allocation8 + $0x6c] ss:$16 sps:$4 sm:$0xff]   ;;  %v3225_v51 = vld [vmem:[#allocation8 + $0x8] ss:$16 sps:$4 sm:$0xff]  }
 0x16c   : > { %v1150_v52 = vpop.f32.mrf.mxu0 }
 0x16d   : > { %v1211_v55 = vpop.f32.mrf.mxu1  ;;  %v1210_v50 = vadd.f32 %v1209_v43, %v1149_v49  ;;  %v1151_v57 = vadd.f32 %v1150_v52, %v457_v15  ;;  %v1355_v1 = vmax.f32 %v1208_v56, 0.0  ;;  %v3207_v49 = vld [vmem:[#allocation8 + $0x68] ss:$16 sps:$4 sm:$0xff]   ;;  %v3215_v52 = vld [vmem:[#allocation8 + $0x4c] ss:$16 sps:$4 sm:$0xff]  }
 0x16e   : > { %v1154_v58 = vpop.f32.mrf.mxu0  ;;  %v3221_v56 = vld [vmem:[#allocation8 + $0x2c] ss:$16 sps:$4 sm:$0xff]  }
 0x16f   : > { %v1215_v59 = vpop.f32.mrf.mxu1  ;;  %v1212_v60 = vadd.f32 %v1211_v55, %v1151_v57  ;;  %v1155_v61 = vadd.f32 %v1154_v58, %v453_v16  ;;  %v1358_v62 = vmax.f32 %v1210_v50, 0.0  ;;  %v3213_v55 = vld [vmem:[#allocation8 + $0x48] ss:$16 sps:$4 sm:$0xff]   ;;  %v3227_v57 = vld [vmem:[#allocation8 + $0xc] ss:$16 sps:$4 sm:$0xff]  }
 0x170   : > { %v1156_v63 = vpop.f32.mrf.mxu0  ;;  %v3219_v50 = vld [vmem:[#allocation8 + $0x28] ss:$16 sps:$4 sm:$0xff]   ;;  %v3233_v58 = vld [vmem:[#allocation8 + $0x1ec] ss:$16 sps:$4 sm:$0xff]  }
 0x171   : > { %v1217_v0 = vpop.f32.mrf.mxu1  ;;  %v1359_v2 = vmax.f32 %v1212_v60, 0.0  ;;  %v1157_v3 = vadd.f32 %v1156_v63, %v457_v15  ;;  %v1216_v53 = vadd.f32 %v1215_v59, %v1155_v61  ;;  %v3779_v10 = vpack.c.bf16 %v1358_v62, %v1354_v4  ;;  %v3231_v59 = vld [vmem:[#allocation8 + $0x1e8] ss:$16 sps:$4 sm:$0xff]   ;;  %v3239_v60 = vld [vmem:[#allocation8 + $0x1cc] ss:$16 sps:$4 sm:$0xff]  }
 0x172   : > { %v1158_v54 = vpop.f32.mrf.mxu0  ;;  %v3237_v61 = vld [vmem:[#allocation8 + $0x1c8] ss:$16 sps:$4 sm:$0xff]   ;;  %v3245_v62 = vld [vmem:[#allocation8 + $0x1ac] ss:$16 sps:$4 sm:$0xff]   ;;  %v460_v4 = vsub.s32 2, %v3767_v41 }
 0x173   : > { %v1219_v5 = vpop.f32.mrf.mxu1  ;;  %v1375_v6 = vpack.c.bf16 %v1359_v2, %v1355_v1  ;;  %v1159_v7 = vadd.f32 %v1158_v54, %v453_v16  ;;  %v1218_v8 = vadd.f32 %v1217_v0, %v1157_v3  ;;  %v1362_v18 = vmax.f32 %v1216_v53, 0.0  ;;  %v3243_v63 = vld [vmem:[#allocation8 + $0x1a8] ss:$16 sps:$4 sm:$0xff]   ;;  %v3251_v0 = vld [vmem:[#allocation8 + $0x18c] ss:$16 sps:$4 sm:$0xff]  }
 0x174   : > { %v1160_v11 = vpop.f32.mrf.mxu0  ;;  %v3249_v1 = vld [vmem:[#allocation8 + $0x188] ss:$16 sps:$4 sm:$0xff]   ;;  %v3257_v2 = vld [vmem:[#allocation8 + $0x16c] ss:$16 sps:$4 sm:$0xff]   ;;  %v464_v3 = vsub.s32 3, %v3767_v41 }
 0x175   : > { %v1221_v12 = vpop.f32.mrf.mxu1  ;;  %v1161_v14 = vadd.f32 %v1160_v11, %v457_v15  ;;  %v1220_v17 = vadd.f32 %v1219_v5, %v1159_v7  ;;  %2208 = vmatprep.mubr.bf16.mxu0 %v1375_v6  ;;  %v1363_v21 = vmax.f32 %v1218_v8, 0.0  ;;  %v3255_v53 = vld [vmem:[#allocation8 + $0x168] ss:$16 sps:$4 sm:$0xff]   ;;  %v3263_v54 = vld [vmem:[#allocation8 + $0x14c] ss:$16 sps:$4 sm:$0xff]  }
 0x176   : > { %2209 = vmatmul.mubr.bf16.vlgmr.msra.gmra.mxu0 %v3779_v10  ;;  %v1164_v19 = vpop.f32.mrf.mxu0  ;;  %v3799_v5 = vrot.slane %v3770_v45, %v464_v3 }
 0x177   : > { %v1225_v20 = vpop.f32.mrf.mxu1  ;;  %v1366_v22 = vmax.f32 %v1220_v17, 0.0  ;;  %v1222_v23 = vadd.f32 %v1221_v12, %v1161_v14  ;;  %2299 = vmatpush1.bf16.msra.mxu0 %v3183_v9  ;;  %v1165_v26 = vadd.f32 %v1164_v19, %v453_v16  ;;  %v3261_v9 = vld [vmem:[#allocation8 + $0x148] ss:$16 sps:$4 sm:$0xff]  }
 0x178   : > { %2300 = vmatprep.subr.bf16.mxu0 %v3191_v13  ;;  %v1166_v28 = vpop.f32.mrf.mxu0  ;;  %v3269_v13 = vld [vmem:[#allocation8 + $0x12c] ss:$16 sps:$4 sm:$0xff]  }
 0x179   : > { %v1227_v30 = vpop.f32.mrf.mxu1  ;;  %v1367_v31 = vmax.f32 %v1222_v23, 0.0  ;;  %v1167_v32 = vadd.f32 %v1166_v28, %v457_v15  ;;  %v3782_v33 = vpack.c.bf16 %v1366_v22, %v1362_v18  ;;  %v1226_v36 = vadd.f32 %v1225_v20, %v1165_v26  ;;  %v3275_v23 = vld [vmem:[#allocation8 + $0x10c] ss:$16 sps:$4 sm:$0xff]  }
 0x17a   : > { %v1168_v37 = vpop.f32.mrf.mxu0 }
 0x17b   : > { %v1229_v38 = vpop.f32.mrf.mxu1  ;;  %v3784_v39 = vpack.c.bf16 %v1367_v31, %v1363_v21  ;;  %2301 = vmatpush1.bf16.msra.mxu0 %v3189_v25  ;;  %v1228_v24 = vadd.f32 %v1227_v30, %v1167_v32  ;;  %v1370_v34 = vmax.f32 %v1226_v36, 0.0  ;;  %v3267_v21 = vld [vmem:[#allocation8 + $0x128] ss:$16 sps:$4 sm:$0xff]  }
 0x17c   : > { %2302 = vmatprep.subr.bf16.mxu0 %v3197_v29  ;;  %v1169_v47 = vpop.f32.mrf.mxu0  ;;  %v3273_v37 = vld [vmem:[#allocation8 + $0x108] ss:$16 sps:$4 sm:$0xff]  }
 0x17d   : > { %v1230_v16 = vpop.f32.mrf.mxu1  ;;  %2218 = vmatprep.mubr.bf16.mxu0 %v3784_v39  ;;  %v1371_v48 = vmax.f32 %v1228_v24, 0.0  ;;  %v3791_v43 = vpack.c.bf16 %v1370_v34, %v1370_v34 }
 0x17e   : > { %2219 = vmatmul.mubr.bf16.gmra.mxu0 %v3782_v33 }
 0x17f   : > { %v3788_v15 = vpack.c.bf16 %v1371_v48, %v1371_v48  ;;  %2303 = vmatpush1.bf16.msra.mxu0 %v3195_v40 }
 0x180   : > { %2304 = vmatprep.subr.bf16.mxu0 %v3203_v27 }
 0x181   : > { %2228 = vmatprep.mubr.bf16.mxu0 %v3788_v15 }
 0x183   : > { %2305 = vmatpush1.bf16.msra.mxu0 %v3201_v35 }
 0x184   : > { %2306 = vmatprep.subr.bf16.mxu0 %v3209_v42 }
 0x186   : > { %2229 = vmatmul.mubr.bf16.gmra.mxu0 %v3791_v43 }
 0x187   : > { %2307 = vmatpush1.bf16.msra.mxu0 %v3207_v49  ;;  %2330 = vmatprep.mubr.bf16.mxu0 %v1375_v6  ;;  %v3804_v6 = vrot.slane %v3770_v45, %v460_v4 }
 0x188   : > { %2308 = vmatprep.subr.bf16.mxu0 %v3215_v52 }
 0x18b   : > { %2309 = vmatpush1.bf16.msra.mxu0 %v3213_v55 }
 0x18c   : > { %2310 = vmatprep.subr.bf16.mxu0 %v3221_v56  ;;  %v3276_v56 = vld [vmem:[#allocation8 + $0x2e8] ss:$16 sps:$4 sm:$0xff]  }
 0x18f   : > { %2311 = vmatpush1.bf16.msra.mxu0 %v3219_v50 }
 0x190   : > { %2312 = vmatprep.subr.bf16.mxu0 %v3227_v57 }
 0x193   : > { %2313 = vmatpush1.bf16.msra.mxu0 %v3225_v51 }
 0x194   : > { %2314 = vmatprep.subr.bf16.mxu0 %v3233_v58  ;;  %v3281_v58 = vld [vmem:[#allocation8 + $0x2cc] ss:$16 sps:$4 sm:$0xff]  }
 0x197   : > { %2315 = vmatpush2.bf16.msra.mxu0 %v3231_v59 }
 0x198   : > { %2316 = vmatprep.subr.bf16.mxu0 %v3239_v60 }
 0x19b   : > { %2317 = vmatpush2.bf16.msra.mxu0 %v3237_v61 }
 0x19c   : > { %2318 = vmatprep.subr.bf16.mxu0 %v3245_v62 }
 0x19f   : > { %2319 = vmatpush2.bf16.msra.mxu0 %v3243_v63 }
 0x1a0   : > { %2320 = vmatprep.subr.bf16.mxu0 %v3251_v0 }
 0x1a3   : > { %2321 = vmatpush2.bf16.msra.mxu0 %v3249_v1 }
 0x1a4   : > { %2322 = vmatprep.subr.bf16.mxu0 %v3257_v2 }
 0x1a6   : > { %v1266_v7 = vpop.f32.mrf.mxu0 }
 0x1a7   : > { %v1327_v8 = vpop.f32.mrf.mxu1  ;;  %2323 = vmatpush2.bf16.msra.mxu0 %v3255_v53  ;;  %v1267_v17 = vadd.f32 %v1266_v7, %v3804_v6  ;;  %v3279_v53 = vld [vmem:[#allocation8 + $0x2c8] ss:$16 sps:$4 sm:$0xff]  }
 0x1a8   : > { %v1268_v11 = vpop.f32.mrf.mxu0  ;;  %2324 = vmatprep.subr.bf16.mxu0 %v3263_v54 }
 0x1a9   : > { %v1329_v12 = vpop.f32.mrf.mxu1  ;;  %v1269_v14 = vadd.f32 %v1268_v11, %v3799_v5  ;;  %v1328_v29 = vadd.f32 %v1327_v8, %v1267_v17  ;;  %v3284_v8 = vld [vmem:[#allocation8 + $0x2ac] ss:$16 sps:$4 sm:$0xff]  }
 0x1aa   : > { %v1270_v18 = vpop.f32.mrf.mxu0 }
 0x1ab   : > { %v1331_v19 = vpop.f32.mrf.mxu1  ;;  %v1271_v20 = vadd.f32 %v1270_v18, %v3804_v6  ;;  %2325 = vmatpush2.bf16.msra.mxu0 %v3261_v9  ;;  %v1330_v25 = vadd.f32 %v1329_v12, %v1269_v14  ;;  %v1356_v48 = vmax.f32 %v1328_v29, 0.0  ;;  %v3293_v29 = vld [vmem:[#allocation8 + $0x24c] ss:$16 sps:$4 sm:$0xff]  }
 0x1ac   : > { %v1272_v45 = vpop.f32.mrf.mxu0  ;;  %2326 = vmatprep.subr.bf16.mxu0 %v3269_v13 }
 0x1ad   : > { %v1333_v22 = vpop.f32.mrf.mxu1  ;;  %v1332_v26 = vadd.f32 %v1331_v19, %v1271_v20  ;;  %v1273_v28 = vadd.f32 %v1272_v45, %v3799_v5  ;;  %v1357_v27 = vmax.f32 %v1330_v25, 0.0  ;;  %v3287_v20 = vld [vmem:[#allocation8 + $0x28c] ss:$16 sps:$4 sm:$0xff]  }
 0x1ae   : > { %v1276_v30 = vpop.f32.mrf.mxu0  ;;  %v3290_v25 = vld [vmem:[#allocation8 + $0x26c] ss:$16 sps:$4 sm:$0xff]  }
 0x1af   : > { %v1337_v31 = vpop.f32.mrf.mxu1  ;;  %v1334_v32 = vadd.f32 %v1333_v22, %v1273_v28  ;;  %v1277_v36 = vadd.f32 %v1276_v30, %v3804_v6  ;;  %2327 = vmatpush2.bf16.msra.mxu0 %v3267_v21  ;;  %v1360_v38 = vmax.f32 %v1332_v26, 0.0  ;;  %v3288_v28 = vld [vmem:[#allocation8 + $0x268] ss:$16 sps:$4 sm:$0xff]   ;;  %v3296_v30 = vld [vmem:[#allocation8 + $0x22c] ss:$16 sps:$4 sm:$0xff]  }
 0x1b0   : > { %v1278_v40 = vpop.f32.mrf.mxu0  ;;  %2328 = vmatprep.subr.bf16.mxu0 %v3275_v23  ;;  %v3285_v23 = vld [vmem:[#allocation8 + $0x288] ss:$16 sps:$4 sm:$0xff]  }
 0x1b1   : > { %v1339_v24 = vpop.f32.mrf.mxu1  ;;  %v1361_v47 = vmax.f32 %v1334_v32, 0.0  ;;  %v1279_v16 = vadd.f32 %v1278_v40, %v3799_v5  ;;  %v1338_v34 = vadd.f32 %v1337_v31, %v1277_v36  ;;  %v3813_v50 = vpack.c.bf16 %v1360_v38, %v1356_v48  ;;  %v3299_v31 = vld [vmem:[#allocation8 + $0x20c] ss:$16 sps:$4 sm:$0xff]   ;;  %v3297_v32 = vld [vmem:[#allocation8 + $0x208] ss:$16 sps:$4 sm:$0xff]  }
 0x1b2   : > { %v1280_v35 = vpop.f32.mrf.mxu0  ;;  %v3302_v36 = vld [vmem:[#allocation8 + $0x3ec] ss:$16 sps:$4 sm:$0xff]   ;;  %v3312_v48 = vld [vmem:[#allocation8 + $0x368] ss:$16 sps:$4 sm:$0xff]  }
 0x1b3   : > { %v1341_v42 = vpop.f32.mrf.mxu1  ;;  %v1377_v49 = vpack.c.bf16 %v1361_v47, %v1357_v27  ;;  %v1281_v52 = vadd.f32 %v1280_v35, %v3804_v6  ;;  %v1340_v55 = vadd.f32 %v1339_v24, %v1279_v16  ;;  %2329 = vmatpush2.bf16.msra.mxu0 %v3273_v37  ;;  %v1364_v61 = vmax.f32 %v1338_v34, 0.0  ;;  %v3300_v37 = vld [vmem:[#allocation8 + $0x3e8] ss:$16 sps:$4 sm:$0xff]   ;;  %v3305_v38 = vld [vmem:[#allocation8 + $0x3cc] ss:$16 sps:$4 sm:$0xff]  }
 0x1b4   : > { %v1282_v57 = vpop.f32.mrf.mxu0  ;;  %v3308_v40 = vld [vmem:[#allocation8 + $0x3ac] ss:$16 sps:$4 sm:$0xff]   ;;  %v3306_v24 = vld [vmem:[#allocation8 + $0x3a8] ss:$16 sps:$4 sm:$0xff]  }
 0x1b5   : > { %v1343_v51 = vpop.f32.mrf.mxu1  ;;  %v1283_v59 = vadd.f32 %v1282_v57, %v3799_v5  ;;  %v1342_v60 = vadd.f32 %v1341_v42, %v1281_v52  ;;  %2269 = vmatprep.mubr.bf16.mxu1 %v1377_v49  ;;  %v1365_v0 = vmax.f32 %v1340_v55, 0.0  ;;  %v3311_v27 = vld [vmem:[#allocation8 + $0x38c] ss:$16 sps:$4 sm:$0xff]   ;;  %v3309_v47 = vld [vmem:[#allocation8 + $0x388] ss:$16 sps:$4 sm:$0xff]  }
 0x1b6   : > { %2331 = vmatmul.mubr.bf16.vlgmr.msra.gmra.mxu0 %v3779_v10  ;;  %2270 = vmatmul.mubr.bf16.vlgmr.msra.gmra.mxu1 %v3813_v50  ;;  %v1286_v62 = vpop.f32.mrf.mxu0  ;;  %v3314_v16 = vld [vmem:[#allocation8 + $0x36c] ss:$16 sps:$4 sm:$0xff]   ;;  %v3315_v35 = vld [vmem:[#allocation8 + $0x348] ss:$16 sps:$4 sm:$0xff]  }
 0x1b7   : > { %v1347_v63 = vpop.f32.mrf.mxu1  ;;  %v1368_v1 = vmax.f32 %v1342_v60, 0.0  ;;  %v1344_v2 = vadd.f32 %v1343_v51, %v1283_v59  ;;  %2340 = vmatprep.mubr.bf16.mxu0 %v3784_v39  ;;  %2360 = vmatpush1.bf16.msra.mxu1 %v3276_v56  ;;  %v1287_v54 = vadd.f32 %v1286_v62, %v3804_v6  ;;  %v3282_v39 = vld [vmem:[#allocation8 + $0x2a8] ss:$16 sps:$4 sm:$0xff]   ;;  %v3317_v34 = vld [vmem:[#allocation8 + $0x34c] ss:$16 sps:$4 sm:$0xff]  }
 0x1b8   : > { %2361 = vmatprep.subr.bf16.mxu1 %v3281_v58  ;;  %v1288_v7 = vpop.f32.mrf.mxu0  ;;  %v3320_v42 = vld [vmem:[#allocation8 + $0x32c] ss:$16 sps:$4 sm:$0xff]   ;;  %v3321_v55 = vld [vmem:[#allocation8 + $0x308] ss:$16 sps:$4 sm:$0xff]  }
 0x1b9   : > { %v1349_v9 = vpop.f32.mrf.mxu1  ;;  %v1369_v11 = vmax.f32 %v1344_v2, 0.0  ;;  %v1289_v10 = vadd.f32 %v1288_v7, %v3799_v5  ;;  %v3821_v12 = vpack.c.bf16 %v1368_v1, %v1364_v61  ;;  %v1348_v13 = vadd.f32 %v1347_v63, %v1287_v54  ;;  %v3323_v52 = vld [vmem:[#allocation8 + $0x30c] ss:$16 sps:$4 sm:$0xff]  }
 0x1ba   : > { %v1290_v14 = vpop.f32.mrf.mxu0 }
 0x1bb   : > { %v1351_v17 = vpop.f32.mrf.mxu1  ;;  %v3823_v18 = vpack.c.bf16 %v1369_v11, %v1365_v0  ;;  %2362 = vmatpush1.bf16.msra.mxu1 %v3279_v53  ;;  %v1350_v19 = vadd.f32 %v1349_v9, %v1289_v10  ;;  %v1372_v22 = vmax.f32 %v1348_v13, 0.0 }
 0x1bc   : > { %2363 = vmatprep.subr.bf16.mxu1 %v3284_v8  ;;  %v1291_v6 = vpop.f32.mrf.mxu0 }
 0x1bd   : > { %v1352_v21 = vpop.f32.mrf.mxu1  ;;  %2279 = vmatprep.mubr.bf16.mxu1 %v3823_v18  ;;  %v1373_v45 = vmax.f32 %v1350_v19, 0.0  ;;  %v1384_v26 = vpack.c.bf16 %v1372_v22, %v1372_v22 }
 0x1be   : > { %2341 = vmatmul.mubr.bf16.gmra.mxu0 %v3782_v33  ;;  %2280 = vmatmul.mubr.bf16.gmra.mxu1 %v3821_v12  ;;  %v3291_v33 = vld [vmem:[#allocation8 + $0x248] ss:$16 sps:$4 sm:$0xff]  }
 0x1bf   : > { %v1385_v5 = vpack.c.bf16 %v1373_v45, %v1373_v45  ;;  %2350 = vmatprep.mubr.bf16.mxu0 %v3788_v15  ;;  %2364 = vmatpush1.bf16.msra.mxu1 %v3282_v39  ;;  %v3294_v15 = vld [vmem:[#allocation8 + $0x228] ss:$16 sps:$4 sm:$0xff]  }
 0x1c0   : > { %2365 = vmatprep.subr.bf16.mxu1 %v3287_v20 }
 0x1c1   : > { %2289 = vmatprep.mubr.bf16.mxu1 %v1385_v5 }
 0x1c3   : > { %2366 = vmatpush1.bf16.msra.mxu1 %v3285_v23 }
 0x1c4   : > { %2367 = vmatprep.subr.bf16.mxu1 %v3290_v25 }
 0x1c6   : > { %2351 = vmatmul.mubr.bf16.gmra.mxu0 %v3791_v43  ;;  %2290 = vmatmul.mubr.bf16.gmra.mxu1 %v1384_v26  ;;  %v3303_v43 = vld [vmem:[#allocation8 + $0x3c8] ss:$16 sps:$4 sm:$0xff]  }
 0x1c7   : > { %2368 = vmatpush1.bf16.msra.mxu1 %v3288_v28  ;;  %2391 = vmatprep.mubr.bf16.mxu1 %v1377_v49  ;;  %v3318_v49 = vld [vmem:[#allocation8 + $0x328] ss:$16 sps:$4 sm:$0xff]  }
 0x1c8   : > { %2369 = vmatprep.subr.bf16.mxu1 %v3293_v29 }
 0x1cb   : > { %2370 = vmatpush1.bf16.msra.mxu1 %v3291_v33 }
 0x1cc   : > { %2371 = vmatprep.subr.bf16.mxu1 %v3296_v30 }
 0x1cf   : > { %2372 = vmatpush1.bf16.msra.mxu1 %v3294_v15 }
 0x1d0   : > { %2373 = vmatprep.subr.bf16.mxu1 %v3299_v31 }
 0x1d3   : > { %2374 = vmatpush1.bf16.msra.mxu1 %v3297_v32 }
 0x1d4   : > { %2375 = vmatprep.subr.bf16.mxu1 %v3302_v36 }
 0x1d7   : > { %2376 = vmatpush2.bf16.msra.mxu1 %v3300_v37 }
 0x1d8   : > { %2377 = vmatprep.subr.bf16.mxu1 %v3305_v38 }
 0x1db   : > { %2378 = vmatpush2.bf16.msra.mxu1 %v3303_v43 }
 0x1dc   : > { %2379 = vmatprep.subr.bf16.mxu1 %v3308_v40 }
 0x1df   : > { %2380 = vmatpush2.bf16.msra.mxu1 %v3306_v24 }
 0x1e0   : > { %2381 = vmatprep.subr.bf16.mxu1 %v3311_v27 }
 0x1e3   : > { %2382 = vmatpush2.bf16.msra.mxu1 %v3309_v47 }
 0x1e4   : > { %2383 = vmatprep.subr.bf16.mxu1 %v3314_v16 }
 0x1e7   : > { %2384 = vmatpush2.bf16.msra.mxu1 %v3312_v48 }
 0x1e8   : > { %2385 = vmatprep.subr.bf16.mxu1 %v3317_v34 }
 0x1eb   : > { %2386 = vmatpush2.bf16.msra.mxu1 %v3315_v35 }
 0x1ec   : > { %2387 = vmatprep.subr.bf16.mxu1 %v3320_v42 }
 0x1ef   : > { %2388 = vmatpush2.bf16.msra.mxu1 %v3318_v49 }
 0x1f0   : > { %2389 = vmatprep.subr.bf16.mxu1 %v3323_v52 }
 0x1f3   : > { %2390 = vmatpush2.bf16.msra.mxu1 %v3321_v55 }
 0x1f6   : > { %2392 = vmatmul.mubr.bf16.vlgmr.msra.gmra.mxu1 %v3813_v50  ;;  %v3836_v50 = vld [vmem:[%s3933_s4] sm:$0xf] }
 0x1f7   : > { %2401 = vmatprep.mubr.bf16.mxu1 %v3823_v18  ;;  %v1519_v53 = vrot.slane %v3836_v50, %v452_v46  ;;  %v1523_v54 = vrot.slane %v3836_v50, %v456_v44 }
 0x1fe   : > { %2402 = vmatmul.mubr.bf16.gmra.mxu1 %v3821_v12 }
 0x1ff   : > { %2411 = vmatprep.mubr.bf16.mxu1 %v1385_v5 }
 0x206   : > { %2412 = vmatmul.mubr.bf16.gmra.mxu1 %v1384_v26 }
 0x236   : > { %v2210_v56 = vpop.f32.mrf.mxu0 }
 0x237   : > { %v2211_v7 = vadd.f32 %v2210_v56, %v1519_v53 }
 0x238   : > { %v2212_v57 = vpop.f32.mrf.mxu0 }
 0x239   : > { %v2213_v11 = vadd.f32 %v2212_v57, %v1523_v54 }
 0x23a   : > { %v2214_v51 = vpop.f32.mrf.mxu0 }
 0x23b   : > { %v2215_v14 = vadd.f32 %v2214_v51, %v1519_v53 }
 0x23c   : > { %v2216_v58 = vpop.f32.mrf.mxu0 }
 0x23d   : > { %v2217_v20 = vadd.f32 %v2216_v58, %v1523_v54 }
 0x23e   : > { %v2220_v59 = vpop.f32.mrf.mxu0 }
 0x23f   : > { %v2221_v45 = vadd.f32 %v2220_v59, %v1519_v53 }
 0x240   : > { %v2222_v60 = vpop.f32.mrf.mxu0 }
 0x241   : > { %v2223_v26 = vadd.f32 %v2222_v60, %v1523_v54 }
 0x242   : > { %v2224_v61 = vpop.f32.mrf.mxu0 }
 0x243   : > { %v2225_v15 = vadd.f32 %v2224_v61, %v1519_v53 }
 0x244   : > { %v2226_v62 = vpop.f32.mrf.mxu0 }
 0x245   : > { %v2227_v38 = vadd.f32 %v2226_v62, %v1523_v54 }
 0x246   : > { %v2230_v63 = vpop.f32.mrf.mxu0 }
 0x247   : > { %v2231_v47 = vadd.f32 %v2230_v63, %v1519_v53  ;;  %v1527_v63 = vrot.slane %v3836_v50, %v460_v4 }
 0x248   : > { %v2232_v0 = vpop.f32.mrf.mxu0 }
 0x249   : > { %v2233_v42 = vadd.f32 %v2232_v0, %v1523_v54  ;;  %v1531_v0 = vrot.slane %v3836_v50, %v464_v3 }
 0x24a   : > { %v2234_v1 = vpop.f32.mrf.mxu0 }
 0x24c   : > { %v2235_v2 = vpop.f32.mrf.mxu0 }
 0x276   : > { %v3844_v8 = vpop.f32.mrf.mxu0  ;;  %v2271_v9 = vpop.f32.mrf.mxu1 }
 0x277   : > { %v2272_v10 = vadd.f32 %v2271_v9, %v2211_v7  ;;  %v2333_v1 = vadd.f32 %v3844_v8, %v1527_v63 }
 0x278   : > { %v3846_v12 = vpop.f32.mrf.mxu0  ;;  %v2273_v13 = vpop.f32.mrf.mxu1 }
 0x279   : > { %v2420_v17 = vmax.f32 %v2272_v10, 0.0  ;;  %v2274_v18 = vadd.f32 %v2273_v13, %v2213_v11  ;;  %v2335_v53 = vadd.f32 %v3846_v12, %v1531_v0 }
 0x27a   : > { %v2336_v39 = vpop.f32.mrf.mxu0  ;;  %v2275_v19 = vpop.f32.mrf.mxu1 }
 0x27b   : > { %2440 = vst [vmem:[%s3850_s13] sm:$0xff] %v2420_v17  ;;  %v2421_v44 = vmax.f32 %v2274_v18, 0.0  ;;  %v2276_v46 = vadd.f32 %v2275_v19, %v2215_v14  ;;  %v2337_v9 = vadd.f32 %v2336_v39, %v1527_v63 }
 0x27c   : > { %v2338_v6 = vpop.f32.mrf.mxu0  ;;  %v2277_v21 = vpop.f32.mrf.mxu1 }
 0x27d   : > { %2441 = vst [vmem:[%s3850_s13 + $0x8] sm:$0xff] %v2421_v44  ;;  %v2424_v22 = vmax.f32 %v2276_v46, 0.0  ;;  %v2278_v5 = vadd.f32 %v2277_v21, %v2217_v20  ;;  %v2339_v14 = vadd.f32 %v2338_v6, %v1531_v0 }
 0x27e   : > { %v2342_v23 = vpop.f32.mrf.mxu0  ;;  %v2281_v25 = vpop.f32.mrf.mxu1 }
 0x27f   : > { %2444 = vst [vmem:[%s3850_s13 + $0x20] sm:$0xff] %v2424_v22  ;;  %v2425_v28 = vmax.f32 %v2278_v5, 0.0  ;;  %v2282_v29 = vadd.f32 %v2281_v25, %v2221_v45  ;;  %v2343_v3 = vadd.f32 %v2342_v23, %v1527_v63 }
 0x280   : > { %v2344_v33 = vpop.f32.mrf.mxu0  ;;  %v2283_v30 = vpop.f32.mrf.mxu1 }
 0x281   : > { %2445 = vst [vmem:[%s3850_s13 + $0x28] sm:$0xff] %v2425_v28  ;;  %v2428_v31 = vmax.f32 %v2282_v29, 0.0  ;;  %v2284_v32 = vadd.f32 %v2283_v30, %v2223_v26  ;;  %v2345_v12 = vadd.f32 %v2344_v33, %v1531_v0 }
 0x282   : > { %v2346_v36 = vpop.f32.mrf.mxu0  ;;  %v2285_v37 = vpop.f32.mrf.mxu1 }
 0x283   : > { %2448 = vst [vmem:[%s3850_s13 + $0x40] sm:$0xff] %v2428_v31  ;;  %v2429_v43 = vmax.f32 %v2284_v32, 0.0  ;;  %v2286_v40 = vadd.f32 %v2285_v37, %v2225_v15  ;;  %v2347_v44 = vadd.f32 %v2346_v36, %v1527_v63 }
 0x284   : > { %v2348_v24 = vpop.f32.mrf.mxu0  ;;  %v2287_v27 = vpop.f32.mrf.mxu1 }
 0x285   : > { %2449 = vst [vmem:[%s3850_s13 + $0x48] sm:$0xff] %v2429_v43  ;;  %v2432_v16 = vmax.f32 %v2286_v40, 0.0  ;;  %v2288_v48 = vadd.f32 %v2287_v27, %v2227_v38  ;;  %v2349_v45 = vadd.f32 %v2348_v24, %v1531_v0 }
 0x286   : > { %v2352_v34 = vpop.f32.mrf.mxu0  ;;  %v2291_v35 = vpop.f32.mrf.mxu1 }
 0x287   : > { %2452 = vst [vmem:[%s3850_s13 + $0x60] sm:$0xff] %v2432_v16  ;;  %v2433_v49 = vmax.f32 %v2288_v48, 0.0  ;;  %v2292_v52 = vadd.f32 %v2291_v35, %v2231_v47  ;;  %v2353_v25 = vadd.f32 %v2352_v34, %v1527_v63 }
 0x288   : > { %v2354_v55 = vpop.f32.mrf.mxu0  ;;  %v2293_v56 = vpop.f32.mrf.mxu1 }
 0x289   : > { %2453 = vst [vmem:[%s3850_s13 + $0x68] sm:$0xff] %v2433_v49  ;;  %v2436_v57 = vmax.f32 %v2292_v52, 0.0  ;;  %v2294_v51 = vadd.f32 %v2293_v56, %v2233_v42  ;;  %v2355_v33 = vadd.f32 %v2354_v55, %v1531_v0 }
 0x28a   : > { %v2356_v58 = vpop.f32.mrf.mxu0  ;;  %v2295_v59 = vpop.f32.mrf.mxu1 }
 0x28b   : > { %2456 = vst [vmem:[%s3850_s13 + $0x80] sm:$0xff] %v2436_v57  ;;  %v2437_v60 = vmax.f32 %v2294_v51, 0.0 }
 0x28c   : > { %v2357_v61 = vpop.f32.mrf.mxu0  ;;  %v2296_v62 = vpop.f32.mrf.mxu1 }
 0x28d   : > { %2457 = vst [vmem:[%s3850_s13 + $0x88] sm:$0xff] %v2437_v60 }
 0x2b6   : > { %v2393_v2 = vpop.f32.mrf.mxu1 }
 0x2b7   : > { %v2394_v54 = vadd.f32 %v2393_v2, %v2333_v1 }
 0x2b8   : > { %v2395_v7 = vpop.f32.mrf.mxu1 }
 0x2b9   : > { %v2422_v11 = vmax.f32 %v2394_v54, 0.0  ;;  %v2396_v10 = vadd.f32 %v2395_v7, %v2335_v53 }
 0x2ba   : > { %v2397_v13 = vpop.f32.mrf.mxu1 }
 0x2bb   : > { %2442 = vst [vmem:[%s3850_s13 + $0x10] sm:$0xff] %v2422_v11  ;;  %v2423_v4 = vmax.f32 %v2396_v10, 0.0  ;;  %v2398_v41 = vadd.f32 %v2397_v13, %v2337_v9 }
 0x2bc   : > { %v2399_v17 = vpop.f32.mrf.mxu1 }
 0x2bd   : > { %2443 = vst [vmem:[%s3850_s13 + $0x18] sm:$0xff] %v2423_v4  ;;  %v2426_v50 = vmax.f32 %v2398_v41, 0.0  ;;  %v2400_v8 = vadd.f32 %v2399_v17, %v2339_v14 }
 0x2be   : > { %v2403_v18 = vpop.f32.mrf.mxu1 }
 0x2bf   : > { %2446 = vst [vmem:[%s3850_s13 + $0x30] sm:$0xff] %v2426_v50  ;;  %v2427_v19 = vmax.f32 %v2400_v8, 0.0  ;;  %v2404_v39 = vadd.f32 %v2403_v18, %v2343_v3 }
 0x2c0   : > { %v2405_v20 = vpop.f32.mrf.mxu1 }
 0x2c1   : > { %2447 = vst [vmem:[%s3850_s13 + $0x38] sm:$0xff] %v2427_v19  ;;  %v2430_v46 = vmax.f32 %v2404_v39, 0.0  ;;  %v2406_v6 = vadd.f32 %v2405_v20, %v2345_v12 }
 0x2c2   : > { %v2407_v21 = vpop.f32.mrf.mxu1 }
 0x2c3   : > { %2450 = vst [vmem:[%s3850_s13 + $0x50] sm:$0xff] %v2430_v46  ;;  %v2431_v22 = vmax.f32 %v2406_v6, 0.0  ;;  %v2408_v5 = vadd.f32 %v2407_v21, %v2347_v44 }
 0x2c4   : > { %v2409_v23 = vpop.f32.mrf.mxu1 }
 0x2c5   : > { %2451 = vst [vmem:[%s3850_s13 + $0x58] sm:$0xff] %v2431_v22  ;;  %v2434_v26 = vmax.f32 %v2408_v5, 0.0  ;;  %v2410_v28 = vadd.f32 %v2409_v23, %v2349_v45 }
 0x2c6   : > { %v2413_v29 = vpop.f32.mrf.mxu1 }
 0x2c7   : > { %2454 = vst [vmem:[%s3850_s13 + $0x70] sm:$0xff] %v2434_v26  ;;  %v2435_v30 = vmax.f32 %v2410_v28, 0.0  ;;  %v2414_v15 = vadd.f32 %v2413_v29, %v2353_v25 }
 0x2c8   : > { %v2415_v31 = vpop.f32.mrf.mxu1 }
 0x2c9   : > { %2455 = vst [vmem:[%s3850_s13 + $0x78] sm:$0xff] %v2435_v30  ;;  %v2438_v32 = vmax.f32 %v2414_v15, 0.0  ;;  %v2416_v36 = vadd.f32 %v2415_v31, %v2355_v33 }
 0x2ca   : > { %v2417_v37 = vpop.f32.mrf.mxu1 }
 0x2cb   : > { %2458 = vst [vmem:[%s3850_s13 + $0x90] sm:$0xff] %v2438_v32  ;;  %v2439_v38 = vmax.f32 %v2416_v36, 0.0 }
 0x2cc   : > { %v2418_v43 = vpop.f32.mrf.mxu1 }
 0x2cd   : > { %2459 = vst [vmem:[%s3850_s13 + $0x98] sm:$0xff] %v2439_v38 }
 0x2ce   : > { %3443 = shalt.err (!%p3440_p9)
}
 0x2cf   : > { %s3444_s29 = scalar_lea.hbm %s3883_s8, 2560  ;;  %s3448_s24 = scalar_lea.hbm %s3934_s5, 12800 }
 0x2d0   : > { %p3445_p1 = scmp.ne.s32.totalorder %s3883_s8, %s3444_s29  ;;  %p3449_p10 = scmp.lt.s32.totalorder %s3883_s8, %s3934_s5 }
 0x2d1   : > { %p3450_p12 = scmp.lt.s32.totalorder %s3448_s24, %s3444_s29 }
 0x2d2   : > { %p3446_p8 = pnand %p3445_p1, %p3952_p6 }
 0x2d3   : > { %p3451_p2 = por %p3450_p12, %p3449_p10 }
 0x2d4   : > { %p3447_p5 = pneg %p3446_p8 }
 0x2d6   : > { %p3452_p4 = pnand %p3451_p2, %p3447_p5 }
 0x2d8   : > { %3455 = shalt.err (!%p3452_p4)
}
 0x2d9   : > { %s3513_s14 = smov 512   ;;  %s3514_s17 = smov 32  }
 0x2da   : > { %2871 = dma.vmem_to_hbm [thread:$0]  (%p3952_p6), %s3885_s16, 2560, %s3883_s8, %s2461_s22, %s3513_s14, %s3513_s14, %s3514_s17  }
 0x2db PF: > { %p2898_p11 = scmp.ge.s32.totalorder %s3502_s21, 2  ;;  %s2490_s9 = sand.u32 1, %s3490_s18  }
 0x2dc   : > { %p3953_p13 = scmp.ne.s32.totalorder %s3940_s25, 0  ;;  %s2491_s11 = scalar_lea.sflag [#allocation4], %s2490_s9 }
 0x2de   : > { %p2888_p3 = pnand %p2898_p11, %p3953_p13 }
 0x2e0   : > { %p2889_p0 = pneg %p2888_p3 }
 0x2e2   : > { %3485 = dma.done.wait (%p2889_p0), %s2491_s11, 2560  }
 0x2e3   : > { %3487 = vsyncadd (%p2889_p0), %s2491_s11, 4294964736  ;;  %p20_p7 = scmp.ge.s32.totalorder %s3624_s28, 7   ;;  %s3954_s18 = smov %s3494_s19 }
 0x2e4   : > { %s3955_s19 = smov %s3498_s20  ;;  %s3956_s20 = smov %s3634_s6 }
 0x2e5   : > { %s3957_s21 = smov %s3624_s28  ;;  %22 = sbr.rel (!%p20_p7) target bundleno = 7 (0x7), region = 97 }
 0x2ea   :  { %2496 = vsyncpa [#allocation3], 1 }
 0x2eb   :  { %2498 = vsyncpa [#allocation3 + $0x1], 1 }
 0x2ec   :  { %2499 = vsyncpa [#allocation6], 1 }
 0x2ed   :  { %2500 = vsyncpa [#allocation9], 1 }
 0x2ee   :  { %2501 = vsyncpa [#allocation4], 1 }
 0x2ef   :  { %2503 = vsyncpa [#allocation4 + $0x1], 1 }

</bundles_post_ra>
